<compile_context>
chip_gen: v6e
topology: v6e:2x2x1
jax: 0.10.0
libtpu: 0.0.40
codegen_flags: <defaults>
</compile_context>

<pallas_src>
import numpy as np
import jax
import jax.numpy as jnp
from jax.experimental import pallas as pl
from jax.experimental.pallas import tpu as pltpu

# ----------------------------- model config ---------------------------------
HIDDEN = 32
NUM_LAYERS = 2
SEQ_LEN = 20
NUM_CLASSES = 3
BATCH = 2

FEATURE_NAMES = ['Action', 'Resource', 'CreditScore', 'MonthlyCost',
                 'OfferedAmount', 'case:RequestedAmount', 'FirstWithdrawalAmount']
EMB_FEATURES = {'Action': 10, 'Resource': 8}  # name -> vocab_size
NUMERIC_NAMES = ['CreditScore', 'MonthlyCost', 'OfferedAmount',
                 'case:RequestedAmount', 'FirstWithdrawalAmount']

# lstm_input_size = H * n_emb + (len(feature_names) - n_emb) + 3
D_IN = HIDDEN * len(EMB_FEATURES) + (len(FEATURE_NAMES) - len(EMB_FEATURES)) + 3  # 72
X_WIDTH = 300

# ---- TPU-friendly padded sizes ----
B_PAD = 8            # sublane-aligned per-timestep row group
D_PAD = 128          # lane-dense padded input feature dim
G = 4 * HIDDEN       # 128 gate lanes
C_PAD = 128          # lane-dense padded fc output width

# weight-slab row offsets (all multiples of 16 = bf16 sublane tile)
OFF_WIH0 = 0                        # [D_PAD, G]  layer-0 input->gates (padded)
OFF_WHH0 = OFF_WIH0 + D_PAD         # [H, G]      layer-0 hidden->gates
OFF_W1 = OFF_WHH0 + HIDDEN          # [2H, G]     layer-1 stacked [Wih1; Whh1]
OFF_WFC = OFF_W1 + 2 * HIDDEN       # [H, C_PAD]  fc (lane-padded)
W_ROWS = OFF_WFC + HIDDEN           # 256


# ----------------------------- Pallas kernel ---------------------------------
def lstm_fused_kernel(cat_ref, tlast_ref, w_ref, b_ref, out_ref, gx_ref):
    """2-layer LSTM over T=SEQ_LEN steps + last-step select + fc + sigmoid."""
    H = HIDDEN
    BP = B_PAD
    T = SEQ_LEN

    def sig(v):  # logistic via a single tanh EUP pass (exact, cheaper than exp+recip)
        return 0.5 * jnp.tanh(0.5 * v) + 0.5

    # Hoisted layer-0 input projection (off the serial chain): one lane-dense
    # bf16 matmul, staged to VMEM scratch so wih0's live range ends here and the
    # unrolled loop reads aligned 1-vreg slices.
    b0 = b_ref[0:1, :]
    gx_ref[...] = jnp.dot(cat_ref[...], w_ref[OFF_WIH0:OFF_WIH0 + D_PAD, :],
                          preferred_element_type=jnp.float32) + b0      # [T*BP, 4H]

    # Recurrent weights: static 16-row-aligned slices of the packed bf16 slab.
    whh0 = w_ref[OFF_WHH0:OFF_WHH0 + H, :]          # [H, 4H]
    w1 = w_ref[OFF_W1:OFF_W1 + 2 * H, :]            # [2H, 4H] = [Wih1; Whh1]
    b1 = b_ref[1:2, :]                               # [1, 4H] f32
    tlast = tlast_ref[...]                           # [BP, 1] int32 (-1 on pad rows)

    h0 = jnp.zeros((BP, H), jnp.float32)
    c0 = jnp.zeros((BP, H), jnp.float32)
    h1 = jnp.zeros((BP, H), jnp.float32)
    c1 = jnp.zeros((BP, H), jnp.float32)
    last_h = jnp.zeros((BP, H), jnp.float32)

    # Fully-unrolled time recurrence; PyTorch gate order is (i, f, g, o).
    # NOTE: the 32-lane gate slices lower to XLU lane rotates; per review these
    # overlap the MXU/EUP latency on the chain (verify via bundle dump).
    for t in range(T):
        # ---- layer 0: aligned scratch slice + one bf16 recurrent matmul ----
        g0 = gx_ref[t * BP:(t + 1) * BP, :] + jnp.dot(
            h0.astype(jnp.bfloat16), whh0, preferred_element_type=jnp.float32)
        s0 = sig(g0)                  # one EUP pass over the whole [BP,4H] tile
        th0 = jnp.tanh(g0)            # one EUP pass over the whole [BP,4H] tile
        c0 = s0[:, H:2 * H] * c0 + s0[:, 0:H] * th0[:, 2 * H:3 * H]
        h0 = s0[:, 3 * H:4 * H] * jnp.tanh(c0)
        # ---- layer 1: single fused dot over [h0 | h1] ----
        hcat = jnp.concatenate([h0, h1], axis=1).astype(jnp.bfloat16)   # [BP, 2H]
        g1 = jnp.dot(hcat, w1, preferred_element_type=jnp.float32) + b1
        s1 = sig(g1)
        th1 = jnp.tanh(g1)
        c1 = s1[:, H:2 * H] * c1 + s1[:, 0:H] * th1[:, 2 * H:3 * H]
        h1 = s1[:, 3 * H:4 * H] * jnp.tanh(c1)
        # ---- fused "last valid timestep" selection ----
        last_h = jnp.where(tlast == t, h1, last_h)

    # Lane-dense fc + sigmoid tail: one unmasked [BP, 128] store.
    wfc = w_ref[OFF_WFC:OFF_WFC + H, :]
    bfc = b_ref[2:3, :]
    logits = jnp.dot(last_h.astype(jnp.bfloat16), wfc,
                     preferred_element_type=jnp.float32) + bfc
    out_ref[...] = sig(logits)


def lstm_forward_pallas(cat_flat, t_last, w_slab, b_slab):
    """cat_flat: [T*B_PAD, D_PAD] bf16 time-major; t_last: [B_PAD,1] int32.
    w_slab: [W_ROWS,128] bf16; b_slab: [8,128] f32. Returns [B_PAD, C_PAD]."""
    def full2d(a):
        return pl.BlockSpec(a.shape, lambda i: (0, 0))

    return pl.pallas_call(
        lstm_fused_kernel,
        out_shape=jax.ShapeDtypeStruct((B_PAD, C_PAD), jnp.float32),
        grid=(1,),
        in_specs=[full2d(cat_flat), full2d(t_last), full2d(w_slab), full2d(b_slab)],
        out_specs=pl.BlockSpec((B_PAD, C_PAD), lambda i: (0, 0)),
        scratch_shapes=[pltpu.VMEM((SEQ_LEN * B_PAD, G), jnp.float32)],
        compiler_params=pltpu.CompilerParams(dimension_semantics=("arbitrary",)),
    )(cat_flat, t_last, w_slab, b_slab)


# ------------------------------- JAX glue ------------------------------------
def get_embeddings(x, emb_tables):
    """Replicates LSTMModelA._get_embeddings. x: [B, 300] float32."""
    embeddings_list = []
    for name in EMB_FEATURES:
        idx = FEATURE_NAMES.index(name) * SEQ_LEN
        codes = x[:, idx:idx + SEQ_LEN].astype(jnp.int32)          # .long()
        embeddings_list.append(jnp.take(emb_tables[name], codes, axis=0))
    numerical = []
    for name in NUMERIC_NAMES:
        idx = FEATURE_NAMES.index(name) * SEQ_LEN
        numerical.append(x[:, idx:idx + SEQ_LEN])
    numerical.append(x[:, 240:260])
    numerical.append(x[:, 260:280])
    numerical.append(x[:, 280:300])
    numerical = jnp.stack(numerical, axis=2)                       # [B, T, 8]
    return jnp.concatenate(embeddings_list + [numerical], axis=2)  # [B, T, D_IN]


def forward(x, emb_tables, lstm_params, fc_params):
    B = x.shape[0]
    cat = get_embeddings(x, emb_tables)                                  # [B,T,72]
    # Pad batch rows to 8 (sublane tile) and feature lanes to 128 (lane-dense).
    cat = jnp.pad(cat, ((0, B_PAD - B), (0, 0), (0, D_PAD - D_IN)))
    cat_flat = jnp.transpose(cat, (1, 0, 2)).reshape(SEQ_LEN * B_PAD, D_PAD)
    cat_flat = cat_flat.astype(jnp.bfloat16)                             # time-major

    lengths = jnp.sum(x[:, :SEQ_LEN] != 0, axis=1).astype(jnp.int32)
    # (lengths-1) % T reproduces the Python/torch negative-index wraparound for
    # an (unlikely) all-padding example, matching output[arange(B), lengths-1].
    t_last = ((lengths - 1) % SEQ_LEN).astype(jnp.int32)
    t_last = jnp.pad(t_last, (0, B_PAD - B), constant_values=-1)[:, None]  # [8,1]

    wih0, whh0, b0, wih1, whh1, b1 = lstm_params
    wfc, bfc = fc_params

    # One bf16 weight slab (16-row-aligned sections) + one f32 bias slab.
    wih0_pad = jnp.zeros((D_PAD, G), jnp.float32).at[:D_IN].set(wih0.T)
    wfc_pad = jnp.zeros((HIDDEN, C_PAD), jnp.float32).at[:, :NUM_CLASSES].set(wfc.T)
    w_slab = jnp.concatenate(
        [wih0_pad, whh0.T, jnp.concatenate([wih1.T, whh1.T], axis=0), wfc_pad],
        axis=0).astype(jnp.bfloat16)                                     # [256,128]
    assert w_slab.shape == (W_ROWS, G)

    b_slab = jnp.zeros((8, C_PAD), jnp.float32)
    b_slab = b_slab.at[0].set(b0)
    b_slab = b_slab.at[1].set(b1)
    b_slab = b_slab.at[2, :NUM_CLASSES].set(bfc)

    out = lstm_forward_pallas(cat_flat, t_last, w_slab, b_slab)          # [8,128]
    return out[:B, :NUM_CLASSES]


# ----------------------- deterministic parameter init ------------------------
def init_params(key):
    ks = jax.random.split(key, 16)
    scale = 1.0 / np.sqrt(HIDDEN)

    def u(k, shape):
        return jax.random.uniform(k, shape, jnp.float32, -scale, scale)

    emb = {}
    for i, (name, vocab) in enumerate(EMB_FEATURES.items()):
        tbl = jax.random.normal(ks[i], (vocab + 1, HIDDEN), jnp.float32)
        tbl = tbl.at[0].set(0.0)  # padding_idx=0
        emb[name] = tbl

    wih0 = u(ks[4], (4 * HIDDEN, D_IN))
    whh0 = u(ks[5], (4 * HIDDEN, HIDDEN))
    b0 = u(ks[6], (4 * HIDDEN,)) + u(ks[7], (4 * HIDDEN,))   # b_ih + b_hh combined
    wih1 = u(ks[8], (4 * HIDDEN, HIDDEN))
    whh1 = u(ks[9], (4 * HIDDEN, HIDDEN))
    b1 = u(ks[10], (4 * HIDDEN,)) + u(ks[11], (4 * HIDDEN,))
    wfc = u(ks[12], (NUM_CLASSES, HIDDEN))
    bfc = u(ks[13], (NUM_CLASSES,))
    return emb, (wih0, whh0, b0, wih1, whh1, b1), (wfc, bfc)


# ------------------------- pure-JAX reference check --------------------------
def lstm_ref(cat, lstm_params):
    wih0, whh0, b0, wih1, whh1, b1 = lstm_params
    B, T, _ = cat.shape
    h = jnp.zeros((NUM_LAYERS, B, HIDDEN), jnp.float32)
    c = jnp.zeros_like(h)
    wih, whh, bs = (wih0, wih1), (whh0, whh1), (b0, b1)
    outs = []
    for t in range(T):
        xt = cat[:, t]
        for l in range(NUM_LAYERS):
            gates = xt @ wih[l].T + h[l] @ whh[l].T + bs[l]
            i, f, g, o = jnp.split(gates, 4, axis=1)
            i, f, g, o = jax.nn.sigmoid(i), jax.nn.sigmoid(f), jnp.tanh(g), jax.nn.sigmoid(o)
            cn = f * c[l] + i * g
            hn = o * jnp.tanh(cn)
            h = h.at[l].set(hn)
            c = c.at[l].set(cn)
            xt = hn
        outs.append(xt)
    return jnp.stack(outs, axis=1)  # [B, T, H]


def forward_ref(x, emb_tables, lstm_params, fc_params):
    cat = get_embeddings(x, emb_tables)
    output = lstm_ref(cat, lstm_params)
    lengths = jnp.sum(x[:, :SEQ_LEN] != 0, axis=1)
    last_output = output[jnp.arange(x.shape[0]), lengths - 1]
    wfc, bfc = fc_params
    return jax.nn.sigmoid(last_output @ wfc.T + bfc)


# ---------------------------------- main --------------------------------------
if __name__ == "__main__":
    key = jax.random.PRNGKey(0)
    k1, k2, k3, k4, kp = jax.random.split(key, 5)

    # synthetic input: [B, 300] float32
    seq_lengths = jnp.array([SEQ_LEN, 13], dtype=jnp.int32)
    pos = jnp.arange(SEQ_LEN)[None, :]
    valid = (pos < seq_lengths[:, None]).astype(jnp.int32)
    action = jax.random.randint(k1, (BATCH, SEQ_LEN), 1, EMB_FEATURES['Action'] + 1) * valid
    resource = jax.random.randint(k2, (BATCH, SEQ_LEN), 1, EMB_FEATURES['Resource'] + 1) * valid
    numeric = jax.random.normal(k3, (BATCH, 5 * SEQ_LEN), jnp.float32)
    filler = jnp.zeros((BATCH, 100), jnp.float32)             # unused columns 140:240
    extras = jax.random.normal(k4, (BATCH, 60), jnp.float32)  # columns 240:300
    x = jnp.concatenate([action.astype(jnp.float32), resource.astype(jnp.float32),
                         numeric, filler, extras], axis=1)
    assert x.shape == (BATCH, X_WIDTH)

    emb_tables, lstm_params, fc_params = init_params(kp)

    out = forward(x, emb_tables, lstm_params, fc_params)
    out = jax.block_until_ready(out)

    ref = forward_ref(x, emb_tables, lstm_params, fc_params)
    # bf16 MXU operands (f32 accumulation / state) over 20 recurrent steps:
    # tolerance relaxed from 1e-4 to 2e-2 accordingly.
    np.testing.assert_allclose(np.asarray(out), np.asarray(ref), rtol=2e-2, atol=2e-2)

    print("KERNEL_OK")
</pallas_src>

<mosaic_0001>
module attributes {stable_mosaic.version = 11 : i64} {
  func.func @lstm_fused_kernel(%arg0: i32, %arg1: memref<160x128xbf16, #tpu.memory_space<vmem>>, %arg2: memref<8x1xi32, #tpu.memory_space<vmem>>, %arg3: memref<256x128xbf16, #tpu.memory_space<vmem>>, %arg4: memref<8x128xf32, #tpu.memory_space<vmem>>, %arg5: memref<8x128xf32, #tpu.memory_space<vmem>>, %arg6: memref<160x128xf32, #tpu.memory_space<vmem>>) attributes {dimension_semantics = [#tpu.dimension_semantics<arbitrary>], iteration_bounds = array<i64: 1>, scalar_prefetch = 0 : i64, scratch_operands = 1 : i64, tpu.core_type = #tpu.core_type<tc>, window_params = [{pipeline_mode = #tpu.pipeline_mode<synchronous>, transform_indices = @transform_0, window_bounds = array<i64: 160, 128>}, {pipeline_mode = #tpu.pipeline_mode<synchronous>, transform_indices = @transform_1, window_bounds = array<i64: 8, 1>}, {pipeline_mode = #tpu.pipeline_mode<synchronous>, transform_indices = @transform_2, window_bounds = array<i64: 256, 128>}, {pipeline_mode = #tpu.pipeline_mode<synchronous>, transform_indices = @transform_3, window_bounds = array<i64: 8, 128>}, {pipeline_mode = #tpu.pipeline_mode<synchronous>, transform_indices = @transform_4, window_bounds = array<i64: 8, 128>}]} {
    %c0 = arith.constant 0 : index
    %c0_0 = arith.constant 0 : index
    %0 = vector.load %arg4[%c0, %c0_0] : memref<8x128xf32, #tpu.memory_space<vmem>>, vector<1x128xf32>
    %c0_1 = arith.constant 0 : index
    %c0_2 = arith.constant 0 : index
    %1 = vector.load %arg1[%c0_1, %c0_2] : memref<160x128xbf16, #tpu.memory_space<vmem>>, vector<160x128xbf16>
    %c0_3 = arith.constant 0 : index
    %c0_4 = arith.constant 0 : index
    %2 = vector.load %arg3[%c0_3, %c0_4] : memref<256x128xbf16, #tpu.memory_space<vmem>>, vector<128x128xbf16>
    %cst = arith.constant dense<0.000000e+00> : vector<160x128xf32>
    %3 = tpu.matmul %1, %2, %cst {dimension_numbers = #tpu.dot_dimension_numbers<[1], [0], [0], [1], [0, 0, 1, 1], [], []>} : vector<160x128xbf16>, vector<128x128xbf16>, vector<160x128xf32> -> vector<160x128xf32>
    %4 = vector.broadcast %0 : vector<1x128xf32> to vector<160x128xf32>
    %5 = arith.addf %3, %4 : vector<160x128xf32>
    %c0_5 = arith.constant 0 : index
    %c0_6 = arith.constant 0 : index
    %6 = vector.load %arg6[%c0_5, %c0_6] : memref<160x128xf32, #tpu.memory_space<vmem>>, vector<160x128xf32>
    tpu.vector_store %arg6[%c0_5, %c0_6], %5 {strides = array<i32>} : memref<160x128xf32, #tpu.memory_space<vmem>>, vector<160x128xf32>,
    %c128 = arith.constant 128 : index
    %c0_7 = arith.constant 0 : index
    %7 = vector.load %arg3[%c128, %c0_7] : memref<256x128xbf16, #tpu.memory_space<vmem>>, vector<32x128xbf16>
    %c160 = arith.constant 160 : index
    %c0_8 = arith.constant 0 : index
    %8 = vector.load %arg3[%c160, %c0_8] : memref<256x128xbf16, #tpu.memory_space<vmem>>, vector<64x128xbf16>
    %c1 = arith.constant 1 : index
    %c0_9 = arith.constant 0 : index
    %9 = vector.load %arg4[%c1, %c0_9] : memref<8x128xf32, #tpu.memory_space<vmem>>, vector<1x128xf32>
    %c0_10 = arith.constant 0 : index
    %c0_11 = arith.constant 0 : index
    %10 = vector.load %arg2[%c0_10, %c0_11] : memref<8x1xi32, #tpu.memory_space<vmem>>, vector<8x1xi32>
    %cst_12 = arith.constant 0.000000e+00 : f32
    %11 = vector.broadcast %cst_12 : f32 to vector<8x32xf32>
    %cst_13 = arith.constant 0.000000e+00 : f32
    %12 = vector.broadcast %cst_13 : f32 to vector<8x32xf32>
    %cst_14 = arith.constant 0.000000e+00 : f32
    %13 = vector.broadcast %cst_14 : f32 to vector<8x32xf32>
    %cst_15 = arith.constant 0.000000e+00 : f32
    %14 = vector.broadcast %cst_15 : f32 to vector<8x32xf32>
    %cst_16 = arith.constant 0.000000e+00 : f32
    %15 = vector.broadcast %cst_16 : f32 to vector<8x32xf32>
    %c0_17 = arith.constant 0 : index
    %c0_18 = arith.constant 0 : index
    %16 = vector.load %arg6[%c0_17, %c0_18] : memref<160x128xf32, #tpu.memory_space<vmem>>, vector<8x128xf32>
    %17 = arith.truncf %11 : vector<8x32xf32> to vector<8x32xbf16>
    %cst_19 = arith.constant dense<0.000000e+00> : vector<8x128xf32>
    %18 = tpu.matmul %17, %7, %cst_19 {dimension_numbers = #tpu.dot_dimension_numbers<[1], [0], [0], [1], [0, 0, 1, 1], [], []>} : vector<8x32xbf16>, vector<32x128xbf16>, vector<8x128xf32> -> vector<8x128xf32>
    %19 = arith.addf %16, %18 : vector<8x128xf32>
    %cst_20 = arith.constant 5.000000e-01 : f32
    %20 = vector.broadcast %cst_20 : f32 to vector<8x128xf32>
    %21 = arith.mulf %20, %19 : vector<8x128xf32>
    %22 = math.tanh %21 : vector<8x128xf32>
    %cst_21 = arith.constant 5.000000e-01 : f32
    %23 = vector.broadcast %cst_21 : f32 to vector<8x128xf32>
    %24 = arith.mulf %23, %22 : vector<8x128xf32>
    %cst_22 = arith.constant 5.000000e-01 : f32
    %25 = vector.broadcast %cst_22 : f32 to vector<8x128xf32>
    %26 = arith.addf %24, %25 : vector<8x128xf32>
    %27 = math.tanh %19 : vector<8x128xf32>
    %28 = vector.extract_strided_slice %26 {offsets = [0, 32], sizes = [8, 32], strides = [1, 1]} : vector<8x128xf32> to vector<8x32xf32>
    %29 = arith.mulf %28, %12 : vector<8x32xf32>
    %30 = vector.extract_strided_slice %26 {offsets = [0, 0], sizes = [8, 32], strides = [1, 1]} : vector<8x128xf32> to vector<8x32xf32>
    %31 = vector.extract_strided_slice %27 {offsets = [0, 64], sizes = [8, 32], strides = [1, 1]} : vector<8x128xf32> to vector<8x32xf32>
    %32 = arith.mulf %30, %31 : vector<8x32xf32>
    %33 = arith.addf %29, %32 : vector<8x32xf32>
    %34 = vector.extract_strided_slice %26 {offsets = [0, 96], sizes = [8, 32], strides = [1, 1]} : vector<8x128xf32> to vector<8x32xf32>
    %35 = math.tanh %33 : vector<8x32xf32>
    %36 = arith.mulf %34, %35 : vector<8x32xf32>
    %37 = tpu.concatenate %36, %13 in 1 : vector<8x32xf32>, vector<8x32xf32> -> vector<8x64xf32>
    %38 = arith.truncf %37 : vector<8x64xf32> to vector<8x64xbf16>
    %cst_23 = arith.constant dense<0.000000e+00> : vector<8x128xf32>
    %39 = tpu.matmul %38, %8, %cst_23 {dimension_numbers = #tpu.dot_dimension_numbers<[1], [0], [0], [1], [0, 0, 1, 1], [], []>} : vector<8x64xbf16>, vector<64x128xbf16>, vector<8x128xf32> -> vector<8x128xf32>
    %40 = vector.broadcast %9 : vector<1x128xf32> to vector<8x128xf32>
    %41 = arith.addf %39, %40 : vector<8x128xf32>
    %cst_24 = arith.constant 5.000000e-01 : f32
    %42 = vector.broadcast %cst_24 : f32 to vector<8x128xf32>
    %43 = arith.mulf %42, %41 : vector<8x128xf32>
    %44 = math.tanh %43 : vector<8x128xf32>
    %cst_25 = arith.constant 5.000000e-01 : f32
    %45 = vector.broadcast %cst_25 : f32 to vector<8x128xf32>
    %46 = arith.mulf %45, %44 : vector<8x128xf32>
    %cst_26 = arith.constant 5.000000e-01 : f32
    %47 = vector.broadcast %cst_26 : f32 to vector<8x128xf32>
    %48 = arith.addf %46, %47 : vector<8x128xf32>
    %49 = math.tanh %41 : vector<8x128xf32>
    %50 = vector.extract_strided_slice %48 {offsets = [0, 32], sizes = [8, 32], strides = [1, 1]} : vector<8x128xf32> to vector<8x32xf32>
    %51 = arith.mulf %50, %14 : vector<8x32xf32>
    %52 = vector.extract_strided_slice %48 {offsets = [0, 0], sizes = [8, 32], strides = [1, 1]} : vector<8x128xf32> to vector<8x32xf32>
    %53 = vector.extract_strided_slice %49 {offsets = [0, 64], sizes = [8, 32], strides = [1, 1]} : vector<8x128xf32> to vector<8x32xf32>
    %54 = arith.mulf %52, %53 : vector<8x32xf32>
    %55 = arith.addf %51, %54 : vector<8x32xf32>
    %56 = vector.extract_strided_slice %48 {offsets = [0, 96], sizes = [8, 32], strides = [1, 1]} : vector<8x128xf32> to vector<8x32xf32>
    %57 = math.tanh %55 : vector<8x32xf32>
    %58 = arith.mulf %56, %57 : vector<8x32xf32>
    %c0_i32 = arith.constant 0 : i32
    %59 = vector.broadcast %c0_i32 : i32 to vector<8x1xi32>
    %60 = arith.cmpi eq, %10, %59 : vector<8x1xi32>
    %61 = vector.shape_cast %60 : vector<8x1xi1> to vector<8x1xi1>
    %62 = vector.broadcast %61 : vector<8x1xi1> to vector<8x32xi1>
    %63 = arith.select %62, %58, %15 : vector<8x32xi1>, vector<8x32xf32>
    %c8 = arith.constant 8 : index
    %c0_27 = arith.constant 0 : index
    %64 = vector.load %arg6[%c8, %c0_27] : memref<160x128xf32, #tpu.memory_space<vmem>>, vector<8x128xf32>
    %65 = arith.truncf %36 : vector<8x32xf32> to vector<8x32xbf16>
    %cst_28 = arith.constant dense<0.000000e+00> : vector<8x128xf32>
    %66 = tpu.matmul %65, %7, %cst_28 {dimension_numbers = #tpu.dot_dimension_numbers<[1], [0], [0], [1], [0, 0, 1, 1], [], []>} : vector<8x32xbf16>, vector<32x128xbf16>, vector<8x128xf32> -> vector<8x128xf32>
    %67 = arith.addf %64, %66 : vector<8x128xf32>
    %cst_29 = arith.constant 5.000000e-01 : f32
    %68 = vector.broadcast %cst_29 : f32 to vector<8x128xf32>
    %69 = arith.mulf %68, %67 : vector<8x128xf32>
    %70 = math.tanh %69 : vector<8x128xf32>
    %cst_30 = arith.constant 5.000000e-01 : f32
    %71 = vector.broadcast %cst_30 : f32 to vector<8x128xf32>
    %72 = arith.mulf %71, %70 : vector<8x128xf32>
    %cst_31 = arith.constant 5.000000e-01 : f32
    %73 = vector.broadcast %cst_31 : f32 to vector<8x128xf32>
    %74 = arith.addf %72, %73 : vector<8x128xf32>
    %75 = math.tanh %67 : vector<8x128xf32>
    %76 = vector.extract_strided_slice %74 {offsets = [0, 32], sizes = [8, 32], strides = [1, 1]} : vector<8x128xf32> to vector<8x32xf32>
    %77 = arith.mulf %76, %33 : vector<8x32xf32>
    %78 = vector.extract_strided_slice %74 {offsets = [0, 0], sizes = [8, 32], strides = [1, 1]} : vector<8x128xf32> to vector<8x32xf32>
    %79 = vector.extract_strided_slice %75 {offsets = [0, 64], sizes = [8, 32], strides = [1, 1]} : vector<8x128xf32> to vector<8x32xf32>
    %80 = arith.mulf %78, %79 : vector<8x32xf32>
    %81 = arith.addf %77, %80 : vector<8x32xf32>
    %82 = vector.extract_strided_slice %74 {offsets = [0, 96], sizes = [8, 32], strides = [1, 1]} : vector<8x128xf32> to vector<8x32xf32>
    %83 = math.tanh %81 : vector<8x32xf32>
    %84 = arith.mulf %82, %83 : vector<8x32xf32>
    %85 = tpu.concatenate %84, %58 in 1 : vector<8x32xf32>, vector<8x32xf32> -> vector<8x64xf32>
    %86 = arith.truncf %85 : vector<8x64xf32> to vector<8x64xbf16>
    %cst_32 = arith.constant dense<0.000000e+00> : vector<8x128xf32>
    %87 = tpu.matmul %86, %8, %cst_32 {dimension_numbers = #tpu.dot_dimension_numbers<[1], [0], [0], [1], [0, 0, 1, 1], [], []>} : vector<8x64xbf16>, vector<64x128xbf16>, vector<8x128xf32> -> vector<8x128xf32>
    %88 = vector.broadcast %9 : vector<1x128xf32> to vector<8x128xf32>
    %89 = arith.addf %87, %88 : vector<8x128xf32>
    %cst_33 = arith.constant 5.000000e-01 : f32
    %90 = vector.broadcast %cst_33 : f32 to vector<8x128xf32>
    %91 = arith.mulf %90, %89 : vector<8x128xf32>
    %92 = math.tanh %91 : vector<8x128xf32>
    %cst_34 = arith.constant 5.000000e-01 : f32
    %93 = vector.broadcast %cst_34 : f32 to vector<8x128xf32>
    %94 = arith.mulf %93, %92 : vector<8x128xf32>
    %cst_35 = arith.constant 5.000000e-01 : f32
    %95 = vector.broadcast %cst_35 : f32 to vector<8x128xf32>
    %96 = arith.addf %94, %95 : vector<8x128xf32>
    %97 = math.tanh %89 : vector<8x128xf32>
    %98 = vector.extract_strided_slice %96 {offsets = [0, 32], sizes = [8, 32], strides = [1, 1]} : vector<8x128xf32> to vector<8x32xf32>
    %99 = arith.mulf %98, %55 : vector<8x32xf32>
    %100 = vector.extract_strided_slice %96 {offsets = [0, 0], sizes = [8, 32], strides = [1, 1]} : vector<8x128xf32> to vector<8x32xf32>
    %101 = vector.extract_strided_slice %97 {offsets = [0, 64], sizes = [8, 32], strides = [1, 1]} : vector<8x128xf32> to vector<8x32xf32>
    %102 = arith.mulf %100, %101 : vector<8x32xf32>
    %103 = arith.addf %99, %102 : vector<8x32xf32>
    %104 = vector.extract_strided_slice %96 {offsets = [0, 96], sizes = [8, 32], strides = [1, 1]} : vector<8x128xf32> to vector<8x32xf32>
    %105 = math.tanh %103 : vector<8x32xf32>
    %106 = arith.mulf %104, %105 : vector<8x32xf32>
    %c1_i32 = arith.constant 1 : i32
    %107 = vector.broadcast %c1_i32 : i32 to vector<8x1xi32>
    %108 = arith.cmpi eq, %10, %107 : vector<8x1xi32>
    %109 = vector.shape_cast %108 : vector<8x1xi1> to vector<8x1xi1>
    %110 = vector.broadcast %109 : vector<8x1xi1> to vector<8x32xi1>
    %111 = arith.select %110, %106, %63 : vector<8x32xi1>, vector<8x32xf32>
    %c16 = arith.constant 16 : index
    %c0_36 = arith.constant 0 : index
    %112 = vector.load %arg6[%c16, %c0_36] : memref<160x128xf32, #tpu.memory_space<vmem>>, vector<8x128xf32>
    %113 = arith.truncf %84 : vector<8x32xf32> to vector<8x32xbf16>
    %cst_37 = arith.constant dense<0.000000e+00> : vector<8x128xf32>
    %114 = tpu.matmul %113, %7, %cst_37 {dimension_numbers = #tpu.dot_dimension_numbers<[1], [0], [0], [1], [0, 0, 1, 1], [], []>} : vector<8x32xbf16>, vector<32x128xbf16>, vector<8x128xf32> -> vector<8x128xf32>
    %115 = arith.addf %112, %114 : vector<8x128xf32>
    %cst_38 = arith.constant 5.000000e-01 : f32
    %116 = vector.broadcast %cst_38 : f32 to vector<8x128xf32>
    %117 = arith.mulf %116, %115 : vector<8x128xf32>
    %118 = math.tanh %117 : vector<8x128xf32>
    %cst_39 = arith.constant 5.000000e-01 : f32
    %119 = vector.broadcast %cst_39 : f32 to vector<8x128xf32>
    %120 = arith.mulf %119, %118 : vector<8x128xf32>
    %cst_40 = arith.constant 5.000000e-01 : f32
    %121 = vector.broadcast %cst_40 : f32 to vector<8x128xf32>
    %122 = arith.addf %120, %121 : vector<8x128xf32>
    %123 = math.tanh %115 : vector<8x128xf32>
    %124 = vector.extract_strided_slice %122 {offsets = [0, 32], sizes = [8, 32], strides = [1, 1]} : vector<8x128xf32> to vector<8x32xf32>
    %125 = arith.mulf %124, %81 : vector<8x32xf32>
    %126 = vector.extract_strided_slice %122 {offsets = [0, 0], sizes = [8, 32], strides = [1, 1]} : vector<8x128xf32> to vector<8x32xf32>
    %127 = vector.extract_strided_slice %123 {offsets = [0, 64], sizes = [8, 32], strides = [1, 1]} : vector<8x128xf32> to vector<8x32xf32>
    %128 = arith.mulf %126, %127 : vector<8x32xf32>
    %129 = arith.addf %125, %128 : vector<8x32xf32>
    %130 = vector.extract_strided_slice %122 {offsets = [0, 96], sizes = [8, 32], strides = [1, 1]} : vector<8x128xf32> to vector<8x32xf32>
    %131 = math.tanh %129 : vector<8x32xf32>
    %132 = arith.mulf %130, %131 : vector<8x32xf32>
    %133 = tpu.concatenate %132, %106 in 1 : vector<8x32xf32>, vector<8x32xf32> -> vector<8x64xf32>
    %134 = arith.truncf %133 : vector<8x64xf32> to vector<8x64xbf16>
    %cst_41 = arith.constant dense<0.000000e+00> : vector<8x128xf32>
    %135 = tpu.matmul %134, %8, %cst_41 {dimension_numbers = #tpu.dot_dimension_numbers<[1], [0], [0], [1], [0, 0, 1, 1], [], []>} : vector<8x64xbf16>, vector<64x128xbf16>, vector<8x128xf32> -> vector<8x128xf32>
    %136 = vector.broadcast %9 : vector<1x128xf32> to vector<8x128xf32>
    %137 = arith.addf %135, %136 : vector<8x128xf32>
    %cst_42 = arith.constant 5.000000e-01 : f32
    %138 = vector.broadcast %cst_42 : f32 to vector<8x128xf32>
    %139 = arith.mulf %138, %137 : vector<8x128xf32>
    %140 = math.tanh %139 : vector<8x128xf32>
    %cst_43 = arith.constant 5.000000e-01 : f32
    %141 = vector.broadcast %cst_43 : f32 to vector<8x128xf32>
    %142 = arith.mulf %141, %140 : vector<8x128xf32>
    %cst_44 = arith.constant 5.000000e-01 : f32
    %143 = vector.broadcast %cst_44 : f32 to vector<8x128xf32>
    %144 = arith.addf %142, %143 : vector<8x128xf32>
    %145 = math.tanh %137 : vector<8x128xf32>
    %146 = vector.extract_strided_slice %144 {offsets = [0, 32], sizes = [8, 32], strides = [1, 1]} : vector<8x128xf32> to vector<8x32xf32>
    %147 = arith.mulf %146, %103 : vector<8x32xf32>
    %148 = vector.extract_strided_slice %144 {offsets = [0, 0], sizes = [8, 32], strides = [1, 1]} : vector<8x128xf32> to vector<8x32xf32>
    %149 = vector.extract_strided_slice %145 {offsets = [0, 64], sizes = [8, 32], strides = [1, 1]} : vector<8x128xf32> to vector<8x32xf32>
    %150 = arith.mulf %148, %149 : vector<8x32xf32>
    %151 = arith.addf %147, %150 : vector<8x32xf32>
    %152 = vector.extract_strided_slice %144 {offsets = [0, 96], sizes = [8, 32], strides = [1, 1]} : vector<8x128xf32> to vector<8x32xf32>
    %153 = math.tanh %151 : vector<8x32xf32>
    %154 = arith.mulf %152, %153 : vector<8x32xf32>
    %c2_i32 = arith.constant 2 : i32
    %155 = vector.broadcast %c2_i32 : i32 to vector<8x1xi32>
    %156 = arith.cmpi eq, %10, %155 : vector<8x1xi32>
    %157 = vector.shape_cast %156 : vector<8x1xi1> to vector<8x1xi1>
    %158 = vector.broadcast %157 : vector<8x1xi1> to vector<8x32xi1>
    %159 = arith.select %158, %154, %111 : vector<8x32xi1>, vector<8x32xf32>
    %c24 = arith.constant 24 : index
    %c0_45 = arith.constant 0 : index
    %160 = vector.load %arg6[%c24, %c0_45] : memref<160x128xf32, #tpu.memory_space<vmem>>, vector<8x128xf32>
    %161 = arith.truncf %132 : vector<8x32xf32> to vector<8x32xbf16>
    %cst_46 = arith.constant dense<0.000000e+00> : vector<8x128xf32>
    %162 = tpu.matmul %161, %7, %cst_46 {dimension_numbers = #tpu.dot_dimension_numbers<[1], [0], [0], [1], [0, 0, 1, 1], [], []>} : vector<8x32xbf16>, vector<32x128xbf16>, vector<8x128xf32> -> vector<8x128xf32>
    %163 = arith.addf %160, %162 : vector<8x128xf32>
    %cst_47 = arith.constant 5.000000e-01 : f32
    %164 = vector.broadcast %cst_47 : f32 to vector<8x128xf32>
    %165 = arith.mulf %164, %163 : vector<8x128xf32>
    %166 = math.tanh %165 : vector<8x128xf32>
    %cst_48 = arith.constant 5.000000e-01 : f32
    %167 = vector.broadcast %cst_48 : f32 to vector<8x128xf32>
    %168 = arith.mulf %167, %166 : vector<8x128xf32>
    %cst_49 = arith.constant 5.000000e-01 : f32
    %169 = vector.broadcast %cst_49 : f32 to vector<8x128xf32>
    %170 = arith.addf %168, %169 : vector<8x128xf32>
    %171 = math.tanh %163 : vector<8x128xf32>
    %172 = vector.extract_strided_slice %170 {offsets = [0, 32], sizes = [8, 32], strides = [1, 1]} : vector<8x128xf32> to vector<8x32xf32>
    %173 = arith.mulf %172, %129 : vector<8x32xf32>
    %174 = vector.extract_strided_slice %170 {offsets = [0, 0], sizes = [8, 32], strides = [1, 1]} : vector<8x128xf32> to vector<8x32xf32>
    %175 = vector.extract_strided_slice %171 {offsets = [0, 64], sizes = [8, 32], strides = [1, 1]} : vector<8x128xf32> to vector<8x32xf32>
    %176 = arith.mulf %174, %175 : vector<8x32xf32>
    %177 = arith.addf %173, %176 : vector<8x32xf32>
    %178 = vector.extract_strided_slice %170 {offsets = [0, 96], sizes = [8, 32], strides = [1, 1]} : vector<8x128xf32> to vector<8x32xf32>
    %179 = math.tanh %177 : vector<8x32xf32>
    %180 = arith.mulf %178, %179 : vector<8x32xf32>
    %181 = tpu.concatenate %180, %154 in 1 : vector<8x32xf32>, vector<8x32xf32> -> vector<8x64xf32>
    %182 = arith.truncf %181 : vector<8x64xf32> to vector<8x64xbf16>
    %cst_50 = arith.constant dense<0.000000e+00> : vector<8x128xf32>
    %183 = tpu.matmul %182, %8, %cst_50 {dimension_numbers = #tpu.dot_dimension_numbers<[1], [0], [0], [1], [0, 0, 1, 1], [], []>} : vector<8x64xbf16>, vector<64x128xbf16>, vector<8x128xf32> -> vector<8x128xf32>
    %184 = vector.broadcast %9 : vector<1x128xf32> to vector<8x128xf32>
    %185 = arith.addf %183, %184 : vector<8x128xf32>
    %cst_51 = arith.constant 5.000000e-01 : f32
    %186 = vector.broadcast %cst_51 : f32 to vector<8x128xf32>
    %187 = arith.mulf %186, %185 : vector<8x128xf32>
    %188 = math.tanh %187 : vector<8x128xf32>
    %cst_52 = arith.constant 5.000000e-01 : f32
    %189 = vector.broadcast %cst_52 : f32 to vector<8x128xf32>
    %190 = arith.mulf %189, %188 : vector<8x128xf32>
    %cst_53 = arith.constant 5.000000e-01 : f32
    %191 = vector.broadcast %cst_53 : f32 to vector<8x128xf32>
    %192 = arith.addf %190, %191 : vector<8x128xf32>
    %193 = math.tanh %185 : vector<8x128xf32>
    %194 = vector.extract_strided_slice %192 {offsets = [0, 32], sizes = [8, 32], strides = [1, 1]} : vector<8x128xf32> to vector<8x32xf32>
    %195 = arith.mulf %194, %151 : vector<8x32xf32>
    %196 = vector.extract_strided_slice %192 {offsets = [0, 0], sizes = [8, 32], strides = [1, 1]} : vector<8x128xf32> to vector<8x32xf32>
    %197 = vector.extract_strided_slice %193 {offsets = [0, 64], sizes = [8, 32], strides = [1, 1]} : vector<8x128xf32> to vector<8x32xf32>
    %198 = arith.mulf %196, %197 : vector<8x32xf32>
    %199 = arith.addf %195, %198 : vector<8x32xf32>
    %200 = vector.extract_strided_slice %192 {offsets = [0, 96], sizes = [8, 32], strides = [1, 1]} : vector<8x128xf32> to vector<8x32xf32>
    %201 = math.tanh %199 : vector<8x32xf32>
    %202 = arith.mulf %200, %201 : vector<8x32xf32>
    %c3_i32 = arith.constant 3 : i32
    %203 = vector.broadcast %c3_i32 : i32 to vector<8x1xi32>
    %204 = arith.cmpi eq, %10, %203 : vector<8x1xi32>
    %205 = vector.shape_cast %204 : vector<8x1xi1> to vector<8x1xi1>
    %206 = vector.broadcast %205 : vector<8x1xi1> to vector<8x32xi1>
    %207 = arith.select %206, %202, %159 : vector<8x32xi1>, vector<8x32xf32>
    %c32 = arith.constant 32 : index
    %c0_54 = arith.constant 0 : index
    %208 = vector.load %arg6[%c32, %c0_54] : memref<160x128xf32, #tpu.memory_space<vmem>>, vector<8x128xf32>
    %209 = arith.truncf %180 : vector<8x32xf32> to vector<8x32xbf16>
    %cst_55 = arith.constant dense<0.000000e+00> : vector<8x128xf32>
    %210 = tpu.matmul %209, %7, %cst_55 {dimension_numbers = #tpu.dot_dimension_numbers<[1], [0], [0], [1], [0, 0, 1, 1], [], []>} : vector<8x32xbf16>, vector<32x128xbf16>, vector<8x128xf32> -> vector<8x128xf32>
    %211 = arith.addf %208, %210 : vector<8x128xf32>
    %cst_56 = arith.constant 5.000000e-01 : f32
    %212 = vector.broadcast %cst_56 : f32 to vector<8x128xf32>
    %213 = arith.mulf %212, %211 : vector<8x128xf32>
    %214 = math.tanh %213 : vector<8x128xf32>
    %cst_57 = arith.constant 5.000000e-01 : f32
    %215 = vector.broadcast %cst_57 : f32 to vector<8x128xf32>
    %216 = arith.mulf %215, %214 : vector<8x128xf32>
    %cst_58 = arith.constant 5.000000e-01 : f32
    %217 = vector.broadcast %cst_58 : f32 to vector<8x128xf32>
    %218 = arith.addf %216, %217 : vector<8x128xf32>
    %219 = math.tanh %211 : vector<8x128xf32>
    %220 = vector.extract_strided_slice %218 {offsets = [0, 32], sizes = [8, 32], strides = [1, 1]} : vector<8x128xf32> to vector<8x32xf32>
    %221 = arith.mulf %220, %177 : vector<8x32xf32>
    %222 = vector.extract_strided_slice %218 {offsets = [0, 0], sizes = [8, 32], strides = [1, 1]} : vector<8x128xf32> to vector<8x32xf32>
    %223 = vector.extract_strided_slice %219 {offsets = [0, 64], sizes = [8, 32], strides = [1, 1]} : vector<8x128xf32> to vector<8x32xf32>
    %224 = arith.mulf %222, %223 : vector<8x32xf32>
    %225 = arith.addf %221, %224 : vector<8x32xf32>
    %226 = vector.extract_strided_slice %218 {offsets = [0, 96], sizes = [8, 32], strides = [1, 1]} : vector<8x128xf32> to vector<8x32xf32>
    %227 = math.tanh %225 : vector<8x32xf32>
    %228 = arith.mulf %226, %227 : vector<8x32xf32>
    %229 = tpu.concatenate %228, %202 in 1 : vector<8x32xf32>, vector<8x32xf32> -> vector<8x64xf32>
    %230 = arith.truncf %229 : vector<8x64xf32> to vector<8x64xbf16>
    %cst_59 = arith.constant dense<0.000000e+00> : vector<8x128xf32>
    %231 = tpu.matmul %230, %8, %cst_59 {dimension_numbers = #tpu.dot_dimension_numbers<[1], [0], [0], [1], [0, 0, 1, 1], [], []>} : vector<8x64xbf16>, vector<64x128xbf16>, vector<8x128xf32> -> vector<8x128xf32>
    %232 = vector.broadcast %9 : vector<1x128xf32> to vector<8x128xf32>
    %233 = arith.addf %231, %232 : vector<8x128xf32>
    %cst_60 = arith.constant 5.000000e-01 : f32
    %234 = vector.broadcast %cst_60 : f32 to vector<8x128xf32>
    %235 = arith.mulf %234, %233 : vector<8x128xf32>
    %236 = math.tanh %235 : vector<8x128xf32>
    %cst_61 = arith.constant 5.000000e-01 : f32
    %237 = vector.broadcast %cst_61 : f32 to vector<8x128xf32>
    %238 = arith.mulf %237, %236 : vector<8x128xf32>
    %cst_62 = arith.constant 5.000000e-01 : f32
    %239 = vector.broadcast %cst_62 : f32 to vector<8x128xf32>
    %240 = arith.addf %238, %239 : vector<8x128xf32>
    %241 = math.tanh %233 : vector<8x128xf32>
    %242 = vector.extract_strided_slice %240 {offsets = [0, 32], sizes = [8, 32], strides = [1, 1]} : vector<8x128xf32> to vector<8x32xf32>
    %243 = arith.mulf %242, %199 : vector<8x32xf32>
    %244 = vector.extract_strided_slice %240 {offsets = [0, 0], sizes = [8, 32], strides = [1, 1]} : vector<8x128xf32> to vector<8x32xf32>
    %245 = vector.extract_strided_slice %241 {offsets = [0, 64], sizes = [8, 32], strides = [1, 1]} : vector<8x128xf32> to vector<8x32xf32>
    %246 = arith.mulf %244, %245 : vector<8x32xf32>
    %247 = arith.addf %243, %246 : vector<8x32xf32>
    %248 = vector.extract_strided_slice %240 {offsets = [0, 96], sizes = [8, 32], strides = [1, 1]} : vector<8x128xf32> to vector<8x32xf32>
    %249 = math.tanh %247 : vector<8x32xf32>
    %250 = arith.mulf %248, %249 : vector<8x32xf32>
    %c4_i32 = arith.constant 4 : i32
    %251 = vector.broadcast %c4_i32 : i32 to vector<8x1xi32>
    %252 = arith.cmpi eq, %10, %251 : vector<8x1xi32>
    %253 = vector.shape_cast %252 : vector<8x1xi1> to vector<8x1xi1>
    %254 = vector.broadcast %253 : vector<8x1xi1> to vector<8x32xi1>
    %255 = arith.select %254, %250, %207 : vector<8x32xi1>, vector<8x32xf32>
    %c40 = arith.constant 40 : index
    %c0_63 = arith.constant 0 : index
    %256 = vector.load %arg6[%c40, %c0_63] : memref<160x128xf32, #tpu.memory_space<vmem>>, vector<8x128xf32>
    %257 = arith.truncf %228 : vector<8x32xf32> to vector<8x32xbf16>
    %cst_64 = arith.constant dense<0.000000e+00> : vector<8x128xf32>
    %258 = tpu.matmul %257, %7, %cst_64 {dimension_numbers = #tpu.dot_dimension_numbers<[1], [0], [0], [1], [0, 0, 1, 1], [], []>} : vector<8x32xbf16>, vector<32x128xbf16>, vector<8x128xf32> -> vector<8x128xf32>
    %259 = arith.addf %256, %258 : vector<8x128xf32>
    %cst_65 = arith.constant 5.000000e-01 : f32
    %260 = vector.broadcast %cst_65 : f32 to vector<8x128xf32>
    %261 = arith.mulf %260, %259 : vector<8x128xf32>
    %262 = math.tanh %261 : vector<8x128xf32>
    %cst_66 = arith.constant 5.000000e-01 : f32
    %263 = vector.broadcast %cst_66 : f32 to vector<8x128xf32>
    %264 = arith.mulf %263, %262 : vector<8x128xf32>
    %cst_67 = arith.constant 5.000000e-01 : f32
    %265 = vector.broadcast %cst_67 : f32 to vector<8x128xf32>
    %266 = arith.addf %264, %265 : vector<8x128xf32>
    %267 = math.tanh %259 : vector<8x128xf32>
    %268 = vector.extract_strided_slice %266 {offsets = [0, 32], sizes = [8, 32], strides = [1, 1]} : vector<8x128xf32> to vector<8x32xf32>
    %269 = arith.mulf %268, %225 : vector<8x32xf32>
    %270 = vector.extract_strided_slice %266 {offsets = [0, 0], sizes = [8, 32], strides = [1, 1]} : vector<8x128xf32> to vector<8x32xf32>
    %271 = vector.extract_strided_slice %267 {offsets = [0, 64], sizes = [8, 32], strides = [1, 1]} : vector<8x128xf32> to vector<8x32xf32>
    %272 = arith.mulf %270, %271 : vector<8x32xf32>
    %273 = arith.addf %269, %272 : vector<8x32xf32>
    %274 = vector.extract_strided_slice %266 {offsets = [0, 96], sizes = [8, 32], strides = [1, 1]} : vector<8x128xf32> to vector<8x32xf32>
    %275 = math.tanh %273 : vector<8x32xf32>
    %276 = arith.mulf %274, %275 : vector<8x32xf32>
    %277 = tpu.concatenate %276, %250 in 1 : vector<8x32xf32>, vector<8x32xf32> -> vector<8x64xf32>
    %278 = arith.truncf %277 : vector<8x64xf32> to vector<8x64xbf16>
    %cst_68 = arith.constant dense<0.000000e+00> : vector<8x128xf32>
    %279 = tpu.matmul %278, %8, %cst_68 {dimension_numbers = #tpu.dot_dimension_numbers<[1], [0], [0], [1], [0, 0, 1, 1], [], []>} : vector<8x64xbf16>, vector<64x128xbf16>, vector<8x128xf32> -> vector<8x128xf32>
    %280 = vector.broadcast %9 : vector<1x128xf32> to vector<8x128xf32>
    %281 = arith.addf %279, %280 : vector<8x128xf32>
    %cst_69 = arith.constant 5.000000e-01 : f32
    %282 = vector.broadcast %cst_69 : f32 to vector<8x128xf32>
    %283 = arith.mulf %282, %281 : vector<8x128xf32>
    %284 = math.tanh %283 : vector<8x128xf32>
    %cst_70 = arith.constant 5.000000e-01 : f32
    %285 = vector.broadcast %cst_70 : f32 to vector<8x128xf32>
    %286 = arith.mulf %285, %284 : vector<8x128xf32>
    %cst_71 = arith.constant 5.000000e-01 : f32
    %287 = vector.broadcast %cst_71 : f32 to vector<8x128xf32>
    %288 = arith.addf %286, %287 : vector<8x128xf32>
    %289 = math.tanh %281 : vector<8x128xf32>
    %290 = vector.extract_strided_slice %288 {offsets = [0, 32], sizes = [8, 32], strides = [1, 1]} : vector<8x128xf32> to vector<8x32xf32>
    %291 = arith.mulf %290, %247 : vector<8x32xf32>
    %292 = vector.extract_strided_slice %288 {offsets = [0, 0], sizes = [8, 32], strides = [1, 1]} : vector<8x128xf32> to vector<8x32xf32>
    %293 = vector.extract_strided_slice %289 {offsets = [0, 64], sizes = [8, 32], strides = [1, 1]} : vector<8x128xf32> to vector<8x32xf32>
    %294 = arith.mulf %292, %293 : vector<8x32xf32>
    %295 = arith.addf %291, %294 : vector<8x32xf32>
    %296 = vector.extract_strided_slice %288 {offsets = [0, 96], sizes = [8, 32], strides = [1, 1]} : vector<8x128xf32> to vector<8x32xf32>
    %297 = math.tanh %295 : vector<8x32xf32>
    %298 = arith.mulf %296, %297 : vector<8x32xf32>
    %c5_i32 = arith.constant 5 : i32
    %299 = vector.broadcast %c5_i32 : i32 to vector<8x1xi32>
    %300 = arith.cmpi eq, %10, %299 : vector<8x1xi32>
    %301 = vector.shape_cast %300 : vector<8x1xi1> to vector<8x1xi1>
    %302 = vector.broadcast %301 : vector<8x1xi1> to vector<8x32xi1>
    %303 = arith.select %302, %298, %255 : vector<8x32xi1>, vector<8x32xf32>
    %c48 = arith.constant 48 : index
    %c0_72 = arith.constant 0 : index
    %304 = vector.load %arg6[%c48, %c0_72] : memref<160x128xf32, #tpu.memory_space<vmem>>, vector<8x128xf32>
    %305 = arith.truncf %276 : vector<8x32xf32> to vector<8x32xbf16>
    %cst_73 = arith.constant dense<0.000000e+00> : vector<8x128xf32>
    %306 = tpu.matmul %305, %7, %cst_73 {dimension_numbers = #tpu.dot_dimension_numbers<[1], [0], [0], [1], [0, 0, 1, 1], [], []>} : vector<8x32xbf16>, vector<32x128xbf16>, vector<8x128xf32> -> vector<8x128xf32>
    %307 = arith.addf %304, %306 : vector<8x128xf32>
    %cst_74 = arith.constant 5.000000e-01 : f32
    %308 = vector.broadcast %cst_74 : f32 to vector<8x128xf32>
    %309 = arith.mulf %308, %307 : vector<8x128xf32>
    %310 = math.tanh %309 : vector<8x128xf32>
    %cst_75 = arith.constant 5.000000e-01 : f32
    %311 = vector.broadcast %cst_75 : f32 to vector<8x128xf32>
    %312 = arith.mulf %311, %310 : vector<8x128xf32>
    %cst_76 = arith.constant 5.000000e-01 : f32
    %313 = vector.broadcast %cst_76 : f32 to vector<8x128xf32>
    %314 = arith.addf %312, %313 : vector<8x128xf32>
    %315 = math.tanh %307 : vector<8x128xf32>
    %316 = vector.extract_strided_slice %314 {offsets = [0, 32], sizes = [8, 32], strides = [1, 1]} : vector<8x128xf32> to vector<8x32xf32>
    %317 = arith.mulf %316, %273 : vector<8x32xf32>
    %318 = vector.extract_strided_slice %314 {offsets = [0, 0], sizes = [8, 32], strides = [1, 1]} : vector<8x128xf32> to vector<8x32xf32>
    %319 = vector.extract_strided_slice %315 {offsets = [0, 64], sizes = [8, 32], strides = [1, 1]} : vector<8x128xf32> to vector<8x32xf32>
    %320 = arith.mulf %318, %319 : vector<8x32xf32>
    %321 = arith.addf %317, %320 : vector<8x32xf32>
    %322 = vector.extract_strided_slice %314 {offsets = [0, 96], sizes = [8, 32], strides = [1, 1]} : vector<8x128xf32> to vector<8x32xf32>
    %323 = math.tanh %321 : vector<8x32xf32>
    %324 = arith.mulf %322, %323 : vector<8x32xf32>
    %325 = tpu.concatenate %324, %298 in 1 : vector<8x32xf32>, vector<8x32xf32> -> vector<8x64xf32>
    %326 = arith.truncf %325 : vector<8x64xf32> to vector<8x64xbf16>
    %cst_77 = arith.constant dense<0.000000e+00> : vector<8x128xf32>
    %327 = tpu.matmul %326, %8, %cst_77 {dimension_numbers = #tpu.dot_dimension_numbers<[1], [0], [0], [1], [0, 0, 1, 1], [], []>} : vector<8x64xbf16>, vector<64x128xbf16>, vector<8x128xf32> -> vector<8x128xf32>
    %328 = vector.broadcast %9 : vector<1x128xf32> to vector<8x128xf32>
    %329 = arith.addf %327, %328 : vector<8x128xf32>
    %cst_78 = arith.constant 5.000000e-01 : f32
    %330 = vector.broadcast %cst_78 : f32 to vector<8x128xf32>
    %331 = arith.mulf %330, %329 : vector<8x128xf32>
    %332 = math.tanh %331 : vector<8x128xf32>
    %cst_79 = arith.constant 5.000000e-01 : f32
    %333 = vector.broadcast %cst_79 : f32 to vector<8x128xf32>
    %334 = arith.mulf %333, %332 : vector<8x128xf32>
    %cst_80 = arith.constant 5.000000e-01 : f32
    %335 = vector.broadcast %cst_80 : f32 to vector<8x128xf32>
    %336 = arith.addf %334, %335 : vector<8x128xf32>
    %337 = math.tanh %329 : vector<8x128xf32>
    %338 = vector.extract_strided_slice %336 {offsets = [0, 32], sizes = [8, 32], strides = [1, 1]} : vector<8x128xf32> to vector<8x32xf32>
    %339 = arith.mulf %338, %295 : vector<8x32xf32>
    %340 = vector.extract_strided_slice %336 {offsets = [0, 0], sizes = [8, 32], strides = [1, 1]} : vector<8x128xf32> to vector<8x32xf32>
    %341 = vector.extract_strided_slice %337 {offsets = [0, 64], sizes = [8, 32], strides = [1, 1]} : vector<8x128xf32> to vector<8x32xf32>
    %342 = arith.mulf %340, %341 : vector<8x32xf32>
    %343 = arith.addf %339, %342 : vector<8x32xf32>
    %344 = vector.extract_strided_slice %336 {offsets = [0, 96], sizes = [8, 32], strides = [1, 1]} : vector<8x128xf32> to vector<8x32xf32>
    %345 = math.tanh %343 : vector<8x32xf32>
    %346 = arith.mulf %344, %345 : vector<8x32xf32>
    %c6_i32 = arith.constant 6 : i32
    %347 = vector.broadcast %c6_i32 : i32 to vector<8x1xi32>
    %348 = arith.cmpi eq, %10, %347 : vector<8x1xi32>
    %349 = vector.shape_cast %348 : vector<8x1xi1> to vector<8x1xi1>
    %350 = vector.broadcast %349 : vector<8x1xi1> to vector<8x32xi1>
    %351 = arith.select %350, %346, %303 : vector<8x32xi1>, vector<8x32xf32>
    %c56 = arith.constant 56 : index
    %c0_81 = arith.constant 0 : index
    %352 = vector.load %arg6[%c56, %c0_81] : memref<160x128xf32, #tpu.memory_space<vmem>>, vector<8x128xf32>
    %353 = arith.truncf %324 : vector<8x32xf32> to vector<8x32xbf16>
    %cst_82 = arith.constant dense<0.000000e+00> : vector<8x128xf32>
    %354 = tpu.matmul %353, %7, %cst_82 {dimension_numbers = #tpu.dot_dimension_numbers<[1], [0], [0], [1], [0, 0, 1, 1], [], []>} : vector<8x32xbf16>, vector<32x128xbf16>, vector<8x128xf32> -> vector<8x128xf32>
    %355 = arith.addf %352, %354 : vector<8x128xf32>
    %cst_83 = arith.constant 5.000000e-01 : f32
    %356 = vector.broadcast %cst_83 : f32 to vector<8x128xf32>
    %357 = arith.mulf %356, %355 : vector<8x128xf32>
    %358 = math.tanh %357 : vector<8x128xf32>
    %cst_84 = arith.constant 5.000000e-01 : f32
    %359 = vector.broadcast %cst_84 : f32 to vector<8x128xf32>
    %360 = arith.mulf %359, %358 : vector<8x128xf32>
    %cst_85 = arith.constant 5.000000e-01 : f32
    %361 = vector.broadcast %cst_85 : f32 to vector<8x128xf32>
    %362 = arith.addf %360, %361 : vector<8x128xf32>
    %363 = math.tanh %355 : vector<8x128xf32>
    %364 = vector.extract_strided_slice %362 {offsets = [0, 32], sizes = [8, 32], strides = [1, 1]} : vector<8x128xf32> to vector<8x32xf32>
    %365 = arith.mulf %364, %321 : vector<8x32xf32>
    %366 = vector.extract_strided_slice %362 {offsets = [0, 0], sizes = [8, 32], strides = [1, 1]} : vector<8x128xf32> to vector<8x32xf32>
    %367 = vector.extract_strided_slice %363 {offsets = [0, 64], sizes = [8, 32], strides = [1, 1]} : vector<8x128xf32> to vector<8x32xf32>
    %368 = arith.mulf %366, %367 : vector<8x32xf32>
    %369 = arith.addf %365, %368 : vector<8x32xf32>
    %370 = vector.extract_strided_slice %362 {offsets = [0, 96], sizes = [8, 32], strides = [1, 1]} : vector<8x128xf32> to vector<8x32xf32>
    %371 = math.tanh %369 : vector<8x32xf32>
    %372 = arith.mulf %370, %371 : vector<8x32xf32>
    %373 = tpu.concatenate %372, %346 in 1 : vector<8x32xf32>, vector<8x32xf32> -> vector<8x64xf32>
    %374 = arith.truncf %373 : vector<8x64xf32> to vector<8x64xbf16>
    %cst_86 = arith.constant dense<0.000000e+00> : vector<8x128xf32>
    %375 = tpu.matmul %374, %8, %cst_86 {dimension_numbers = #tpu.dot_dimension_numbers<[1], [0], [0], [1], [0, 0, 1, 1], [], []>} : vector<8x64xbf16>, vector<64x128xbf16>, vector<8x128xf32> -> vector<8x128xf32>
    %376 = vector.broadcast %9 : vector<1x128xf32> to vector<8x128xf32>
    %377 = arith.addf %375, %376 : vector<8x128xf32>
    %cst_87 = arith.constant 5.000000e-01 : f32
    %378 = vector.broadcast %cst_87 : f32 to vector<8x128xf32>
    %379 = arith.mulf %378, %377 : vector<8x128xf32>
    %380 = math.tanh %379 : vector<8x128xf32>
    %cst_88 = arith.constant 5.000000e-01 : f32
    %381 = vector.broadcast %cst_88 : f32 to vector<8x128xf32>
    %382 = arith.mulf %381, %380 : vector<8x128xf32>
    %cst_89 = arith.constant 5.000000e-01 : f32
    %383 = vector.broadcast %cst_89 : f32 to vector<8x128xf32>
    %384 = arith.addf %382, %383 : vector<8x128xf32>
    %385 = math.tanh %377 : vector<8x128xf32>
    %386 = vector.extract_strided_slice %384 {offsets = [0, 32], sizes = [8, 32], strides = [1, 1]} : vector<8x128xf32> to vector<8x32xf32>
    %387 = arith.mulf %386, %343 : vector<8x32xf32>
    %388 = vector.extract_strided_slice %384 {offsets = [0, 0], sizes = [8, 32], strides = [1, 1]} : vector<8x128xf32> to vector<8x32xf32>
    %389 = vector.extract_strided_slice %385 {offsets = [0, 64], sizes = [8, 32], strides = [1, 1]} : vector<8x128xf32> to vector<8x32xf32>
    %390 = arith.mulf %388, %389 : vector<8x32xf32>
    %391 = arith.addf %387, %390 : vector<8x32xf32>
    %392 = vector.extract_strided_slice %384 {offsets = [0, 96], sizes = [8, 32], strides = [1, 1]} : vector<8x128xf32> to vector<8x32xf32>
    %393 = math.tanh %391 : vector<8x32xf32>
    %394 = arith.mulf %392, %393 : vector<8x32xf32>
    %c7_i32 = arith.constant 7 : i32
    %395 = vector.broadcast %c7_i32 : i32 to vector<8x1xi32>
    %396 = arith.cmpi eq, %10, %395 : vector<8x1xi32>
    %397 = vector.shape_cast %396 : vector<8x1xi1> to vector<8x1xi1>
    %398 = vector.broadcast %397 : vector<8x1xi1> to vector<8x32xi1>
    %399 = arith.select %398, %394, %351 : vector<8x32xi1>, vector<8x32xf32>
    %c64 = arith.constant 64 : index
    %c0_90 = arith.constant 0 : index
    %400 = vector.load %arg6[%c64, %c0_90] : memref<160x128xf32, #tpu.memory_space<vmem>>, vector<8x128xf32>
    %401 = arith.truncf %372 : vector<8x32xf32> to vector<8x32xbf16>
    %cst_91 = arith.constant dense<0.000000e+00> : vector<8x128xf32>
    %402 = tpu.matmul %401, %7, %cst_91 {dimension_numbers = #tpu.dot_dimension_numbers<[1], [0], [0], [1], [0, 0, 1, 1], [], []>} : vector<8x32xbf16>, vector<32x128xbf16>, vector<8x128xf32> -> vector<8x128xf32>
    %403 = arith.addf %400, %402 : vector<8x128xf32>
    %cst_92 = arith.constant 5.000000e-01 : f32
    %404 = vector.broadcast %cst_92 : f32 to vector<8x128xf32>
    %405 = arith.mulf %404, %403 : vector<8x128xf32>
    %406 = math.tanh %405 : vector<8x128xf32>
    %cst_93 = arith.constant 5.000000e-01 : f32
    %407 = vector.broadcast %cst_93 : f32 to vector<8x128xf32>
    %408 = arith.mulf %407, %406 : vector<8x128xf32>
    %cst_94 = arith.constant 5.000000e-01 : f32
    %409 = vector.broadcast %cst_94 : f32 to vector<8x128xf32>
    %410 = arith.addf %408, %409 : vector<8x128xf32>
    %411 = math.tanh %403 : vector<8x128xf32>
    %412 = vector.extract_strided_slice %410 {offsets = [0, 32], sizes = [8, 32], strides = [1, 1]} : vector<8x128xf32> to vector<8x32xf32>
    %413 = arith.mulf %412, %369 : vector<8x32xf32>
    %414 = vector.extract_strided_slice %410 {offsets = [0, 0], sizes = [8, 32], strides = [1, 1]} : vector<8x128xf32> to vector<8x32xf32>
    %415 = vector.extract_strided_slice %411 {offsets = [0, 64], sizes = [8, 32], strides = [1, 1]} : vector<8x128xf32> to vector<8x32xf32>
    %416 = arith.mulf %414, %415 : vector<8x32xf32>
    %417 = arith.addf %413, %416 : vector<8x32xf32>
    %418 = vector.extract_strided_slice %410 {offsets = [0, 96], sizes = [8, 32], strides = [1, 1]} : vector<8x128xf32> to vector<8x32xf32>
    %419 = math.tanh %417 : vector<8x32xf32>
    %420 = arith.mulf %418, %419 : vector<8x32xf32>
    %421 = tpu.concatenate %420, %394 in 1 : vector<8x32xf32>, vector<8x32xf32> -> vector<8x64xf32>
    %422 = arith.truncf %421 : vector<8x64xf32> to vector<8x64xbf16>
    %cst_95 = arith.constant dense<0.000000e+00> : vector<8x128xf32>
    %423 = tpu.matmul %422, %8, %cst_95 {dimension_numbers = #tpu.dot_dimension_numbers<[1], [0], [0], [1], [0, 0, 1, 1], [], []>} : vector<8x64xbf16>, vector<64x128xbf16>, vector<8x128xf32> -> vector<8x128xf32>
    %424 = vector.broadcast %9 : vector<1x128xf32> to vector<8x128xf32>
    %425 = arith.addf %423, %424 : vector<8x128xf32>
    %cst_96 = arith.constant 5.000000e-01 : f32
    %426 = vector.broadcast %cst_96 : f32 to vector<8x128xf32>
    %427 = arith.mulf %426, %425 : vector<8x128xf32>
    %428 = math.tanh %427 : vector<8x128xf32>
    %cst_97 = arith.constant 5.000000e-01 : f32
    %429 = vector.broadcast %cst_97 : f32 to vector<8x128xf32>
    %430 = arith.mulf %429, %428 : vector<8x128xf32>
    %cst_98 = arith.constant 5.000000e-01 : f32
    %431 = vector.broadcast %cst_98 : f32 to vector<8x128xf32>
    %432 = arith.addf %430, %431 : vector<8x128xf32>
    %433 = math.tanh %425 : vector<8x128xf32>
    %434 = vector.extract_strided_slice %432 {offsets = [0, 32], sizes = [8, 32], strides = [1, 1]} : vector<8x128xf32> to vector<8x32xf32>
    %435 = arith.mulf %434, %391 : vector<8x32xf32>
    %436 = vector.extract_strided_slice %432 {offsets = [0, 0], sizes = [8, 32], strides = [1, 1]} : vector<8x128xf32> to vector<8x32xf32>
    %437 = vector.extract_strided_slice %433 {offsets = [0, 64], sizes = [8, 32], strides = [1, 1]} : vector<8x128xf32> to vector<8x32xf32>
    %438 = arith.mulf %436, %437 : vector<8x32xf32>
    %439 = arith.addf %435, %438 : vector<8x32xf32>
    %440 = vector.extract_strided_slice %432 {offsets = [0, 96], sizes = [8, 32], strides = [1, 1]} : vector<8x128xf32> to vector<8x32xf32>
    %441 = math.tanh %439 : vector<8x32xf32>
    %442 = arith.mulf %440, %441 : vector<8x32xf32>
    %c8_i32 = arith.constant 8 : i32
    %443 = vector.broadcast %c8_i32 : i32 to vector<8x1xi32>
    %444 = arith.cmpi eq, %10, %443 : vector<8x1xi32>
    %445 = vector.shape_cast %444 : vector<8x1xi1> to vector<8x1xi1>
    %446 = vector.broadcast %445 : vector<8x1xi1> to vector<8x32xi1>
    %447 = arith.select %446, %442, %399 : vector<8x32xi1>, vector<8x32xf32>
    %c72 = arith.constant 72 : index
    %c0_99 = arith.constant 0 : index
    %448 = vector.load %arg6[%c72, %c0_99] : memref<160x128xf32, #tpu.memory_space<vmem>>, vector<8x128xf32>
    %449 = arith.truncf %420 : vector<8x32xf32> to vector<8x32xbf16>
    %cst_100 = arith.constant dense<0.000000e+00> : vector<8x128xf32>
    %450 = tpu.matmul %449, %7, %cst_100 {dimension_numbers = #tpu.dot_dimension_numbers<[1], [0], [0], [1], [0, 0, 1, 1], [], []>} : vector<8x32xbf16>, vector<32x128xbf16>, vector<8x128xf32> -> vector<8x128xf32>
    %451 = arith.addf %448, %450 : vector<8x128xf32>
    %cst_101 = arith.constant 5.000000e-01 : f32
    %452 = vector.broadcast %cst_101 : f32 to vector<8x128xf32>
    %453 = arith.mulf %452, %451 : vector<8x128xf32>
    %454 = math.tanh %453 : vector<8x128xf32>
    %cst_102 = arith.constant 5.000000e-01 : f32
    %455 = vector.broadcast %cst_102 : f32 to vector<8x128xf32>
    %456 = arith.mulf %455, %454 : vector<8x128xf32>
    %cst_103 = arith.constant 5.000000e-01 : f32
    %457 = vector.broadcast %cst_103 : f32 to vector<8x128xf32>
    %458 = arith.addf %456, %457 : vector<8x128xf32>
    %459 = math.tanh %451 : vector<8x128xf32>
    %460 = vector.extract_strided_slice %458 {offsets = [0, 32], sizes = [8, 32], strides = [1, 1]} : vector<8x128xf32> to vector<8x32xf32>
    %461 = arith.mulf %460, %417 : vector<8x32xf32>
    %462 = vector.extract_strided_slice %458 {offsets = [0, 0], sizes = [8, 32], strides = [1, 1]} : vector<8x128xf32> to vector<8x32xf32>
    %463 = vector.extract_strided_slice %459 {offsets = [0, 64], sizes = [8, 32], strides = [1, 1]} : vector<8x128xf32> to vector<8x32xf32>
    %464 = arith.mulf %462, %463 : vector<8x32xf32>
    %465 = arith.addf %461, %464 : vector<8x32xf32>
    %466 = vector.extract_strided_slice %458 {offsets = [0, 96], sizes = [8, 32], strides = [1, 1]} : vector<8x128xf32> to vector<8x32xf32>
    %467 = math.tanh %465 : vector<8x32xf32>
    %468 = arith.mulf %466, %467 : vector<8x32xf32>
    %469 = tpu.concatenate %468, %442 in 1 : vector<8x32xf32>, vector<8x32xf32> -> vector<8x64xf32>
    %470 = arith.truncf %469 : vector<8x64xf32> to vector<8x64xbf16>
    %cst_104 = arith.constant dense<0.000000e+00> : vector<8x128xf32>
    %471 = tpu.matmul %470, %8, %cst_104 {dimension_numbers = #tpu.dot_dimension_numbers<[1], [0], [0], [1], [0, 0, 1, 1], [], []>} : vector<8x64xbf16>, vector<64x128xbf16>, vector<8x128xf32> -> vector<8x128xf32>
    %472 = vector.broadcast %9 : vector<1x128xf32> to vector<8x128xf32>
    %473 = arith.addf %471, %472 : vector<8x128xf32>
    %cst_105 = arith.constant 5.000000e-01 : f32
    %474 = vector.broadcast %cst_105 : f32 to vector<8x128xf32>
    %475 = arith.mulf %474, %473 : vector<8x128xf32>
    %476 = math.tanh %475 : vector<8x128xf32>
    %cst_106 = arith.constant 5.000000e-01 : f32
    %477 = vector.broadcast %cst_106 : f32 to vector<8x128xf32>
    %478 = arith.mulf %477, %476 : vector<8x128xf32>
    %cst_107 = arith.constant 5.000000e-01 : f32
    %479 = vector.broadcast %cst_107 : f32 to vector<8x128xf32>
    %480 = arith.addf %478, %479 : vector<8x128xf32>
    %481 = math.tanh %473 : vector<8x128xf32>
    %482 = vector.extract_strided_slice %480 {offsets = [0, 32], sizes = [8, 32], strides = [1, 1]} : vector<8x128xf32> to vector<8x32xf32>
    %483 = arith.mulf %482, %439 : vector<8x32xf32>
    %484 = vector.extract_strided_slice %480 {offsets = [0, 0], sizes = [8, 32], strides = [1, 1]} : vector<8x128xf32> to vector<8x32xf32>
    %485 = vector.extract_strided_slice %481 {offsets = [0, 64], sizes = [8, 32], strides = [1, 1]} : vector<8x128xf32> to vector<8x32xf32>
    %486 = arith.mulf %484, %485 : vector<8x32xf32>
    %487 = arith.addf %483, %486 : vector<8x32xf32>
    %488 = vector.extract_strided_slice %480 {offsets = [0, 96], sizes = [8, 32], strides = [1, 1]} : vector<8x128xf32> to vector<8x32xf32>
    %489 = math.tanh %487 : vector<8x32xf32>
    %490 = arith.mulf %488, %489 : vector<8x32xf32>
    %c9_i32 = arith.constant 9 : i32
    %491 = vector.broadcast %c9_i32 : i32 to vector<8x1xi32>
    %492 = arith.cmpi eq, %10, %491 : vector<8x1xi32>
    %493 = vector.shape_cast %492 : vector<8x1xi1> to vector<8x1xi1>
    %494 = vector.broadcast %493 : vector<8x1xi1> to vector<8x32xi1>
    %495 = arith.select %494, %490, %447 : vector<8x32xi1>, vector<8x32xf32>
    %c80 = arith.constant 80 : index
    %c0_108 = arith.constant 0 : index
    %496 = vector.load %arg6[%c80, %c0_108] : memref<160x128xf32, #tpu.memory_space<vmem>>, vector<8x128xf32>
    %497 = arith.truncf %468 : vector<8x32xf32> to vector<8x32xbf16>
    %cst_109 = arith.constant dense<0.000000e+00> : vector<8x128xf32>
    %498 = tpu.matmul %497, %7, %cst_109 {dimension_numbers = #tpu.dot_dimension_numbers<[1], [0], [0], [1], [0, 0, 1, 1], [], []>} : vector<8x32xbf16>, vector<32x128xbf16>, vector<8x128xf32> -> vector<8x128xf32>
    %499 = arith.addf %496, %498 : vector<8x128xf32>
    %cst_110 = arith.constant 5.000000e-01 : f32
    %500 = vector.broadcast %cst_110 : f32 to vector<8x128xf32>
    %501 = arith.mulf %500, %499 : vector<8x128xf32>
    %502 = math.tanh %501 : vector<8x128xf32>
    %cst_111 = arith.constant 5.000000e-01 : f32
    %503 = vector.broadcast %cst_111 : f32 to vector<8x128xf32>
    %504 = arith.mulf %503, %502 : vector<8x128xf32>
    %cst_112 = arith.constant 5.000000e-01 : f32
    %505 = vector.broadcast %cst_112 : f32 to vector<8x128xf32>
    %506 = arith.addf %504, %505 : vector<8x128xf32>
    %507 = math.tanh %499 : vector<8x128xf32>
    %508 = vector.extract_strided_slice %506 {offsets = [0, 32], sizes = [8, 32], strides = [1, 1]} : vector<8x128xf32> to vector<8x32xf32>
    %509 = arith.mulf %508, %465 : vector<8x32xf32>
    %510 = vector.extract_strided_slice %506 {offsets = [0, 0], sizes = [8, 32], strides = [1, 1]} : vector<8x128xf32> to vector<8x32xf32>
    %511 = vector.extract_strided_slice %507 {offsets = [0, 64], sizes = [8, 32], strides = [1, 1]} : vector<8x128xf32> to vector<8x32xf32>
    %512 = arith.mulf %510, %511 : vector<8x32xf32>
    %513 = arith.addf %509, %512 : vector<8x32xf32>
    %514 = vector.extract_strided_slice %506 {offsets = [0, 96], sizes = [8, 32], strides = [1, 1]} : vector<8x128xf32> to vector<8x32xf32>
    %515 = math.tanh %513 : vector<8x32xf32>
    %516 = arith.mulf %514, %515 : vector<8x32xf32>
    %517 = tpu.concatenate %516, %490 in 1 : vector<8x32xf32>, vector<8x32xf32> -> vector<8x64xf32>
    %518 = arith.truncf %517 : vector<8x64xf32> to vector<8x64xbf16>
    %cst_113 = arith.constant dense<0.000000e+00> : vector<8x128xf32>
    %519 = tpu.matmul %518, %8, %cst_113 {dimension_numbers = #tpu.dot_dimension_numbers<[1], [0], [0], [1], [0, 0, 1, 1], [], []>} : vector<8x64xbf16>, vector<64x128xbf16>, vector<8x128xf32> -> vector<8x128xf32>
    %520 = vector.broadcast %9 : vector<1x128xf32> to vector<8x128xf32>
    %521 = arith.addf %519, %520 : vector<8x128xf32>
    %cst_114 = arith.constant 5.000000e-01 : f32
    %522 = vector.broadcast %cst_114 : f32 to vector<8x128xf32>
    %523 = arith.mulf %522, %521 : vector<8x128xf32>
    %524 = math.tanh %523 : vector<8x128xf32>
    %cst_115 = arith.constant 5.000000e-01 : f32
    %525 = vector.broadcast %cst_115 : f32 to vector<8x128xf32>
    %526 = arith.mulf %525, %524 : vector<8x128xf32>
    %cst_116 = arith.constant 5.000000e-01 : f32
    %527 = vector.broadcast %cst_116 : f32 to vector<8x128xf32>
    %528 = arith.addf %526, %527 : vector<8x128xf32>
    %529 = math.tanh %521 : vector<8x128xf32>
    %530 = vector.extract_strided_slice %528 {offsets = [0, 32], sizes = [8, 32], strides = [1, 1]} : vector<8x128xf32> to vector<8x32xf32>
    %531 = arith.mulf %530, %487 : vector<8x32xf32>
    %532 = vector.extract_strided_slice %528 {offsets = [0, 0], sizes = [8, 32], strides = [1, 1]} : vector<8x128xf32> to vector<8x32xf32>
    %533 = vector.extract_strided_slice %529 {offsets = [0, 64], sizes = [8, 32], strides = [1, 1]} : vector<8x128xf32> to vector<8x32xf32>
    %534 = arith.mulf %532, %533 : vector<8x32xf32>
    %535 = arith.addf %531, %534 : vector<8x32xf32>
    %536 = vector.extract_strided_slice %528 {offsets = [0, 96], sizes = [8, 32], strides = [1, 1]} : vector<8x128xf32> to vector<8x32xf32>
    %537 = math.tanh %535 : vector<8x32xf32>
    %538 = arith.mulf %536, %537 : vector<8x32xf32>
    %c10_i32 = arith.constant 10 : i32
    %539 = vector.broadcast %c10_i32 : i32 to vector<8x1xi32>
    %540 = arith.cmpi eq, %10, %539 : vector<8x1xi32>
    %541 = vector.shape_cast %540 : vector<8x1xi1> to vector<8x1xi1>
    %542 = vector.broadcast %541 : vector<8x1xi1> to vector<8x32xi1>
    %543 = arith.select %542, %538, %495 : vector<8x32xi1>, vector<8x32xf32>
    %c88 = arith.constant 88 : index
    %c0_117 = arith.constant 0 : index
    %544 = vector.load %arg6[%c88, %c0_117] : memref<160x128xf32, #tpu.memory_space<vmem>>, vector<8x128xf32>
    %545 = arith.truncf %516 : vector<8x32xf32> to vector<8x32xbf16>
    %cst_118 = arith.constant dense<0.000000e+00> : vector<8x128xf32>
    %546 = tpu.matmul %545, %7, %cst_118 {dimension_numbers = #tpu.dot_dimension_numbers<[1], [0], [0], [1], [0, 0, 1, 1], [], []>} : vector<8x32xbf16>, vector<32x128xbf16>, vector<8x128xf32> -> vector<8x128xf32>
    %547 = arith.addf %544, %546 : vector<8x128xf32>
    %cst_119 = arith.constant 5.000000e-01 : f32
    %548 = vector.broadcast %cst_119 : f32 to vector<8x128xf32>
    %549 = arith.mulf %548, %547 : vector<8x128xf32>
    %550 = math.tanh %549 : vector<8x128xf32>
    %cst_120 = arith.constant 5.000000e-01 : f32
    %551 = vector.broadcast %cst_120 : f32 to vector<8x128xf32>
    %552 = arith.mulf %551, %550 : vector<8x128xf32>
    %cst_121 = arith.constant 5.000000e-01 : f32
    %553 = vector.broadcast %cst_121 : f32 to vector<8x128xf32>
    %554 = arith.addf %552, %553 : vector<8x128xf32>
    %555 = math.tanh %547 : vector<8x128xf32>
    %556 = vector.extract_strided_slice %554 {offsets = [0, 32], sizes = [8, 32], strides = [1, 1]} : vector<8x128xf32> to vector<8x32xf32>
    %557 = arith.mulf %556, %513 : vector<8x32xf32>
    %558 = vector.extract_strided_slice %554 {offsets = [0, 0], sizes = [8, 32], strides = [1, 1]} : vector<8x128xf32> to vector<8x32xf32>
    %559 = vector.extract_strided_slice %555 {offsets = [0, 64], sizes = [8, 32], strides = [1, 1]} : vector<8x128xf32> to vector<8x32xf32>
    %560 = arith.mulf %558, %559 : vector<8x32xf32>
    %561 = arith.addf %557, %560 : vector<8x32xf32>
    %562 = vector.extract_strided_slice %554 {offsets = [0, 96], sizes = [8, 32], strides = [1, 1]} : vector<8x128xf32> to vector<8x32xf32>
    %563 = math.tanh %561 : vector<8x32xf32>
    %564 = arith.mulf %562, %563 : vector<8x32xf32>
    %565 = tpu.concatenate %564, %538 in 1 : vector<8x32xf32>, vector<8x32xf32> -> vector<8x64xf32>
    %566 = arith.truncf %565 : vector<8x64xf32> to vector<8x64xbf16>
    %cst_122 = arith.constant dense<0.000000e+00> : vector<8x128xf32>
    %567 = tpu.matmul %566, %8, %cst_122 {dimension_numbers = #tpu.dot_dimension_numbers<[1], [0], [0], [1], [0, 0, 1, 1], [], []>} : vector<8x64xbf16>, vector<64x128xbf16>, vector<8x128xf32> -> vector<8x128xf32>
    %568 = vector.broadcast %9 : vector<1x128xf32> to vector<8x128xf32>
    %569 = arith.addf %567, %568 : vector<8x128xf32>
    %cst_123 = arith.constant 5.000000e-01 : f32
    %570 = vector.broadcast %cst_123 : f32 to vector<8x128xf32>
    %571 = arith.mulf %570, %569 : vector<8x128xf32>
    %572 = math.tanh %571 : vector<8x128xf32>
    %cst_124 = arith.constant 5.000000e-01 : f32
    %573 = vector.broadcast %cst_124 : f32 to vector<8x128xf32>
    %574 = arith.mulf %573, %572 : vector<8x128xf32>
    %cst_125 = arith.constant 5.000000e-01 : f32
    %575 = vector.broadcast %cst_125 : f32 to vector<8x128xf32>
    %576 = arith.addf %574, %575 : vector<8x128xf32>
    %577 = math.tanh %569 : vector<8x128xf32>
    %578 = vector.extract_strided_slice %576 {offsets = [0, 32], sizes = [8, 32], strides = [1, 1]} : vector<8x128xf32> to vector<8x32xf32>
    %579 = arith.mulf %578, %535 : vector<8x32xf32>
    %580 = vector.extract_strided_slice %576 {offsets = [0, 0], sizes = [8, 32], strides = [1, 1]} : vector<8x128xf32> to vector<8x32xf32>
    %581 = vector.extract_strided_slice %577 {offsets = [0, 64], sizes = [8, 32], strides = [1, 1]} : vector<8x128xf32> to vector<8x32xf32>
    %582 = arith.mulf %580, %581 : vector<8x32xf32>
    %583 = arith.addf %579, %582 : vector<8x32xf32>
    %584 = vector.extract_strided_slice %576 {offsets = [0, 96], sizes = [8, 32], strides = [1, 1]} : vector<8x128xf32> to vector<8x32xf32>
    %585 = math.tanh %583 : vector<8x32xf32>
    %586 = arith.mulf %584, %585 : vector<8x32xf32>
    %c11_i32 = arith.constant 11 : i32
    %587 = vector.broadcast %c11_i32 : i32 to vector<8x1xi32>
    %588 = arith.cmpi eq, %10, %587 : vector<8x1xi32>
    %589 = vector.shape_cast %588 : vector<8x1xi1> to vector<8x1xi1>
    %590 = vector.broadcast %589 : vector<8x1xi1> to vector<8x32xi1>
    %591 = arith.select %590, %586, %543 : vector<8x32xi1>, vector<8x32xf32>
    %c96 = arith.constant 96 : index
    %c0_126 = arith.constant 0 : index
    %592 = vector.load %arg6[%c96, %c0_126] : memref<160x128xf32, #tpu.memory_space<vmem>>, vector<8x128xf32>
    %593 = arith.truncf %564 : vector<8x32xf32> to vector<8x32xbf16>
    %cst_127 = arith.constant dense<0.000000e+00> : vector<8x128xf32>
    %594 = tpu.matmul %593, %7, %cst_127 {dimension_numbers = #tpu.dot_dimension_numbers<[1], [0], [0], [1], [0, 0, 1, 1], [], []>} : vector<8x32xbf16>, vector<32x128xbf16>, vector<8x128xf32> -> vector<8x128xf32>
    %595 = arith.addf %592, %594 : vector<8x128xf32>
    %cst_128 = arith.constant 5.000000e-01 : f32
    %596 = vector.broadcast %cst_128 : f32 to vector<8x128xf32>
    %597 = arith.mulf %596, %595 : vector<8x128xf32>
    %598 = math.tanh %597 : vector<8x128xf32>
    %cst_129 = arith.constant 5.000000e-01 : f32
    %599 = vector.broadcast %cst_129 : f32 to vector<8x128xf32>
    %600 = arith.mulf %599, %598 : vector<8x128xf32>
    %cst_130 = arith.constant 5.000000e-01 : f32
    %601 = vector.broadcast %cst_130 : f32 to vector<8x128xf32>
    %602 = arith.addf %600, %601 : vector<8x128xf32>
    %603 = math.tanh %595 : vector<8x128xf32>
    %604 = vector.extract_strided_slice %602 {offsets = [0, 32], sizes = [8, 32], strides = [1, 1]} : vector<8x128xf32> to vector<8x32xf32>
    %605 = arith.mulf %604, %561 : vector<8x32xf32>
    %606 = vector.extract_strided_slice %602 {offsets = [0, 0], sizes = [8, 32], strides = [1, 1]} : vector<8x128xf32> to vector<8x32xf32>
    %607 = vector.extract_strided_slice %603 {offsets = [0, 64], sizes = [8, 32], strides = [1, 1]} : vector<8x128xf32> to vector<8x32xf32>
    %608 = arith.mulf %606, %607 : vector<8x32xf32>
    %609 = arith.addf %605, %608 : vector<8x32xf32>
    %610 = vector.extract_strided_slice %602 {offsets = [0, 96], sizes = [8, 32], strides = [1, 1]} : vector<8x128xf32> to vector<8x32xf32>
    %611 = math.tanh %609 : vector<8x32xf32>
    %612 = arith.mulf %610, %611 : vector<8x32xf32>
    %613 = tpu.concatenate %612, %586 in 1 : vector<8x32xf32>, vector<8x32xf32> -> vector<8x64xf32>
    %614 = arith.truncf %613 : vector<8x64xf32> to vector<8x64xbf16>
    %cst_131 = arith.constant dense<0.000000e+00> : vector<8x128xf32>
    %615 = tpu.matmul %614, %8, %cst_131 {dimension_numbers = #tpu.dot_dimension_numbers<[1], [0], [0], [1], [0, 0, 1, 1], [], []>} : vector<8x64xbf16>, vector<64x128xbf16>, vector<8x128xf32> -> vector<8x128xf32>
    %616 = vector.broadcast %9 : vector<1x128xf32> to vector<8x128xf32>
    %617 = arith.addf %615, %616 : vector<8x128xf32>
    %cst_132 = arith.constant 5.000000e-01 : f32
    %618 = vector.broadcast %cst_132 : f32 to vector<8x128xf32>
    %619 = arith.mulf %618, %617 : vector<8x128xf32>
    %620 = math.tanh %619 : vector<8x128xf32>
    %cst_133 = arith.constant 5.000000e-01 : f32
    %621 = vector.broadcast %cst_133 : f32 to vector<8x128xf32>
    %622 = arith.mulf %621, %620 : vector<8x128xf32>
    %cst_134 = arith.constant 5.000000e-01 : f32
    %623 = vector.broadcast %cst_134 : f32 to vector<8x128xf32>
    %624 = arith.addf %622, %623 : vector<8x128xf32>
    %625 = math.tanh %617 : vector<8x128xf32>
    %626 = vector.extract_strided_slice %624 {offsets = [0, 32], sizes = [8, 32], strides = [1, 1]} : vector<8x128xf32> to vector<8x32xf32>
    %627 = arith.mulf %626, %583 : vector<8x32xf32>
    %628 = vector.extract_strided_slice %624 {offsets = [0, 0], sizes = [8, 32], strides = [1, 1]} : vector<8x128xf32> to vector<8x32xf32>
    %629 = vector.extract_strided_slice %625 {offsets = [0, 64], sizes = [8, 32], strides = [1, 1]} : vector<8x128xf32> to vector<8x32xf32>
    %630 = arith.mulf %628, %629 : vector<8x32xf32>
    %631 = arith.addf %627, %630 : vector<8x32xf32>
    %632 = vector.extract_strided_slice %624 {offsets = [0, 96], sizes = [8, 32], strides = [1, 1]} : vector<8x128xf32> to vector<8x32xf32>
    %633 = math.tanh %631 : vector<8x32xf32>
    %634 = arith.mulf %632, %633 : vector<8x32xf32>
    %c12_i32 = arith.constant 12 : i32
    %635 = vector.broadcast %c12_i32 : i32 to vector<8x1xi32>
    %636 = arith.cmpi eq, %10, %635 : vector<8x1xi32>
    %637 = vector.shape_cast %636 : vector<8x1xi1> to vector<8x1xi1>
    %638 = vector.broadcast %637 : vector<8x1xi1> to vector<8x32xi1>
    %639 = arith.select %638, %634, %591 : vector<8x32xi1>, vector<8x32xf32>
    %c104 = arith.constant 104 : index
    %c0_135 = arith.constant 0 : index
    %640 = vector.load %arg6[%c104, %c0_135] : memref<160x128xf32, #tpu.memory_space<vmem>>, vector<8x128xf32>
    %641 = arith.truncf %612 : vector<8x32xf32> to vector<8x32xbf16>
    %cst_136 = arith.constant dense<0.000000e+00> : vector<8x128xf32>
    %642 = tpu.matmul %641, %7, %cst_136 {dimension_numbers = #tpu.dot_dimension_numbers<[1], [0], [0], [1], [0, 0, 1, 1], [], []>} : vector<8x32xbf16>, vector<32x128xbf16>, vector<8x128xf32> -> vector<8x128xf32>
    %643 = arith.addf %640, %642 : vector<8x128xf32>
    %cst_137 = arith.constant 5.000000e-01 : f32
    %644 = vector.broadcast %cst_137 : f32 to vector<8x128xf32>
    %645 = arith.mulf %644, %643 : vector<8x128xf32>
    %646 = math.tanh %645 : vector<8x128xf32>
    %cst_138 = arith.constant 5.000000e-01 : f32
    %647 = vector.broadcast %cst_138 : f32 to vector<8x128xf32>
    %648 = arith.mulf %647, %646 : vector<8x128xf32>
    %cst_139 = arith.constant 5.000000e-01 : f32
    %649 = vector.broadcast %cst_139 : f32 to vector<8x128xf32>
    %650 = arith.addf %648, %649 : vector<8x128xf32>
    %651 = math.tanh %643 : vector<8x128xf32>
    %652 = vector.extract_strided_slice %650 {offsets = [0, 32], sizes = [8, 32], strides = [1, 1]} : vector<8x128xf32> to vector<8x32xf32>
    %653 = arith.mulf %652, %609 : vector<8x32xf32>
    %654 = vector.extract_strided_slice %650 {offsets = [0, 0], sizes = [8, 32], strides = [1, 1]} : vector<8x128xf32> to vector<8x32xf32>
    %655 = vector.extract_strided_slice %651 {offsets = [0, 64], sizes = [8, 32], strides = [1, 1]} : vector<8x128xf32> to vector<8x32xf32>
    %656 = arith.mulf %654, %655 : vector<8x32xf32>
    %657 = arith.addf %653, %656 : vector<8x32xf32>
    %658 = vector.extract_strided_slice %650 {offsets = [0, 96], sizes = [8, 32], strides = [1, 1]} : vector<8x128xf32> to vector<8x32xf32>
    %659 = math.tanh %657 : vector<8x32xf32>
    %660 = arith.mulf %658, %659 : vector<8x32xf32>
    %661 = tpu.concatenate %660, %634 in 1 : vector<8x32xf32>, vector<8x32xf32> -> vector<8x64xf32>
    %662 = arith.truncf %661 : vector<8x64xf32> to vector<8x64xbf16>
    %cst_140 = arith.constant dense<0.000000e+00> : vector<8x128xf32>
    %663 = tpu.matmul %662, %8, %cst_140 {dimension_numbers = #tpu.dot_dimension_numbers<[1], [0], [0], [1], [0, 0, 1, 1], [], []>} : vector<8x64xbf16>, vector<64x128xbf16>, vector<8x128xf32> -> vector<8x128xf32>
    %664 = vector.broadcast %9 : vector<1x128xf32> to vector<8x128xf32>
    %665 = arith.addf %663, %664 : vector<8x128xf32>
    %cst_141 = arith.constant 5.000000e-01 : f32
    %666 = vector.broadcast %cst_141 : f32 to vector<8x128xf32>
    %667 = arith.mulf %666, %665 : vector<8x128xf32>
    %668 = math.tanh %667 : vector<8x128xf32>
    %cst_142 = arith.constant 5.000000e-01 : f32
    %669 = vector.broadcast %cst_142 : f32 to vector<8x128xf32>
    %670 = arith.mulf %669, %668 : vector<8x128xf32>
    %cst_143 = arith.constant 5.000000e-01 : f32
    %671 = vector.broadcast %cst_143 : f32 to vector<8x128xf32>
    %672 = arith.addf %670, %671 : vector<8x128xf32>
    %673 = math.tanh %665 : vector<8x128xf32>
    %674 = vector.extract_strided_slice %672 {offsets = [0, 32], sizes = [8, 32], strides = [1, 1]} : vector<8x128xf32> to vector<8x32xf32>
    %675 = arith.mulf %674, %631 : vector<8x32xf32>
    %676 = vector.extract_strided_slice %672 {offsets = [0, 0], sizes = [8, 32], strides = [1, 1]} : vector<8x128xf32> to vector<8x32xf32>
    %677 = vector.extract_strided_slice %673 {offsets = [0, 64], sizes = [8, 32], strides = [1, 1]} : vector<8x128xf32> to vector<8x32xf32>
    %678 = arith.mulf %676, %677 : vector<8x32xf32>
    %679 = arith.addf %675, %678 : vector<8x32xf32>
    %680 = vector.extract_strided_slice %672 {offsets = [0, 96], sizes = [8, 32], strides = [1, 1]} : vector<8x128xf32> to vector<8x32xf32>
    %681 = math.tanh %679 : vector<8x32xf32>
    %682 = arith.mulf %680, %681 : vector<8x32xf32>
    %c13_i32 = arith.constant 13 : i32
    %683 = vector.broadcast %c13_i32 : i32 to vector<8x1xi32>
    %684 = arith.cmpi eq, %10, %683 : vector<8x1xi32>
    %685 = vector.shape_cast %684 : vector<8x1xi1> to vector<8x1xi1>
    %686 = vector.broadcast %685 : vector<8x1xi1> to vector<8x32xi1>
    %687 = arith.select %686, %682, %639 : vector<8x32xi1>, vector<8x32xf32>
    %c112 = arith.constant 112 : index
    %c0_144 = arith.constant 0 : index
    %688 = vector.load %arg6[%c112, %c0_144] : memref<160x128xf32, #tpu.memory_space<vmem>>, vector<8x128xf32>
    %689 = arith.truncf %660 : vector<8x32xf32> to vector<8x32xbf16>
    %cst_145 = arith.constant dense<0.000000e+00> : vector<8x128xf32>
    %690 = tpu.matmul %689, %7, %cst_145 {dimension_numbers = #tpu.dot_dimension_numbers<[1], [0], [0], [1], [0, 0, 1, 1], [], []>} : vector<8x32xbf16>, vector<32x128xbf16>, vector<8x128xf32> -> vector<8x128xf32>
    %691 = arith.addf %688, %690 : vector<8x128xf32>
    %cst_146 = arith.constant 5.000000e-01 : f32
    %692 = vector.broadcast %cst_146 : f32 to vector<8x128xf32>
    %693 = arith.mulf %692, %691 : vector<8x128xf32>
    %694 = math.tanh %693 : vector<8x128xf32>
    %cst_147 = arith.constant 5.000000e-01 : f32
    %695 = vector.broadcast %cst_147 : f32 to vector<8x128xf32>
    %696 = arith.mulf %695, %694 : vector<8x128xf32>
    %cst_148 = arith.constant 5.000000e-01 : f32
    %697 = vector.broadcast %cst_148 : f32 to vector<8x128xf32>
    %698 = arith.addf %696, %697 : vector<8x128xf32>
    %699 = math.tanh %691 : vector<8x128xf32>
    %700 = vector.extract_strided_slice %698 {offsets = [0, 32], sizes = [8, 32], strides = [1, 1]} : vector<8x128xf32> to vector<8x32xf32>
    %701 = arith.mulf %700, %657 : vector<8x32xf32>
    %702 = vector.extract_strided_slice %698 {offsets = [0, 0], sizes = [8, 32], strides = [1, 1]} : vector<8x128xf32> to vector<8x32xf32>
    %703 = vector.extract_strided_slice %699 {offsets = [0, 64], sizes = [8, 32], strides = [1, 1]} : vector<8x128xf32> to vector<8x32xf32>
    %704 = arith.mulf %702, %703 : vector<8x32xf32>
    %705 = arith.addf %701, %704 : vector<8x32xf32>
    %706 = vector.extract_strided_slice %698 {offsets = [0, 96], sizes = [8, 32], strides = [1, 1]} : vector<8x128xf32> to vector<8x32xf32>
    %707 = math.tanh %705 : vector<8x32xf32>
    %708 = arith.mulf %706, %707 : vector<8x32xf32>
    %709 = tpu.concatenate %708, %682 in 1 : vector<8x32xf32>, vector<8x32xf32> -> vector<8x64xf32>
    %710 = arith.truncf %709 : vector<8x64xf32> to vector<8x64xbf16>
    %cst_149 = arith.constant dense<0.000000e+00> : vector<8x128xf32>
    %711 = tpu.matmul %710, %8, %cst_149 {dimension_numbers = #tpu.dot_dimension_numbers<[1], [0], [0], [1], [0, 0, 1, 1], [], []>} : vector<8x64xbf16>, vector<64x128xbf16>, vector<8x128xf32> -> vector<8x128xf32>
    %712 = vector.broadcast %9 : vector<1x128xf32> to vector<8x128xf32>
    %713 = arith.addf %711, %712 : vector<8x128xf32>
    %cst_150 = arith.constant 5.000000e-01 : f32
    %714 = vector.broadcast %cst_150 : f32 to vector<8x128xf32>
    %715 = arith.mulf %714, %713 : vector<8x128xf32>
    %716 = math.tanh %715 : vector<8x128xf32>
    %cst_151 = arith.constant 5.000000e-01 : f32
    %717 = vector.broadcast %cst_151 : f32 to vector<8x128xf32>
    %718 = arith.mulf %717, %716 : vector<8x128xf32>
    %cst_152 = arith.constant 5.000000e-01 : f32
    %719 = vector.broadcast %cst_152 : f32 to vector<8x128xf32>
    %720 = arith.addf %718, %719 : vector<8x128xf32>
    %721 = math.tanh %713 : vector<8x128xf32>
    %722 = vector.extract_strided_slice %720 {offsets = [0, 32], sizes = [8, 32], strides = [1, 1]} : vector<8x128xf32> to vector<8x32xf32>
    %723 = arith.mulf %722, %679 : vector<8x32xf32>
    %724 = vector.extract_strided_slice %720 {offsets = [0, 0], sizes = [8, 32], strides = [1, 1]} : vector<8x128xf32> to vector<8x32xf32>
    %725 = vector.extract_strided_slice %721 {offsets = [0, 64], sizes = [8, 32], strides = [1, 1]} : vector<8x128xf32> to vector<8x32xf32>
    %726 = arith.mulf %724, %725 : vector<8x32xf32>
    %727 = arith.addf %723, %726 : vector<8x32xf32>
    %728 = vector.extract_strided_slice %720 {offsets = [0, 96], sizes = [8, 32], strides = [1, 1]} : vector<8x128xf32> to vector<8x32xf32>
    %729 = math.tanh %727 : vector<8x32xf32>
    %730 = arith.mulf %728, %729 : vector<8x32xf32>
    %c14_i32 = arith.constant 14 : i32
    %731 = vector.broadcast %c14_i32 : i32 to vector<8x1xi32>
    %732 = arith.cmpi eq, %10, %731 : vector<8x1xi32>
    %733 = vector.shape_cast %732 : vector<8x1xi1> to vector<8x1xi1>
    %734 = vector.broadcast %733 : vector<8x1xi1> to vector<8x32xi1>
    %735 = arith.select %734, %730, %687 : vector<8x32xi1>, vector<8x32xf32>
    %c120 = arith.constant 120 : index
    %c0_153 = arith.constant 0 : index
    %736 = vector.load %arg6[%c120, %c0_153] : memref<160x128xf32, #tpu.memory_space<vmem>>, vector<8x128xf32>
    %737 = arith.truncf %708 : vector<8x32xf32> to vector<8x32xbf16>
    %cst_154 = arith.constant dense<0.000000e+00> : vector<8x128xf32>
    %738 = tpu.matmul %737, %7, %cst_154 {dimension_numbers = #tpu.dot_dimension_numbers<[1], [0], [0], [1], [0, 0, 1, 1], [], []>} : vector<8x32xbf16>, vector<32x128xbf16>, vector<8x128xf32> -> vector<8x128xf32>
    %739 = arith.addf %736, %738 : vector<8x128xf32>
    %cst_155 = arith.constant 5.000000e-01 : f32
    %740 = vector.broadcast %cst_155 : f32 to vector<8x128xf32>
    %741 = arith.mulf %740, %739 : vector<8x128xf32>
    %742 = math.tanh %741 : vector<8x128xf32>
    %cst_156 = arith.constant 5.000000e-01 : f32
    %743 = vector.broadcast %cst_156 : f32 to vector<8x128xf32>
    %744 = arith.mulf %743, %742 : vector<8x128xf32>
    %cst_157 = arith.constant 5.000000e-01 : f32
    %745 = vector.broadcast %cst_157 : f32 to vector<8x128xf32>
    %746 = arith.addf %744, %745 : vector<8x128xf32>
    %747 = math.tanh %739 : vector<8x128xf32>
    %748 = vector.extract_strided_slice %746 {offsets = [0, 32], sizes = [8, 32], strides = [1, 1]} : vector<8x128xf32> to vector<8x32xf32>
    %749 = arith.mulf %748, %705 : vector<8x32xf32>
    %750 = vector.extract_strided_slice %746 {offsets = [0, 0], sizes = [8, 32], strides = [1, 1]} : vector<8x128xf32> to vector<8x32xf32>
    %751 = vector.extract_strided_slice %747 {offsets = [0, 64], sizes = [8, 32], strides = [1, 1]} : vector<8x128xf32> to vector<8x32xf32>
    %752 = arith.mulf %750, %751 : vector<8x32xf32>
    %753 = arith.addf %749, %752 : vector<8x32xf32>
    %754 = vector.extract_strided_slice %746 {offsets = [0, 96], sizes = [8, 32], strides = [1, 1]} : vector<8x128xf32> to vector<8x32xf32>
    %755 = math.tanh %753 : vector<8x32xf32>
    %756 = arith.mulf %754, %755 : vector<8x32xf32>
    %757 = tpu.concatenate %756, %730 in 1 : vector<8x32xf32>, vector<8x32xf32> -> vector<8x64xf32>
    %758 = arith.truncf %757 : vector<8x64xf32> to vector<8x64xbf16>
    %cst_158 = arith.constant dense<0.000000e+00> : vector<8x128xf32>
    %759 = tpu.matmul %758, %8, %cst_158 {dimension_numbers = #tpu.dot_dimension_numbers<[1], [0], [0], [1], [0, 0, 1, 1], [], []>} : vector<8x64xbf16>, vector<64x128xbf16>, vector<8x128xf32> -> vector<8x128xf32>
    %760 = vector.broadcast %9 : vector<1x128xf32> to vector<8x128xf32>
    %761 = arith.addf %759, %760 : vector<8x128xf32>
    %cst_159 = arith.constant 5.000000e-01 : f32
    %762 = vector.broadcast %cst_159 : f32 to vector<8x128xf32>
    %763 = arith.mulf %762, %761 : vector<8x128xf32>
    %764 = math.tanh %763 : vector<8x128xf32>
    %cst_160 = arith.constant 5.000000e-01 : f32
    %765 = vector.broadcast %cst_160 : f32 to vector<8x128xf32>
    %766 = arith.mulf %765, %764 : vector<8x128xf32>
    %cst_161 = arith.constant 5.000000e-01 : f32
    %767 = vector.broadcast %cst_161 : f32 to vector<8x128xf32>
    %768 = arith.addf %766, %767 : vector<8x128xf32>
    %769 = math.tanh %761 : vector<8x128xf32>
    %770 = vector.extract_strided_slice %768 {offsets = [0, 32], sizes = [8, 32], strides = [1, 1]} : vector<8x128xf32> to vector<8x32xf32>
    %771 = arith.mulf %770, %727 : vector<8x32xf32>
    %772 = vector.extract_strided_slice %768 {offsets = [0, 0], sizes = [8, 32], strides = [1, 1]} : vector<8x128xf32> to vector<8x32xf32>
    %773 = vector.extract_strided_slice %769 {offsets = [0, 64], sizes = [8, 32], strides = [1, 1]} : vector<8x128xf32> to vector<8x32xf32>
    %774 = arith.mulf %772, %773 : vector<8x32xf32>
    %775 = arith.addf %771, %774 : vector<8x32xf32>
    %776 = vector.extract_strided_slice %768 {offsets = [0, 96], sizes = [8, 32], strides = [1, 1]} : vector<8x128xf32> to vector<8x32xf32>
    %777 = math.tanh %775 : vector<8x32xf32>
    %778 = arith.mulf %776, %777 : vector<8x32xf32>
    %c15_i32 = arith.constant 15 : i32
    %779 = vector.broadcast %c15_i32 : i32 to vector<8x1xi32>
    %780 = arith.cmpi eq, %10, %779 : vector<8x1xi32>
    %781 = vector.shape_cast %780 : vector<8x1xi1> to vector<8x1xi1>
    %782 = vector.broadcast %781 : vector<8x1xi1> to vector<8x32xi1>
    %783 = arith.select %782, %778, %735 : vector<8x32xi1>, vector<8x32xf32>
    %c128_162 = arith.constant 128 : index
    %c0_163 = arith.constant 0 : index
    %784 = vector.load %arg6[%c128_162, %c0_163] : memref<160x128xf32, #tpu.memory_space<vmem>>, vector<8x128xf32>
    %785 = arith.truncf %756 : vector<8x32xf32> to vector<8x32xbf16>
    %cst_164 = arith.constant dense<0.000000e+00> : vector<8x128xf32>
    %786 = tpu.matmul %785, %7, %cst_164 {dimension_numbers = #tpu.dot_dimension_numbers<[1], [0], [0], [1], [0, 0, 1, 1], [], []>} : vector<8x32xbf16>, vector<32x128xbf16>, vector<8x128xf32> -> vector<8x128xf32>
    %787 = arith.addf %784, %786 : vector<8x128xf32>
    %cst_165 = arith.constant 5.000000e-01 : f32
    %788 = vector.broadcast %cst_165 : f32 to vector<8x128xf32>
    %789 = arith.mulf %788, %787 : vector<8x128xf32>
    %790 = math.tanh %789 : vector<8x128xf32>
    %cst_166 = arith.constant 5.000000e-01 : f32
    %791 = vector.broadcast %cst_166 : f32 to vector<8x128xf32>
    %792 = arith.mulf %791, %790 : vector<8x128xf32>
    %cst_167 = arith.constant 5.000000e-01 : f32
    %793 = vector.broadcast %cst_167 : f32 to vector<8x128xf32>
    %794 = arith.addf %792, %793 : vector<8x128xf32>
    %795 = math.tanh %787 : vector<8x128xf32>
    %796 = vector.extract_strided_slice %794 {offsets = [0, 32], sizes = [8, 32], strides = [1, 1]} : vector<8x128xf32> to vector<8x32xf32>
    %797 = arith.mulf %796, %753 : vector<8x32xf32>
    %798 = vector.extract_strided_slice %794 {offsets = [0, 0], sizes = [8, 32], strides = [1, 1]} : vector<8x128xf32> to vector<8x32xf32>
    %799 = vector.extract_strided_slice %795 {offsets = [0, 64], sizes = [8, 32], strides = [1, 1]} : vector<8x128xf32> to vector<8x32xf32>
    %800 = arith.mulf %798, %799 : vector<8x32xf32>
    %801 = arith.addf %797, %800 : vector<8x32xf32>
    %802 = vector.extract_strided_slice %794 {offsets = [0, 96], sizes = [8, 32], strides = [1, 1]} : vector<8x128xf32> to vector<8x32xf32>
    %803 = math.tanh %801 : vector<8x32xf32>
    %804 = arith.mulf %802, %803 : vector<8x32xf32>
    %805 = tpu.concatenate %804, %778 in 1 : vector<8x32xf32>, vector<8x32xf32> -> vector<8x64xf32>
    %806 = arith.truncf %805 : vector<8x64xf32> to vector<8x64xbf16>
    %cst_168 = arith.constant dense<0.000000e+00> : vector<8x128xf32>
    %807 = tpu.matmul %806, %8, %cst_168 {dimension_numbers = #tpu.dot_dimension_numbers<[1], [0], [0], [1], [0, 0, 1, 1], [], []>} : vector<8x64xbf16>, vector<64x128xbf16>, vector<8x128xf32> -> vector<8x128xf32>
    %808 = vector.broadcast %9 : vector<1x128xf32> to vector<8x128xf32>
    %809 = arith.addf %807, %808 : vector<8x128xf32>
    %cst_169 = arith.constant 5.000000e-01 : f32
    %810 = vector.broadcast %cst_169 : f32 to vector<8x128xf32>
    %811 = arith.mulf %810, %809 : vector<8x128xf32>
    %812 = math.tanh %811 : vector<8x128xf32>
    %cst_170 = arith.constant 5.000000e-01 : f32
    %813 = vector.broadcast %cst_170 : f32 to vector<8x128xf32>
    %814 = arith.mulf %813, %812 : vector<8x128xf32>
    %cst_171 = arith.constant 5.000000e-01 : f32
    %815 = vector.broadcast %cst_171 : f32 to vector<8x128xf32>
    %816 = arith.addf %814, %815 : vector<8x128xf32>
    %817 = math.tanh %809 : vector<8x128xf32>
    %818 = vector.extract_strided_slice %816 {offsets = [0, 32], sizes = [8, 32], strides = [1, 1]} : vector<8x128xf32> to vector<8x32xf32>
    %819 = arith.mulf %818, %775 : vector<8x32xf32>
    %820 = vector.extract_strided_slice %816 {offsets = [0, 0], sizes = [8, 32], strides = [1, 1]} : vector<8x128xf32> to vector<8x32xf32>
    %821 = vector.extract_strided_slice %817 {offsets = [0, 64], sizes = [8, 32], strides = [1, 1]} : vector<8x128xf32> to vector<8x32xf32>
    %822 = arith.mulf %820, %821 : vector<8x32xf32>
    %823 = arith.addf %819, %822 : vector<8x32xf32>
    %824 = vector.extract_strided_slice %816 {offsets = [0, 96], sizes = [8, 32], strides = [1, 1]} : vector<8x128xf32> to vector<8x32xf32>
    %825 = math.tanh %823 : vector<8x32xf32>
    %826 = arith.mulf %824, %825 : vector<8x32xf32>
    %c16_i32 = arith.constant 16 : i32
    %827 = vector.broadcast %c16_i32 : i32 to vector<8x1xi32>
    %828 = arith.cmpi eq, %10, %827 : vector<8x1xi32>
    %829 = vector.shape_cast %828 : vector<8x1xi1> to vector<8x1xi1>
    %830 = vector.broadcast %829 : vector<8x1xi1> to vector<8x32xi1>
    %831 = arith.select %830, %826, %783 : vector<8x32xi1>, vector<8x32xf32>
    %c136 = arith.constant 136 : index
    %c0_172 = arith.constant 0 : index
    %832 = vector.load %arg6[%c136, %c0_172] : memref<160x128xf32, #tpu.memory_space<vmem>>, vector<8x128xf32>
    %833 = arith.truncf %804 : vector<8x32xf32> to vector<8x32xbf16>
    %cst_173 = arith.constant dense<0.000000e+00> : vector<8x128xf32>
    %834 = tpu.matmul %833, %7, %cst_173 {dimension_numbers = #tpu.dot_dimension_numbers<[1], [0], [0], [1], [0, 0, 1, 1], [], []>} : vector<8x32xbf16>, vector<32x128xbf16>, vector<8x128xf32> -> vector<8x128xf32>
    %835 = arith.addf %832, %834 : vector<8x128xf32>
    %cst_174 = arith.constant 5.000000e-01 : f32
    %836 = vector.broadcast %cst_174 : f32 to vector<8x128xf32>
    %837 = arith.mulf %836, %835 : vector<8x128xf32>
    %838 = math.tanh %837 : vector<8x128xf32>
    %cst_175 = arith.constant 5.000000e-01 : f32
    %839 = vector.broadcast %cst_175 : f32 to vector<8x128xf32>
    %840 = arith.mulf %839, %838 : vector<8x128xf32>
    %cst_176 = arith.constant 5.000000e-01 : f32
    %841 = vector.broadcast %cst_176 : f32 to vector<8x128xf32>
    %842 = arith.addf %840, %841 : vector<8x128xf32>
    %843 = math.tanh %835 : vector<8x128xf32>
    %844 = vector.extract_strided_slice %842 {offsets = [0, 32], sizes = [8, 32], strides = [1, 1]} : vector<8x128xf32> to vector<8x32xf32>
    %845 = arith.mulf %844, %801 : vector<8x32xf32>
    %846 = vector.extract_strided_slice %842 {offsets = [0, 0], sizes = [8, 32], strides = [1, 1]} : vector<8x128xf32> to vector<8x32xf32>
    %847 = vector.extract_strided_slice %843 {offsets = [0, 64], sizes = [8, 32], strides = [1, 1]} : vector<8x128xf32> to vector<8x32xf32>
    %848 = arith.mulf %846, %847 : vector<8x32xf32>
    %849 = arith.addf %845, %848 : vector<8x32xf32>
    %850 = vector.extract_strided_slice %842 {offsets = [0, 96], sizes = [8, 32], strides = [1, 1]} : vector<8x128xf32> to vector<8x32xf32>
    %851 = math.tanh %849 : vector<8x32xf32>
    %852 = arith.mulf %850, %851 : vector<8x32xf32>
    %853 = tpu.concatenate %852, %826 in 1 : vector<8x32xf32>, vector<8x32xf32> -> vector<8x64xf32>
    %854 = arith.truncf %853 : vector<8x64xf32> to vector<8x64xbf16>
    %cst_177 = arith.constant dense<0.000000e+00> : vector<8x128xf32>
    %855 = tpu.matmul %854, %8, %cst_177 {dimension_numbers = #tpu.dot_dimension_numbers<[1], [0], [0], [1], [0, 0, 1, 1], [], []>} : vector<8x64xbf16>, vector<64x128xbf16>, vector<8x128xf32> -> vector<8x128xf32>
    %856 = vector.broadcast %9 : vector<1x128xf32> to vector<8x128xf32>
    %857 = arith.addf %855, %856 : vector<8x128xf32>
    %cst_178 = arith.constant 5.000000e-01 : f32
    %858 = vector.broadcast %cst_178 : f32 to vector<8x128xf32>
    %859 = arith.mulf %858, %857 : vector<8x128xf32>
    %860 = math.tanh %859 : vector<8x128xf32>
    %cst_179 = arith.constant 5.000000e-01 : f32
    %861 = vector.broadcast %cst_179 : f32 to vector<8x128xf32>
    %862 = arith.mulf %861, %860 : vector<8x128xf32>
    %cst_180 = arith.constant 5.000000e-01 : f32
    %863 = vector.broadcast %cst_180 : f32 to vector<8x128xf32>
    %864 = arith.addf %862, %863 : vector<8x128xf32>
    %865 = math.tanh %857 : vector<8x128xf32>
    %866 = vector.extract_strided_slice %864 {offsets = [0, 32], sizes = [8, 32], strides = [1, 1]} : vector<8x128xf32> to vector<8x32xf32>
    %867 = arith.mulf %866, %823 : vector<8x32xf32>
    %868 = vector.extract_strided_slice %864 {offsets = [0, 0], sizes = [8, 32], strides = [1, 1]} : vector<8x128xf32> to vector<8x32xf32>
    %869 = vector.extract_strided_slice %865 {offsets = [0, 64], sizes = [8, 32], strides = [1, 1]} : vector<8x128xf32> to vector<8x32xf32>
    %870 = arith.mulf %868, %869 : vector<8x32xf32>
    %871 = arith.addf %867, %870 : vector<8x32xf32>
    %872 = vector.extract_strided_slice %864 {offsets = [0, 96], sizes = [8, 32], strides = [1, 1]} : vector<8x128xf32> to vector<8x32xf32>
    %873 = math.tanh %871 : vector<8x32xf32>
    %874 = arith.mulf %872, %873 : vector<8x32xf32>
    %c17_i32 = arith.constant 17 : i32
    %875 = vector.broadcast %c17_i32 : i32 to vector<8x1xi32>
    %876 = arith.cmpi eq, %10, %875 : vector<8x1xi32>
    %877 = vector.shape_cast %876 : vector<8x1xi1> to vector<8x1xi1>
    %878 = vector.broadcast %877 : vector<8x1xi1> to vector<8x32xi1>
    %879 = arith.select %878, %874, %831 : vector<8x32xi1>, vector<8x32xf32>
    %c144 = arith.constant 144 : index
    %c0_181 = arith.constant 0 : index
    %880 = vector.load %arg6[%c144, %c0_181] : memref<160x128xf32, #tpu.memory_space<vmem>>, vector<8x128xf32>
    %881 = arith.truncf %852 : vector<8x32xf32> to vector<8x32xbf16>
    %cst_182 = arith.constant dense<0.000000e+00> : vector<8x128xf32>
    %882 = tpu.matmul %881, %7, %cst_182 {dimension_numbers = #tpu.dot_dimension_numbers<[1], [0], [0], [1], [0, 0, 1, 1], [], []>} : vector<8x32xbf16>, vector<32x128xbf16>, vector<8x128xf32> -> vector<8x128xf32>
    %883 = arith.addf %880, %882 : vector<8x128xf32>
    %cst_183 = arith.constant 5.000000e-01 : f32
    %884 = vector.broadcast %cst_183 : f32 to vector<8x128xf32>
    %885 = arith.mulf %884, %883 : vector<8x128xf32>
    %886 = math.tanh %885 : vector<8x128xf32>
    %cst_184 = arith.constant 5.000000e-01 : f32
    %887 = vector.broadcast %cst_184 : f32 to vector<8x128xf32>
    %888 = arith.mulf %887, %886 : vector<8x128xf32>
    %cst_185 = arith.constant 5.000000e-01 : f32
    %889 = vector.broadcast %cst_185 : f32 to vector<8x128xf32>
    %890 = arith.addf %888, %889 : vector<8x128xf32>
    %891 = math.tanh %883 : vector<8x128xf32>
    %892 = vector.extract_strided_slice %890 {offsets = [0, 32], sizes = [8, 32], strides = [1, 1]} : vector<8x128xf32> to vector<8x32xf32>
    %893 = arith.mulf %892, %849 : vector<8x32xf32>
    %894 = vector.extract_strided_slice %890 {offsets = [0, 0], sizes = [8, 32], strides = [1, 1]} : vector<8x128xf32> to vector<8x32xf32>
    %895 = vector.extract_strided_slice %891 {offsets = [0, 64], sizes = [8, 32], strides = [1, 1]} : vector<8x128xf32> to vector<8x32xf32>
    %896 = arith.mulf %894, %895 : vector<8x32xf32>
    %897 = arith.addf %893, %896 : vector<8x32xf32>
    %898 = vector.extract_strided_slice %890 {offsets = [0, 96], sizes = [8, 32], strides = [1, 1]} : vector<8x128xf32> to vector<8x32xf32>
    %899 = math.tanh %897 : vector<8x32xf32>
    %900 = arith.mulf %898, %899 : vector<8x32xf32>
    %901 = tpu.concatenate %900, %874 in 1 : vector<8x32xf32>, vector<8x32xf32> -> vector<8x64xf32>
    %902 = arith.truncf %901 : vector<8x64xf32> to vector<8x64xbf16>
    %cst_186 = arith.constant dense<0.000000e+00> : vector<8x128xf32>
    %903 = tpu.matmul %902, %8, %cst_186 {dimension_numbers = #tpu.dot_dimension_numbers<[1], [0], [0], [1], [0, 0, 1, 1], [], []>} : vector<8x64xbf16>, vector<64x128xbf16>, vector<8x128xf32> -> vector<8x128xf32>
    %904 = vector.broadcast %9 : vector<1x128xf32> to vector<8x128xf32>
    %905 = arith.addf %903, %904 : vector<8x128xf32>
    %cst_187 = arith.constant 5.000000e-01 : f32
    %906 = vector.broadcast %cst_187 : f32 to vector<8x128xf32>
    %907 = arith.mulf %906, %905 : vector<8x128xf32>
    %908 = math.tanh %907 : vector<8x128xf32>
    %cst_188 = arith.constant 5.000000e-01 : f32
    %909 = vector.broadcast %cst_188 : f32 to vector<8x128xf32>
    %910 = arith.mulf %909, %908 : vector<8x128xf32>
    %cst_189 = arith.constant 5.000000e-01 : f32
    %911 = vector.broadcast %cst_189 : f32 to vector<8x128xf32>
    %912 = arith.addf %910, %911 : vector<8x128xf32>
    %913 = math.tanh %905 : vector<8x128xf32>
    %914 = vector.extract_strided_slice %912 {offsets = [0, 32], sizes = [8, 32], strides = [1, 1]} : vector<8x128xf32> to vector<8x32xf32>
    %915 = arith.mulf %914, %871 : vector<8x32xf32>
    %916 = vector.extract_strided_slice %912 {offsets = [0, 0], sizes = [8, 32], strides = [1, 1]} : vector<8x128xf32> to vector<8x32xf32>
    %917 = vector.extract_strided_slice %913 {offsets = [0, 64], sizes = [8, 32], strides = [1, 1]} : vector<8x128xf32> to vector<8x32xf32>
    %918 = arith.mulf %916, %917 : vector<8x32xf32>
    %919 = arith.addf %915, %918 : vector<8x32xf32>
    %920 = vector.extract_strided_slice %912 {offsets = [0, 96], sizes = [8, 32], strides = [1, 1]} : vector<8x128xf32> to vector<8x32xf32>
    %921 = math.tanh %919 : vector<8x32xf32>
    %922 = arith.mulf %920, %921 : vector<8x32xf32>
    %c18_i32 = arith.constant 18 : i32
    %923 = vector.broadcast %c18_i32 : i32 to vector<8x1xi32>
    %924 = arith.cmpi eq, %10, %923 : vector<8x1xi32>
    %925 = vector.shape_cast %924 : vector<8x1xi1> to vector<8x1xi1>
    %926 = vector.broadcast %925 : vector<8x1xi1> to vector<8x32xi1>
    %927 = arith.select %926, %922, %879 : vector<8x32xi1>, vector<8x32xf32>
    %c152 = arith.constant 152 : index
    %c0_190 = arith.constant 0 : index
    %928 = vector.load %arg6[%c152, %c0_190] : memref<160x128xf32, #tpu.memory_space<vmem>>, vector<8x128xf32>
    %929 = arith.truncf %900 : vector<8x32xf32> to vector<8x32xbf16>
    %cst_191 = arith.constant dense<0.000000e+00> : vector<8x128xf32>
    %930 = tpu.matmul %929, %7, %cst_191 {dimension_numbers = #tpu.dot_dimension_numbers<[1], [0], [0], [1], [0, 0, 1, 1], [], []>} : vector<8x32xbf16>, vector<32x128xbf16>, vector<8x128xf32> -> vector<8x128xf32>
    %931 = arith.addf %928, %930 : vector<8x128xf32>
    %cst_192 = arith.constant 5.000000e-01 : f32
    %932 = vector.broadcast %cst_192 : f32 to vector<8x128xf32>
    %933 = arith.mulf %932, %931 : vector<8x128xf32>
    %934 = math.tanh %933 : vector<8x128xf32>
    %cst_193 = arith.constant 5.000000e-01 : f32
    %935 = vector.broadcast %cst_193 : f32 to vector<8x128xf32>
    %936 = arith.mulf %935, %934 : vector<8x128xf32>
    %cst_194 = arith.constant 5.000000e-01 : f32
    %937 = vector.broadcast %cst_194 : f32 to vector<8x128xf32>
    %938 = arith.addf %936, %937 : vector<8x128xf32>
    %939 = math.tanh %931 : vector<8x128xf32>
    %940 = vector.extract_strided_slice %938 {offsets = [0, 32], sizes = [8, 32], strides = [1, 1]} : vector<8x128xf32> to vector<8x32xf32>
    %941 = arith.mulf %940, %897 : vector<8x32xf32>
    %942 = vector.extract_strided_slice %938 {offsets = [0, 0], sizes = [8, 32], strides = [1, 1]} : vector<8x128xf32> to vector<8x32xf32>
    %943 = vector.extract_strided_slice %939 {offsets = [0, 64], sizes = [8, 32], strides = [1, 1]} : vector<8x128xf32> to vector<8x32xf32>
    %944 = arith.mulf %942, %943 : vector<8x32xf32>
    %945 = arith.addf %941, %944 : vector<8x32xf32>
    %946 = vector.extract_strided_slice %938 {offsets = [0, 96], sizes = [8, 32], strides = [1, 1]} : vector<8x128xf32> to vector<8x32xf32>
    %947 = math.tanh %945 : vector<8x32xf32>
    %948 = arith.mulf %946, %947 : vector<8x32xf32>
    %949 = tpu.concatenate %948, %922 in 1 : vector<8x32xf32>, vector<8x32xf32> -> vector<8x64xf32>
    %950 = arith.truncf %949 : vector<8x64xf32> to vector<8x64xbf16>
    %cst_195 = arith.constant dense<0.000000e+00> : vector<8x128xf32>
    %951 = tpu.matmul %950, %8, %cst_195 {dimension_numbers = #tpu.dot_dimension_numbers<[1], [0], [0], [1], [0, 0, 1, 1], [], []>} : vector<8x64xbf16>, vector<64x128xbf16>, vector<8x128xf32> -> vector<8x128xf32>
    %952 = vector.broadcast %9 : vector<1x128xf32> to vector<8x128xf32>
    %953 = arith.addf %951, %952 : vector<8x128xf32>
    %cst_196 = arith.constant 5.000000e-01 : f32
    %954 = vector.broadcast %cst_196 : f32 to vector<8x128xf32>
    %955 = arith.mulf %954, %953 : vector<8x128xf32>
    %956 = math.tanh %955 : vector<8x128xf32>
    %cst_197 = arith.constant 5.000000e-01 : f32
    %957 = vector.broadcast %cst_197 : f32 to vector<8x128xf32>
    %958 = arith.mulf %957, %956 : vector<8x128xf32>
    %cst_198 = arith.constant 5.000000e-01 : f32
    %959 = vector.broadcast %cst_198 : f32 to vector<8x128xf32>
    %960 = arith.addf %958, %959 : vector<8x128xf32>
    %961 = math.tanh %953 : vector<8x128xf32>
    %962 = vector.extract_strided_slice %960 {offsets = [0, 32], sizes = [8, 32], strides = [1, 1]} : vector<8x128xf32> to vector<8x32xf32>
    %963 = arith.mulf %962, %919 : vector<8x32xf32>
    %964 = vector.extract_strided_slice %960 {offsets = [0, 0], sizes = [8, 32], strides = [1, 1]} : vector<8x128xf32> to vector<8x32xf32>
    %965 = vector.extract_strided_slice %961 {offsets = [0, 64], sizes = [8, 32], strides = [1, 1]} : vector<8x128xf32> to vector<8x32xf32>
    %966 = arith.mulf %964, %965 : vector<8x32xf32>
    %967 = arith.addf %963, %966 : vector<8x32xf32>
    %968 = vector.extract_strided_slice %960 {offsets = [0, 96], sizes = [8, 32], strides = [1, 1]} : vector<8x128xf32> to vector<8x32xf32>
    %969 = math.tanh %967 : vector<8x32xf32>
    %970 = arith.mulf %968, %969 : vector<8x32xf32>
    %c19_i32 = arith.constant 19 : i32
    %971 = vector.broadcast %c19_i32 : i32 to vector<8x1xi32>
    %972 = arith.cmpi eq, %10, %971 : vector<8x1xi32>
    %973 = vector.shape_cast %972 : vector<8x1xi1> to vector<8x1xi1>
    %974 = vector.broadcast %973 : vector<8x1xi1> to vector<8x32xi1>
    %975 = arith.select %974, %970, %927 : vector<8x32xi1>, vector<8x32xf32>
    %c224 = arith.constant 224 : index
    %c0_199 = arith.constant 0 : index
    %976 = vector.load %arg3[%c224, %c0_199] : memref<256x128xbf16, #tpu.memory_space<vmem>>, vector<32x128xbf16>
    %c2 = arith.constant 2 : index
    %c0_200 = arith.constant 0 : index
    %977 = vector.load %arg4[%c2, %c0_200] : memref<8x128xf32, #tpu.memory_space<vmem>>, vector<1x128xf32>
    %978 = arith.truncf %975 : vector<8x32xf32> to vector<8x32xbf16>
    %cst_201 = arith.constant dense<0.000000e+00> : vector<8x128xf32>
    %979 = tpu.matmul %978, %976, %cst_201 {dimension_numbers = #tpu.dot_dimension_numbers<[1], [0], [0], [1], [0, 0, 1, 1], [], []>} : vector<8x32xbf16>, vector<32x128xbf16>, vector<8x128xf32> -> vector<8x128xf32>
    %980 = vector.broadcast %977 : vector<1x128xf32> to vector<8x128xf32>
    %981 = arith.addf %979, %980 : vector<8x128xf32>
    %cst_202 = arith.constant 5.000000e-01 : f32
    %982 = vector.broadcast %cst_202 : f32 to vector<8x128xf32>
    %983 = arith.mulf %982, %981 : vector<8x128xf32>
    %984 = math.tanh %983 : vector<8x128xf32>
    %cst_203 = arith.constant 5.000000e-01 : f32
    %985 = vector.broadcast %cst_203 : f32 to vector<8x128xf32>
    %986 = arith.mulf %985, %984 : vector<8x128xf32>
    %cst_204 = arith.constant 5.000000e-01 : f32
    %987 = vector.broadcast %cst_204 : f32 to vector<8x128xf32>
    %988 = arith.addf %986, %987 : vector<8x128xf32>
    %c0_205 = arith.constant 0 : index
    %c0_206 = arith.constant 0 : index
    %989 = vector.load %arg5[%c0_205, %c0_206] : memref<8x128xf32, #tpu.memory_space<vmem>>, vector<8x128xf32>
    tpu.vector_store %arg5[%c0_205, %c0_206], %988 {strides = array<i32>} : memref<8x128xf32, #tpu.memory_space<vmem>>, vector<8x128xf32>,
    return
  }
  func.func @transform_0(%arg0: i32) -> (i32, i32) {
    %c0_i32 = arith.constant 0 : i32
    %c0_i32_0 = arith.constant 0 : i32
    %c0_i32_1 = arith.constant 0 : i32
    return %c0_i32, %c0_i32_0 : i32, i32
  }
  func.func @transform_1(%arg0: i32) -> (i32, i32) {
    %c0_i32 = arith.constant 0 : i32
    %c0_i32_0 = arith.constant 0 : i32
    %c0_i32_1 = arith.constant 0 : i32
    return %c0_i32, %c0_i32_0 : i32, i32
  }
  func.func @transform_2(%arg0: i32) -> (i32, i32) {
    %c0_i32 = arith.constant 0 : i32
    %c0_i32_0 = arith.constant 0 : i32
    %c0_i32_1 = arith.constant 0 : i32
    return %c0_i32, %c0_i32_0 : i32, i32
  }
  func.func @transform_3(%arg0: i32) -> (i32, i32) {
    %c0_i32 = arith.constant 0 : i32
    %c0_i32_0 = arith.constant 0 : i32
    %c0_i32_1 = arith.constant 0 : i32
    return %c0_i32, %c0_i32_0 : i32, i32
  }
  func.func @transform_4(%arg0: i32) -> (i32, i32) {
    %c0_i32 = arith.constant 0 : i32
    %c0_i32_0 = arith.constant 0 : i32
    %c0_i32_1 = arith.constant 0 : i32
    return %c0_i32, %c0_i32_0 : i32, i32
  }
}

</mosaic_0001>

<bundles_post_ra>
// kernel: tpu_custom_call.1
= control target key start
LH: loop header
LB: loop body
LE: loop exit
PB: predicated region body
PF: predicated region fallthrough
CT: control target
= control target key end

     0   :  { %9 = vsyncpa [#allocation4], 0  ;;  %s5635_s0 = inlined_call_operand.hbm [shape: bf16[160,128], index: 0, kind: input, shape index: {}]   ;;  %s5636_s1 = inlined_call_operand.vmem [shape: s32[8,1], index: 1, kind: input, shape index: {}]   ;;  %s5637_s2 = inlined_call_operand.hbm [shape: bf16[256,128], index: 2, kind: input, shape index: {}]   ;;  %s5638_s3 = inlined_call_operand.vmem [shape: f32[8,128], index: 3, kind: input, shape index: {}]   ;;  %s5639_s4 = inlined_call_operand.hbm [shape: f32[8,128], index: 4, kind: output, shape index: {}]  }
   0x1   :  { %10 = vsyncpa [#allocation7], 0 }
   0x2   :  { %11 = vsyncpa [#allocation5], 0  ;;  %s4581_s15 = smov [#allocation3]  }
   0x3   :  { %s17_s16 = sshll.u32 %s4581_s15, 4  ;;  %s18_s16 = int_to_ptr.vmem [resolvable:$true] %s17_s16 }
   0x4   :  { %s4523_s17 = scalar_lea.vmem %s18_s16, 1280  ;;  %p4528_p1 = scmp.lt.s32.totalorder %s18_s16, %s18_s16 }
   0x5   :  { %p4524_p0 = scmp.ne.s32.totalorder %s18_s16, %s4523_s17  ;;  %p4529_p2 = scmp.lt.s32.totalorder %s4523_s17, %s4523_s17 }
   0x7   :  { %p4530_p3 = por %p4529_p2, %p4528_p1 }
   0x9   :  { %p4531_p4 = pnand %p4530_p3, %p4524_p0 }
   0xb   :  { %4534 = shalt.err (!%p4531_p4)
}
   0xc   :  { %s4582_s18 = smov 64   ;;  %s4583_s19 = smov 4  }
   0xd   :  { %23 = dma.hbm_to_vmem [thread:$0]  %s5635_s0, 1280, %s18_s16, [#allocation4], %s4582_s18, %s4582_s18, %s4583_s19  }
   0xe   :  { %s4584_s22 = smov [#allocation6]  }
   0xf   :  { %s31_s23 = sshll.u32 %s4584_s22, 4  ;;  %s32_s23 = int_to_ptr.vmem [resolvable:$true] %s31_s23 }
  0x10   :  { %s4543_s24 = scalar_lea.vmem %s32_s23, 2048  ;;  %p4548_p6 = scmp.lt.s32.totalorder %s32_s23, %s32_s23 }
  0x11   :  { %p4544_p5 = scmp.ne.s32.totalorder %s32_s23, %s4543_s24  ;;  %p4549_p7 = scmp.lt.s32.totalorder %s4543_s24, %s4543_s24 }
  0x13   :  { %p4550_p8 = por %p4549_p7, %p4548_p6 }
  0x15   :  { %p4551_p9 = pnand %p4550_p8, %p4544_p5 }
  0x17   :  { %4554 = shalt.err (!%p4551_p9)
}
  0x18   :  { %37 = dma.hbm_to_vmem [thread:$0]  %s5637_s2, 2048, %s32_s23, [#allocation7], %s4582_s18, %s4582_s18, %s4583_s19  }
  0x19   :  { %4575 = dma.done.wait [#allocation4], 1280  }
  0x1a   :  { %4576 = vsyncadd [#allocation4], 4294966016 }
  0x1b   :  { %4577 = dma.done.wait [#allocation7], 2048  }
  0x1c   :  { %4578 = vsyncadd [#allocation7], 4294965248  ;;  %v4585_v0 = vmov 0.0   ;;  %vm4586_vm0 = vmmov 0   ;;  %v4587_v1 = vmov 0   ;;  %v4231_v2 = vld [vmem:[#allocation6 + $0x38] sm:$0xff]  }
  0x1d   :  { %3812 = vmatprep.subr.bf16.mxu1 %v4585_v0  ;;  %3816 = vmatprep.mubr.msk.bf16.mxu1 %vm4586_vm0, %v4585_v0  ;;  %v4232_v3 = vld [vmem:[#allocation6 + $0x30] sm:$0xff]   ;;  %v4233_v4 = vld [vmem:[#allocation6 + $0x28] sm:$0xff]   ;;  %v4234_v6 = vld [vmem:[#allocation6 + $0x20] sm:$0xff]   ;;  %s4588_s27 = smov 32   ;;  %vm356_vm1 = vcmask 261120   ;;  %vm457_vm2 = vcmask 523264  }
  0x1e   :  { %4229 = vset.pattern.permute.xlu1 %v4587_v1  ;;  %4230 = vset.pattern.permute.xlu0 %v4587_v1  ;;  %v4630_v5 = vld [vmem:[#allocation6 + $0x48] sm:$0xff]   ;;  %v4633_v7 = vld [vmem:[#allocation6 + $0x40] sm:$0xff]   ;;  %v4241_v8 = vld [vmem:[#allocation3] sm:$0xff]   ;;  %s4589_s15 = smov [#allocation8]  }
  0x1f   :  { %3776 = vmatprep.subr.bf16.mxu0 %v4231_v2  ;;  %3813 = vmatpush3.bf16.msra.mxu1 %v4630_v5  ;;  %v4235_v9 = vld [vmem:[#allocation6 + $0x18] sm:$0xff]   ;;  %v4236_v10 = vld [vmem:[#allocation6 + $0x10] sm:$0xff]   ;;  %v4238_v11 = vld [vmem:[#allocation6 + $0x8] sm:$0xff]   ;;  %s3516_s16 = sshll.u32 %s4589_s15, 4  ;;  %s3517_s16 = int_to_ptr.vmem [resolvable:$true] %s3516_s16 }
  0x20   :  { %3777 = vmatpush3.bf16.msra.mxu0 %v4231_v2  ;;  %3814 = vmatprep.subr.bf16.mxu1 %v4585_v0  ;;  %v4240_v12 = vld [vmem:[#allocation6] sm:$0xff]   ;;  %v4242_v13 = vld [vmem:[#allocation3 + $0x8] sm:$0xff]   ;;  %v4647_v19 = vld [vmem:[%s5638_s3] ss:$0 sm:$0xff]  ;;  %s4555_s17 = scalar_lea.vmem %s3517_s16, 128  ;;  %p4560_p11 = scmp.lt.s32.totalorder %s3517_s16, %s3517_s16 }
  0x21   :  { %3778 = vmatprep.subr.bf16.mxu0 %v4232_v3  ;;  %3792 = vmatprep.mubr.bf16.mxu0 %v4241_v8  ;;  %v4655_v33 = vld [vmem:[#allocation6 + $0x68] sm:$0xff]   ;;  %v4658_v34 = vld [vmem:[#allocation6 + $0x60] sm:$0xff]   ;;  %v4664_v35 = vld [vmem:[#allocation6 + $0x58] sm:$0xff]   ;;  %p4556_p10 = scmp.ne.s32.totalorder %s3517_s16, %s4555_s17  ;;  %p4561_p12 = scmp.lt.s32.totalorder %s4555_s17, %s4555_s17 }
  0x22   :  { %v4671_v37 = vld [vmem:[#allocation6 + $0x50] sm:$0xff]  }
  0x23   :  { %3815 = vmatpush3.bf16.msra.mxu1 %v4633_v7  ;;  %v4704_v45 = vld [vmem:[%s5638_s3 + $0x1] ss:$0 sm:$0xff]  ;;  %p4562_p13 = por %p4561_p12, %p4560_p11 }
  0x24   :  { %3779 = vmatpush3.bf16.msra.mxu0 %v4232_v3  ;;  %3820 = vmatprep.subr.bf16.mxu1 %v4585_v0 }
  0x25   :  { %3780 = vmatprep.subr.bf16.mxu0 %v4233_v4  ;;  %p4563_p0 = pnand %p4562_p13, %p4556_p10 }
  0x26   :  { %3817 = vmatmul.mubr.bf16.vlgmr.msra.gmra.mxu1 %v4587_v1 }
  0x27   :  { %3828 = vmatprep.mubr.msk.bf16.mxu1 %vm4586_vm0, %v4585_v0  ;;  %3821 = vmatpush3.bf16.msra.mxu1 %v4655_v33 }
  0x28   :  { %3781 = vmatpush3.bf16.msra.mxu0 %v4233_v4  ;;  %3822 = vmatprep.subr.bf16.mxu1 %v4585_v0 }
  0x29   :  { %3782 = vmatprep.subr.bf16.mxu0 %v4234_v6 }
  0x2b   :  { %3823 = vmatpush3.bf16.msra.mxu1 %v4658_v34 }
  0x2c   :  { %3783 = vmatpush3.bf16.msra.mxu0 %v4234_v6  ;;  %3824 = vmatprep.subr.bf16.mxu1 %v4585_v0 }
  0x2d   :  { %3784 = vmatprep.subr.bf16.mxu0 %v4235_v9 }
  0x2f   :  { %3825 = vmatpush3.bf16.msra.mxu1 %v4664_v35 }
  0x30   :  { %3785 = vmatpush3.bf16.msra.mxu0 %v4235_v9  ;;  %3826 = vmatprep.subr.bf16.mxu1 %v4585_v0 }
  0x31   :  { %3786 = vmatprep.subr.bf16.mxu0 %v4236_v10 }
  0x33   :  { %3827 = vmatpush3.bf16.msra.mxu1 %v4671_v37 }
  0x34   :  { %3787 = vmatpush3.bf16.msra.mxu0 %v4236_v10  ;;  %3832 = vmatprep.subr.bf16.mxu1 %v4585_v0 }
  0x35   :  { %3788 = vmatprep.subr.bf16.mxu0 %v4238_v11 }
  0x38   :  { %3789 = vmatpush3.bf16.msra.mxu0 %v4238_v11 }
  0x39   :  { %3790 = vmatprep.subr.bf16.mxu0 %v4240_v12 }
  0x3c   :  { %3791 = vmatpush3.bf16.msra.mxu0 %v4240_v12 }
  0x3d   :  { %3860 = vmatprep.subr.bf16.mxu0 %v4585_v0 }
  0x3f   :  { %3793 = vmatmul.mubr.bf16.vlgmr.msra.gmra.mxu0 %v4242_v13 }
  0x40   :  { %3861 = vmatpush3.bf16.msra.mxu0 %v4655_v33 }
  0x41   :  { %3862 = vmatprep.subr.bf16.mxu0 %v4585_v0 }
  0x44   :  { %3863 = vmatpush3.bf16.msra.mxu0 %v4658_v34 }
  0x45   :  { %3864 = vmatprep.subr.bf16.mxu0 %v4585_v0 }
  0x48   :  { %3865 = vmatpush3.bf16.msra.mxu0 %v4664_v35 }
  0x49   :  { %3866 = vmatprep.subr.bf16.mxu0 %v4585_v0 }
  0x4c   :  { %3867 = vmatpush3.bf16.msra.mxu0 %v4671_v37 }
  0x4d   :  { %3892 = vmatprep.subr.bf16.mxu0 %v4585_v0 }
  0xe6   :  { %v394_v14 = vpop.f32.mrf.mxu1 }
  0xe8   :  { %v3818_v15 = vpop.f32.mrf.mxu1 }
  0xea   :  { %v397_v16 = vpop.f32.mrf.mxu1 }
  0xec   :  { %v3819_v17 = vpop.f32.mrf.mxu1 }
  0xff   :  { %v4642_v18 = vpop.f32.mrf.mxu0 }
 0x101   :  { %v230_v20 = vpop.f32.mrf.mxu0 }
 0x102   :  { %v231_v21 = vadd.f32 %v4647_v19, %v230_v20 }
 0x103   :  { %v4706_v46 = vpop.f32.mrf.mxu0 }
 0x104   :  { %v400_v22 = vadd.f32 %v394_v14, %v231_v21 }
 0x105   :  { %v233_v50 = vpop.f32.mrf.mxu0 }
 0x106   :  { %4257 = vtanh.f32 %v400_v22  ;;  %v401_v24 = vmul.f32 0.5, %v400_v22  ;;  %v234_v53 = vadd.f32 %v4647_v19, %v233_v50 }
 0x108   :  { %4259 = vtanh.f32 %v401_v24 }
 0x113   :  { %v4258_v23 = vpop.eup %4257 }
 0x114   :  { %408 = vrot.lane.b32.xlu0 %v4258_v23, %s4582_s18 }
 0x115   :  { %v4260_v25 = vpop.eup %4259 }
 0x116   :  { %v403_v26 = vmul.f32 0.5, %v4260_v25 }
 0x118   :  { %v404_v27 = vadd.f32 0.5, %v403_v26 }
 0x11a   :  { %v406_v30 = vmul.f32 0.0, %v404_v27 }
 0x186   :  { %v409_v28 = vpop.permute.xlu0 %408 }
 0x187   :  { %v411_v29 = vmul.f32 %v409_v28, %v404_v27 }
 0x189   :  { %413 = vrot.lane.b32.xlu0 %v411_v29, %s4588_s27 }
 0x1fb   :  { %v414_v31 = vpop.permute.xlu0 %413 }
 0x1fc   :  { %v4652_v32 = vadd.f32 %v414_v31, %v406_v30 }
 0x1fe   :  { %4261 = vtanh.f32 %v4652_v32 }
 0x20b   :  { %v4262_v36 = vpop.eup %4261 }
 0x20c   :  { %419 = vrot.lane.b32.xlu1 %v4262_v36, %s4582_s18 }
 0x27e   :  { %v420_v38 = vpop.permute.xlu1 %419 }
 0x27f   :  { %v422_v39 = vmul.f32 %v420_v38, %v404_v27 }
 0x281   :  { %v531_v40 = vpack.c.bf16 %v422_v39, %v422_v39  ;;  %424 = vrot.lane.b32.xlu1 %v422_v39, %s4588_s27 }
 0x283   :  { %533 = vrot.lane.b32.xlu0 %v531_v40, %s4588_s27 }
 0x2f3   :  { %v425_v41 = vpop.permute.xlu1 %424 }
 0x2f4   :  { %v427_v42 = vsel %vm356_vm1, %v425_v41, 0.0 }
 0x2f5   :  { %v428_v43 = vpack.c.bf16 %v427_v42, %v427_v42  ;;  %v534_v44 = vpop.permute.xlu0 %533  ;;  %v239_v42 = vadd.f32 %v4642_v18, %v4647_v19 }
 0x2f7   :  { %3829 = vmatmul.mubr.msk.bf16.vlgmr.msra.gmra.mxu1 %vm457_vm2, %v428_v43 }
 0x2f8   :  { %3833 = vmatpush3.bf16.msra.mxu1 %v4630_v5  ;;  %3836 = vmatprep.mubr.msk.bf16.mxu1 %vm4586_vm0, %v4585_v0 }
 0x2f9   :  { %3834 = vmatprep.subr.bf16.mxu1 %v4585_v0 }
 0x2fc   :  { %3835 = vmatpush3.bf16.msra.mxu1 %v4633_v7 }
 0x2fd   :  { %3840 = vmatprep.subr.bf16.mxu1 %v4585_v0 }
 0x2ff   :  { %3837 = vmatmul.mubr.msk.bf16.vlgmr.msra.gmra.mxu1 %vm356_vm1, %v534_v44 }
 0x300   :  { %3841 = vmatpush3.bf16.msra.mxu1 %v4655_v33  ;;  %3848 = vmatprep.mubr.msk.bf16.mxu1 %vm4586_vm0, %v4585_v0 }
 0x301   :  { %3842 = vmatprep.subr.bf16.mxu1 %v4585_v0 }
 0x304   :  { %3843 = vmatpush3.bf16.msra.mxu1 %v4658_v34 }
 0x305   :  { %3844 = vmatprep.subr.bf16.mxu1 %v4585_v0 }
 0x308   :  { %3845 = vmatpush3.bf16.msra.mxu1 %v4664_v35 }
 0x309   :  { %3846 = vmatprep.subr.bf16.mxu1 %v4585_v0 }
 0x30c   :  { %3847 = vmatpush3.bf16.msra.mxu1 %v4671_v37 }
 0x30d   :  { %3852 = vmatprep.subr.bf16.mxu1 %v4585_v0 }
 0x3b7   :  { %v495_v47 = vpop.f32.mrf.mxu1 }
 0x3b8   :  { %v496_v48 = vadd.f32 %v4704_v45, %v495_v47 }
 0x3b9   :  { %v3830_v49 = vpop.f32.mrf.mxu1 }
 0x3ba   :  { %4263 = vtanh.f32 %v496_v48  ;;  %v501_v61 = vmul.f32 0.5, %v496_v48 }
 0x3bb   :  { %v498_v51 = vpop.f32.mrf.mxu1 }
 0x3bd   :  { %v3831_v52 = vpop.f32.mrf.mxu1 }
 0x3bf   :  { %v572_v54 = vpop.f32.mrf.mxu1 }
 0x3c0   :  { %v578_v55 = vadd.f32 %v572_v54, %v234_v53 }
 0x3c1   :  { %v3838_v56 = vpop.f32.mrf.mxu1 }
 0x3c2   :  { %4265 = vtanh.f32 %v578_v55  ;;  %v579_v62 = vmul.f32 0.5, %v578_v55 }
 0x3c3   :  { %v575_v57 = vpop.f32.mrf.mxu1  ;;  %4267 = vtanh.f32 %v501_v61 }
 0x3c4   :  { %4269 = vtanh.f32 %v579_v62 }
 0x3c5   :  { %v3839_v58 = vpop.f32.mrf.mxu1 }
 0x3c7   :  { %v4264_v59 = vpop.eup %4263 }
 0x3c8   :  { %508 = vrot.lane.b32.xlu1 %v4264_v59, %s4582_s18 }
 0x3cf   :  { %v4266_v60 = vpop.eup %4265 }
 0x3d0   :  { %586 = vrot.lane.b32.xlu0 %v4266_v60, %s4582_s18  ;;  %v4268_v63 = vpop.eup %4267 }
 0x3d1   :  { %v503_v2 = vmul.f32 0.5, %v4268_v63  ;;  %v4270_v4 = vpop.eup %4269 }
 0x3d2   :  { %v581_v9 = vmul.f32 0.5, %v4270_v4 }
 0x3d3   :  { %v504_v3 = vadd.f32 0.5, %v503_v2 }
 0x3d4   :  { %v582_v10 = vadd.f32 0.5, %v581_v9 }
 0x3d5   :  { %v506_v13 = vmul.f32 0.0, %v504_v3 }
 0x3d6   :  { %v584_v16 = vmul.f32 %v582_v10, %v4652_v32 }
 0x43a   :  { %v509_v6 = vpop.permute.xlu1 %508 }
 0x43b   :  { %v511_v8 = vmul.f32 %v509_v6, %v504_v3 }
 0x43d   :  { %513 = vrot.lane.b32.xlu1 %v511_v8, %s4588_s27 }
 0x442   :  { %v587_v11 = vpop.permute.xlu0 %586 }
 0x443   :  { %v589_v12 = vmul.f32 %v587_v11, %v582_v10  ;;  %v4248_v11 = vld [vmem:[#allocation3 + $0x18] sm:$0xff]  }
 0x445   :  { %591 = vrot.lane.b32.xlu0 %v589_v12, %s4588_s27  ;;  %v4249_v12 = vld [vmem:[#allocation3 + $0x20] sm:$0xff]  }
 0x4af   :  { %v514_v14 = vpop.permute.xlu1 %513 }
 0x4b0   :  { %v4714_v15 = vadd.f32 %v514_v14, %v506_v13  ;;  %v4250_v14 = vld [vmem:[#allocation3 + $0x28] sm:$0xff]  }
 0x4b2   :  { %4271 = vtanh.f32 %v4714_v15 }
 0x4b7   :  { %v592_v17 = vpop.permute.xlu0 %591 }
 0x4b8   :  { %v4718_v20 = vadd.f32 %v592_v17, %v584_v16  ;;  %v4252_v16 = vld [vmem:[#allocation3 + $0x38] sm:$0xff]   ;;  %v4253_v17 = vld [vmem:[#allocation3 + $0x40] sm:$0xff]  }
 0x4ba   :  { %4273 = vtanh.f32 %v4718_v20 }
 0x4bf   :  { %v4272_v21 = vpop.eup %4271 }
 0x4c0   :  { %519 = vrot.lane.b32.xlu1 %v4272_v21, %s4582_s18 }
 0x4c7   :  { %v4274_v22 = vpop.eup %4273 }
 0x4c8   :  { %597 = vrot.lane.b32.xlu0 %v4274_v22, %s4582_s18 }
 0x532   :  { %v520_v23 = vpop.permute.xlu1 %519 }
 0x533   :  { %v4723_v24 = vmul.f32 %v520_v23, %v504_v3 }
 0x535   :  { %606 = vrot.lane.b32.xlu0 %v4723_v24, %s4582_s18 }
 0x53a   :  { %v598_v25 = vpop.permute.xlu0 %597 }
 0x53b   :  { %v600_v26 = vmul.f32 %v598_v25, %v582_v10  ;;  %v4247_v10 = vld [vmem:[#allocation3 + $0x10] sm:$0xff]  }
 0x53c   :  { %3796 = vmatprep.mubr.bf16.mxu0 %v4247_v10 }
 0x53d   :  { %602 = vrot.lane.b32.xlu1 %v600_v26, %s4588_s27  ;;  %v684_v27 = vpack.c.bf16 %v600_v26, %v600_v26  ;;  %3797 = vmatmul.mubr.bf16.gmra.mxu0 %v4248_v11 }
 0x53e   :  { %3800 = vmatprep.mubr.bf16.mxu0 %v4249_v12 }
 0x541   :  { %686 = vrot.lane.b32.xlu1 %v684_v27, %s4588_s27 }
 0x545   :  { %3801 = vmatmul.mubr.bf16.gmra.mxu0 %v4250_v14 }
 0x5a7   :  { %v607_v28 = vpop.permute.xlu0 %606 }
 0x5af   :  { %v603_v29 = vpop.permute.xlu1 %602 }
 0x5b0   :  { %v609_v30 = vsel %vm356_vm1, %v603_v29, %v607_v28 }
 0x5b1   :  { %v610_v31 = vpack.c.bf16 %v609_v30, %v609_v30 }
 0x5b3   :  { %3849 = vmatmul.mubr.msk.bf16.vlgmr.msra.gmra.mxu1 %vm457_vm2, %v610_v31  ;;  %v687_v32 = vpop.permute.xlu1 %686 }
 0x5b4   :  { %3853 = vmatpush3.bf16.msra.mxu1 %v4630_v5  ;;  %3856 = vmatprep.mubr.msk.bf16.mxu1 %vm4586_vm0, %v4585_v0 }
 0x5b5   :  { %3854 = vmatprep.subr.bf16.mxu1 %v4585_v0 }
 0x5b8   :  { %3855 = vmatpush3.bf16.msra.mxu1 %v4633_v7 }
 0x5b9   :  { %3872 = vmatprep.subr.bf16.mxu1 %v4585_v0 }
 0x5bb   :  { %3857 = vmatmul.mubr.msk.bf16.vlgmr.msra.gmra.mxu1 %vm356_vm1, %v687_v32 }
 0x5bc   :  { %3873 = vmatpush3.bf16.msra.mxu1 %v4630_v5  ;;  %3876 = vmatprep.mubr.msk.bf16.mxu1 %vm4586_vm0, %v4585_v0 }
 0x5bd   :  { %3874 = vmatprep.subr.bf16.mxu1 %v4585_v0 }
 0x5c0   :  { %3875 = vmatpush3.bf16.msra.mxu1 %v4633_v7 }
 0x5c1   :  { %3880 = vmatprep.subr.bf16.mxu1 %v4585_v0 }
 0x5fd   :  { %v4788_v32 = vpop.f32.mrf.mxu0 }
 0x673   :  { %v648_v36 = vpop.f32.mrf.mxu1 }
 0x674   :  { %v649_v38 = vadd.f32 %v4704_v45, %v648_v36  ;;  %v4790_v36 = vpop.f32.mrf.mxu0 }
 0x675   :  { %v3850_v39 = vpop.f32.mrf.mxu1 }
 0x676   :  { %4275 = vtanh.f32 %v649_v38  ;;  %v654_v52 = vmul.f32 0.5, %v649_v38  ;;  %v4792_v38 = vpop.f32.mrf.mxu0 }
 0x677   :  { %v651_v40 = vpop.f32.mrf.mxu1 }
 0x678   :  { %v4794_v39 = vpop.f32.mrf.mxu0 }
 0x679   :  { %v3851_v41 = vpop.f32.mrf.mxu1 }
 0x67a   :  { %v4796_v40 = vpop.f32.mrf.mxu0 }
 0x67b   :  { %v725_v43 = vpop.f32.mrf.mxu1 }
 0x67c   :  { %v731_v44 = vadd.f32 %v725_v43, %v239_v42  ;;  %v4798_v41 = vpop.f32.mrf.mxu0 }
 0x67d   :  { %v3858_v47 = vpop.f32.mrf.mxu1 }
 0x67e   :  { %4277 = vtanh.f32 %v731_v44  ;;  %v732_v53 = vmul.f32 0.5, %v731_v44  ;;  %v4800_v42 = vpop.f32.mrf.mxu0 }
 0x67f   :  { %v728_v48 = vpop.f32.mrf.mxu1  ;;  %4279 = vtanh.f32 %v654_v52 }
 0x680   :  { %4281 = vtanh.f32 %v732_v53  ;;  %v4802_v43 = vpop.f32.mrf.mxu0 }
 0x681   :  { %v3859_v49 = vpop.f32.mrf.mxu1 }
 0x683   :  { %v4276_v50 = vpop.eup %4275 }
 0x684   :  { %661 = vrot.lane.b32.xlu0 %v4276_v50, %s4582_s18 }
 0x68b   :  { %v4278_v51 = vpop.eup %4277 }
 0x68c   :  { %739 = vrot.lane.b32.xlu1 %v4278_v51, %s4582_s18  ;;  %v4280_v54 = vpop.eup %4279 }
 0x68d   :  { %v656_v55 = vmul.f32 0.5, %v4280_v54  ;;  %v4282_v18 = vpop.eup %4281  ;;  %v242_v54 = vadd.f32 %v4706_v46, %v4647_v19 }
 0x68e   :  { %v734_v59 = vmul.f32 0.5, %v4282_v18 }
 0x68f   :  { %v657_v56 = vadd.f32 0.5, %v656_v55 }
 0x690   :  { %v735_v60 = vadd.f32 0.5, %v734_v59 }
 0x691   :  { %v659_v63 = vmul.f32 %v657_v56, %v4714_v15  ;;  %v4251_v15 = vld [vmem:[#allocation3 + $0x30] sm:$0xff]  }
 0x692   :  { %v737_v4 = vmul.f32 %v735_v60, %v4718_v20  ;;  %3804 = vmatprep.mubr.bf16.mxu0 %v4251_v15  ;;  %v4254_v20 = vld [vmem:[#allocation3 + $0x48] sm:$0xff]  }
 0x693   :  { %3805 = vmatmul.mubr.bf16.gmra.mxu0 %v4252_v16 }
 0x694   :  { %3808 = vmatprep.mubr.bf16.mxu0 %v4253_v17 }
 0x69b   :  { %3809 = vmatmul.mubr.bf16.gmra.mxu0 %v4254_v20 }
 0x69c   :  { %3868 = vmatprep.mubr.msk.bf16.mxu0 %vm4586_vm0, %v4585_v0 }
 0x6f6   :  { %v662_v57 = vpop.permute.xlu0 %661 }
 0x6f7   :  { %v664_v58 = vmul.f32 %v662_v57, %v657_v56 }
 0x6f9   :  { %666 = vrot.lane.b32.xlu0 %v664_v58, %s4588_s27 }
 0x6fe   :  { %v740_v61 = vpop.permute.xlu1 %739 }
 0x6ff   :  { %v742_v62 = vmul.f32 %v740_v61, %v735_v60 }
 0x701   :  { %744 = vrot.lane.b32.xlu1 %v742_v62, %s4588_s27 }
 0x753   :  { %v4804_v44 = vpop.f32.mrf.mxu0 }
 0x755   :  { %v4806_v47 = vpop.f32.mrf.mxu0 }
 0x757   :  { %v4808_v48 = vpop.f32.mrf.mxu0 }
 0x759   :  { %v4810_v49 = vpop.f32.mrf.mxu0 }
 0x75b   :  { %v4812_v50 = vpop.f32.mrf.mxu0 }
 0x75d   :  { %v4814_v51 = vpop.f32.mrf.mxu0 }
 0x75f   :  { %v4816_v52 = vpop.f32.mrf.mxu0 }
 0x761   :  { %v4818_v53 = vpop.f32.mrf.mxu0 }
 0x76b   :  { %v667_v2 = vpop.permute.xlu0 %666 }
 0x76c   :  { %v4752_v3 = vadd.f32 %v667_v2, %v659_v63 }
 0x76e   :  { %4283 = vtanh.f32 %v4752_v3 }
 0x773   :  { %v745_v6 = vpop.permute.xlu1 %744 }
 0x774   :  { %v4756_v8 = vadd.f32 %v745_v6, %v737_v4 }
 0x776   :  { %4285 = vtanh.f32 %v4756_v8 }
 0x77b   :  { %v4284_v9 = vpop.eup %4283 }
 0x77c   :  { %672 = vrot.lane.b32.xlu0 %v4284_v9, %s4582_s18 }
 0x783   :  { %v4286_v13 = vpop.eup %4285 }
 0x784   :  { %750 = vrot.lane.b32.xlu1 %v4286_v13, %s4582_s18 }
 0x7ee   :  { %v673_v21 = vpop.permute.xlu0 %672 }
 0x7ef   :  { %v4763_v22 = vmul.f32 %v673_v21, %v657_v56 }
 0x7f1   :  { %759 = vrot.lane.b32.xlu1 %v4763_v22, %s4582_s18 }
 0x7f6   :  { %v751_v23 = vpop.permute.xlu1 %750 }
 0x7f7   :  { %v753_v25 = vmul.f32 %v751_v23, %v735_v60 }
 0x7f9   :  { %755 = vrot.lane.b32.xlu0 %v753_v25, %s4588_s27  ;;  %v837_v26 = vpack.c.bf16 %v753_v25, %v753_v25 }
 0x7fd   :  { %839 = vrot.lane.b32.xlu0 %v837_v26, %s4588_s27 }
 0x863   :  { %v760_v27 = vpop.permute.xlu1 %759 }
 0x86b   :  { %v756_v28 = vpop.permute.xlu0 %755 }
 0x86c   :  { %v762_v29 = vsel %vm356_vm1, %v756_v28, %v760_v27 }
 0x86d   :  { %v763_v30 = vpack.c.bf16 %v762_v29, %v762_v29 }
 0x86f   :  { %v840_v31 = vpop.permute.xlu0 %839  ;;  %3869 = vmatmul.mubr.msk.bf16.vlgmr.msra.gmra.mxu0 %vm457_vm2, %v763_v30 }
 0x870   :  { %3877 = vmatmul.mubr.msk.bf16.vlgmr.msra.gmra.mxu1 %vm356_vm1, %v840_v31  ;;  %3893 = vmatpush3.bf16.msra.mxu0 %v4630_v5 }
 0x871   :  { %3881 = vmatpush3.bf16.msra.mxu1 %v4655_v33  ;;  %3894 = vmatprep.subr.bf16.mxu0 %v4585_v0 }
 0x872   :  { %3882 = vmatprep.subr.bf16.mxu1 %v4585_v0  ;;  %3888 = vmatprep.mubr.msk.bf16.mxu1 %vm4586_vm0, %v4585_v0 }
 0x873   :  { %3896 = vmatprep.mubr.msk.bf16.mxu0 %vm4586_vm0, %v4585_v0 }
 0x874   :  { %3895 = vmatpush3.bf16.msra.mxu0 %v4633_v7 }
 0x875   :  { %3883 = vmatpush3.bf16.msra.mxu1 %v4658_v34  ;;  %3900 = vmatprep.subr.bf16.mxu0 %v4585_v0 }
 0x876   :  { %3884 = vmatprep.subr.bf16.mxu1 %v4585_v0 }
 0x879   :  { %3885 = vmatpush3.bf16.msra.mxu1 %v4664_v35 }
 0x87a   :  { %3886 = vmatprep.subr.bf16.mxu1 %v4585_v0 }
 0x87d   :  { %3887 = vmatpush3.bf16.msra.mxu1 %v4671_v37 }
 0x87e   :  { %3912 = vmatprep.subr.bf16.mxu1 %v4585_v0 }
 0x92f   :  { %v801_v55 = vpop.f32.mrf.mxu0 }
 0x930   :  { %v802_v56 = vadd.f32 %v4704_v45, %v801_v55  ;;  %v878_v18 = vpop.f32.mrf.mxu1 }
 0x931   :  { %v884_v57 = vadd.f32 %v878_v18, %v242_v54  ;;  %v3870_v58 = vpop.f32.mrf.mxu0 }
 0x932   :  { %4287 = vtanh.f32 %v802_v56  ;;  %v3878_v59 = vpop.f32.mrf.mxu1  ;;  %v807_v46 = vmul.f32 0.5, %v802_v56 }
 0x933   :  { %4289 = vtanh.f32 %v884_v57  ;;  %v804_v60 = vpop.f32.mrf.mxu0  ;;  %v885_v6 = vmul.f32 0.5, %v884_v57 }
 0x934   :  { %v881_v61 = vpop.f32.mrf.mxu1  ;;  %4291 = vtanh.f32 %v807_v46  ;;  %v247_v60 = vadd.f32 %v4647_v19, %v4790_v36 }
 0x935   :  { %v3871_v62 = vpop.f32.mrf.mxu0  ;;  %4293 = vtanh.f32 %v885_v6 }
 0x936   :  { %v3879_v63 = vpop.f32.mrf.mxu1 }
 0x93f   :  { %v4288_v2 = vpop.eup %4287 }
 0x940   :  { %v4290_v4 = vpop.eup %4289  ;;  %814 = vrot.lane.b32.xlu1 %v4288_v2, %s4582_s18 }
 0x941   :  { %892 = vrot.lane.b32.xlu0 %v4290_v4, %s4582_s18  ;;  %v4292_v9 = vpop.eup %4291 }
 0x942   :  { %v4294_v10 = vpop.eup %4293  ;;  %v809_v11 = vmul.f32 0.5, %v4292_v9 }
 0x943   :  { %v887_v12 = vmul.f32 0.5, %v4294_v10 }
 0x944   :  { %v810_v13 = vadd.f32 0.5, %v809_v11 }
 0x945   :  { %v888_v15 = vadd.f32 0.5, %v887_v12 }
 0x946   :  { %v812_v21 = vmul.f32 %v810_v13, %v4752_v3 }
 0x947   :  { %v890_v25 = vmul.f32 %v888_v15, %v4756_v8 }
 0x9b2   :  { %v815_v14 = vpop.permute.xlu1 %814 }
 0x9b3   :  { %v817_v16 = vmul.f32 %v815_v14, %v810_v13  ;;  %v893_v17 = vpop.permute.xlu0 %892 }
 0x9b4   :  { %v895_v20 = vmul.f32 %v893_v17, %v888_v15 }
 0x9b5   :  { %819 = vrot.lane.b32.xlu1 %v817_v16, %s4588_s27 }
 0x9b6   :  { %897 = vrot.lane.b32.xlu0 %v895_v20, %s4588_s27 }
 0xa27   :  { %v820_v23 = vpop.permute.xlu1 %819 }
 0xa28   :  { %v4829_v26 = vadd.f32 %v820_v23, %v812_v21  ;;  %v898_v27 = vpop.permute.xlu0 %897 }
 0xa29   :  { %v4831_v28 = vadd.f32 %v898_v27, %v890_v25 }
 0xa2a   :  { %4295 = vtanh.f32 %v4829_v26 }
 0xa2b   :  { %4297 = vtanh.f32 %v4831_v28 }
 0xa37   :  { %v4296_v29 = vpop.eup %4295 }
 0xa38   :  { %v4298_v30 = vpop.eup %4297  ;;  %825 = vrot.lane.b32.xlu1 %v4296_v29, %s4582_s18 }
 0xa39   :  { %903 = vrot.lane.b32.xlu0 %v4298_v30, %s4582_s18 }
 0xaaa   :  { %v826_v31 = vpop.permute.xlu1 %825 }
 0xaab   :  { %v904_v3 = vpop.permute.xlu0 %903  ;;  %v4837_v54 = vmul.f32 %v826_v31, %v810_v13 }
 0xaac   :  { %v906_v8 = vmul.f32 %v904_v3, %v888_v15 }
 0xaad   :  { %912 = vrot.lane.b32.xlu0 %v4837_v54, %s4582_s18 }
 0xaae   :  { %908 = vrot.lane.b32.xlu1 %v906_v8, %s4588_s27  ;;  %v990_v55 = vpack.c.bf16 %v906_v8, %v906_v8 }
 0xab2   :  { %992 = vrot.lane.b32.xlu1 %v990_v55, %s4588_s27 }
 0xb1f   :  { %v913_v56 = vpop.permute.xlu0 %912 }
 0xb20   :  { %v909_v18 = vpop.permute.xlu1 %908 }
 0xb21   :  { %v915_v57 = vsel %vm356_vm1, %v909_v18, %v913_v56 }
 0xb22   :  { %v916_v58 = vpack.c.bf16 %v915_v57, %v915_v57 }
 0xb24   :  { %v993_v59 = vpop.permute.xlu1 %992  ;;  %3889 = vmatmul.mubr.msk.bf16.vlgmr.msra.gmra.mxu1 %vm457_vm2, %v916_v58 }
 0xb25   :  { %3897 = vmatmul.mubr.msk.bf16.vlgmr.msra.gmra.mxu0 %vm356_vm1, %v993_v59  ;;  %3913 = vmatpush3.bf16.msra.mxu1 %v4630_v5 }
 0xb26   :  { %3901 = vmatpush3.bf16.msra.mxu0 %v4655_v33  ;;  %3914 = vmatprep.subr.bf16.mxu1 %v4585_v0 }
 0xb27   :  { %3902 = vmatprep.subr.bf16.mxu0 %v4585_v0  ;;  %3908 = vmatprep.mubr.msk.bf16.mxu0 %vm4586_vm0, %v4585_v0 }
 0xb28   :  { %3916 = vmatprep.mubr.msk.bf16.mxu1 %vm4586_vm0, %v4585_v0 }
 0xb29   :  { %3915 = vmatpush3.bf16.msra.mxu1 %v4633_v7 }
 0xb2a   :  { %3903 = vmatpush3.bf16.msra.mxu0 %v4658_v34  ;;  %3920 = vmatprep.subr.bf16.mxu1 %v4585_v0 }
 0xb2b   :  { %3904 = vmatprep.subr.bf16.mxu0 %v4585_v0 }
 0xb2e   :  { %3905 = vmatpush3.bf16.msra.mxu0 %v4664_v35 }
 0xb2f   :  { %3906 = vmatprep.subr.bf16.mxu0 %v4585_v0 }
 0xb32   :  { %3907 = vmatpush3.bf16.msra.mxu0 %v4671_v37 }
 0xb33   :  { %3932 = vmatprep.subr.bf16.mxu0 %v4585_v0 }
 0xbe4   :  { %v954_v61 = vpop.f32.mrf.mxu1 }
 0xbe5   :  { %v955_v62 = vadd.f32 %v4704_v45, %v954_v61  ;;  %v1031_v63 = vpop.f32.mrf.mxu0 }
 0xbe6   :  { %v1037_v2 = vadd.f32 %v1031_v63, %v247_v60  ;;  %v3890_v4 = vpop.f32.mrf.mxu1 }
 0xbe7   :  { %4299 = vtanh.f32 %v955_v62  ;;  %v3898_v46 = vpop.f32.mrf.mxu0  ;;  %v960_v36 = vmul.f32 0.5, %v955_v62 }
 0xbe8   :  { %4301 = vtanh.f32 %v1037_v2  ;;  %v957_v6 = vpop.f32.mrf.mxu1  ;;  %v1038_v14 = vmul.f32 0.5, %v1037_v2 }
 0xbe9   :  { %v1034_v9 = vpop.f32.mrf.mxu0  ;;  %4303 = vtanh.f32 %v960_v36 }
 0xbea   :  { %v3891_v10 = vpop.f32.mrf.mxu1  ;;  %4305 = vtanh.f32 %v1038_v14 }
 0xbeb   :  { %v3899_v11 = vpop.f32.mrf.mxu0 }
 0xbf4   :  { %v4300_v12 = vpop.eup %4299 }
 0xbf5   :  { %v4302_v13 = vpop.eup %4301  ;;  %967 = vrot.lane.b32.xlu0 %v4300_v12, %s4582_s18 }
 0xbf6   :  { %1045 = vrot.lane.b32.xlu1 %v4302_v13, %s4582_s18  ;;  %v4304_v15 = vpop.eup %4303 }
 0xbf7   :  { %v4306_v16 = vpop.eup %4305  ;;  %v962_v17 = vmul.f32 0.5, %v4304_v15 }
 0xbf8   :  { %v1040_v20 = vmul.f32 0.5, %v4306_v16 }
 0xbf9   :  { %v963_v21 = vadd.f32 0.5, %v962_v17 }
 0xbfa   :  { %v1041_v25 = vadd.f32 0.5, %v1040_v20 }
 0xbfb   :  { %v965_v31 = vmul.f32 %v963_v21, %v4829_v26 }
 0xbfc   :  { %v1043_v8 = vmul.f32 %v1041_v25, %v4831_v28 }
 0xc67   :  { %v968_v23 = vpop.permute.xlu0 %967 }
 0xc68   :  { %v970_v27 = vmul.f32 %v968_v23, %v963_v21  ;;  %v1046_v29 = vpop.permute.xlu1 %1045 }
 0xc69   :  { %v1048_v30 = vmul.f32 %v1046_v29, %v1041_v25 }
 0xc6a   :  { %972 = vrot.lane.b32.xlu0 %v970_v27, %s4588_s27 }
 0xc6b   :  { %1050 = vrot.lane.b32.xlu1 %v1048_v30, %s4588_s27 }
 0xcdc   :  { %v973_v3 = vpop.permute.xlu0 %972 }
 0xcdd   :  { %v4871_v55 = vadd.f32 %v973_v3, %v965_v31  ;;  %v1051_v56 = vpop.permute.xlu1 %1050 }
 0xcde   :  { %v4873_v18 = vadd.f32 %v1051_v56, %v1043_v8 }
 0xcdf   :  { %4307 = vtanh.f32 %v4871_v55 }
 0xce0   :  { %4309 = vtanh.f32 %v4873_v18 }
 0xcec   :  { %v4308_v57 = vpop.eup %4307 }
 0xced   :  { %v4310_v58 = vpop.eup %4309  ;;  %978 = vrot.lane.b32.xlu0 %v4308_v57, %s4582_s18 }
 0xcee   :  { %1056 = vrot.lane.b32.xlu1 %v4310_v58, %s4582_s18 }
 0xd5f   :  { %v979_v59 = vpop.permute.xlu0 %978 }
 0xd60   :  { %v1057_v26 = vpop.permute.xlu1 %1056  ;;  %v4879_v60 = vmul.f32 %v979_v59, %v963_v21 }
 0xd61   :  { %v1059_v28 = vmul.f32 %v1057_v26, %v1041_v25 }
 0xd62   :  { %1065 = vrot.lane.b32.xlu1 %v4879_v60, %s4582_s18 }
 0xd63   :  { %1061 = vrot.lane.b32.xlu0 %v1059_v28, %s4588_s27  ;;  %v1143_v61 = vpack.c.bf16 %v1059_v28, %v1059_v28 }
 0xd67   :  { %1145 = vrot.lane.b32.xlu0 %v1143_v61, %s4588_s27 }
 0xdd4   :  { %v1066_v62 = vpop.permute.xlu1 %1065 }
 0xdd5   :  { %v1062_v63 = vpop.permute.xlu0 %1061 }
 0xdd6   :  { %v1068_v2 = vsel %vm356_vm1, %v1062_v63, %v1066_v62 }
 0xdd7   :  { %v1069_v4 = vpack.c.bf16 %v1068_v2, %v1068_v2 }
 0xdd9   :  { %3909 = vmatmul.mubr.msk.bf16.vlgmr.msra.gmra.mxu0 %vm457_vm2, %v1069_v4  ;;  %v1146_v46 = vpop.permute.xlu0 %1145 }
 0xdda   :  { %3917 = vmatmul.mubr.msk.bf16.vlgmr.msra.gmra.mxu1 %vm356_vm1, %v1146_v46  ;;  %3933 = vmatpush3.bf16.msra.mxu0 %v4630_v5  ;;  %v250_v5 = vadd.f32 %v4647_v19, %v4794_v39 }
 0xddb   :  { %3921 = vmatpush3.bf16.msra.mxu1 %v4655_v33  ;;  %3934 = vmatprep.subr.bf16.mxu0 %v4585_v0 }
 0xddc   :  { %3922 = vmatprep.subr.bf16.mxu1 %v4585_v0  ;;  %3928 = vmatprep.mubr.msk.bf16.mxu1 %vm4586_vm0, %v4585_v0 }
 0xddd   :  { %3936 = vmatprep.mubr.msk.bf16.mxu0 %vm4586_vm0, %v4585_v0 }
 0xdde   :  { %3935 = vmatpush3.bf16.msra.mxu0 %v4633_v7 }
 0xddf   :  { %3923 = vmatpush3.bf16.msra.mxu1 %v4658_v34  ;;  %3940 = vmatprep.subr.bf16.mxu0 %v4585_v0 }
 0xde0   :  { %3924 = vmatprep.subr.bf16.mxu1 %v4585_v0 }
 0xde3   :  { %3925 = vmatpush3.bf16.msra.mxu1 %v4664_v35 }
 0xde4   :  { %3926 = vmatprep.subr.bf16.mxu1 %v4585_v0 }
 0xde7   :  { %3927 = vmatpush3.bf16.msra.mxu1 %v4671_v37 }
 0xde8   :  { %3952 = vmatprep.subr.bf16.mxu1 %v4585_v0 }
 0xe99   :  { %v1107_v6 = vpop.f32.mrf.mxu0 }
 0xe9a   :  { %v1108_v7 = vadd.f32 %v4704_v45, %v1107_v6  ;;  %v1184_v9 = vpop.f32.mrf.mxu1 }
 0xe9b   :  { %v1190_v10 = vadd.f32 %v1184_v9, %v250_v5  ;;  %v3910_v11 = vpop.f32.mrf.mxu0 }
 0xe9c   :  { %4311 = vtanh.f32 %v1108_v7  ;;  %v3918_v12 = vpop.f32.mrf.mxu1  ;;  %v1113_v39 = vmul.f32 0.5, %v1108_v7  ;;  %v4930_v11 = vld [vmem:[#allocation6 + $0x48] sm:$0xff]  }
 0xe9d   :  { %4313 = vtanh.f32 %v1190_v10  ;;  %v1110_v13 = vpop.f32.mrf.mxu0  ;;  %v1191_v20 = vmul.f32 0.5, %v1190_v10  ;;  %v4940_v12 = vld [vmem:[#allocation6 + $0x40] sm:$0xff]  }
 0xe9e   :  { %v1187_v36 = vpop.f32.mrf.mxu1  ;;  %4315 = vtanh.f32 %v1113_v39 }
 0xe9f   :  { %v3911_v14 = vpop.f32.mrf.mxu0  ;;  %4317 = vtanh.f32 %v1191_v20 }
 0xea0   :  { %v3919_v15 = vpop.f32.mrf.mxu1 }
 0xea9   :  { %v4312_v16 = vpop.eup %4311 }
 0xeaa   :  { %v4314_v17 = vpop.eup %4313  ;;  %1120 = vrot.lane.b32.xlu1 %v4312_v16, %s4582_s18 }
 0xeab   :  { %1198 = vrot.lane.b32.xlu0 %v4314_v17, %s4582_s18  ;;  %v4316_v21 = vpop.eup %4315 }
 0xeac   :  { %v4318_v23 = vpop.eup %4317  ;;  %v1115_v25 = vmul.f32 0.5, %v4316_v21 }
 0xead   :  { %v1193_v27 = vmul.f32 0.5, %v4318_v23 }
 0xeae   :  { %v1116_v29 = vadd.f32 0.5, %v1115_v25 }
 0xeaf   :  { %v1194_v31 = vadd.f32 0.5, %v1193_v27 }
 0xeb0   :  { %v1118_v57 = vmul.f32 %v1116_v29, %v4871_v55 }
 0xeb1   :  { %v1196_v59 = vmul.f32 %v1194_v31, %v4873_v18 }
 0xf1c   :  { %v1121_v30 = vpop.permute.xlu1 %1120 }
 0xf1d   :  { %v1123_v3 = vmul.f32 %v1121_v30, %v1116_v29  ;;  %v1199_v8 = vpop.permute.xlu0 %1198 }
 0xf1e   :  { %v1201_v56 = vmul.f32 %v1199_v8, %v1194_v31 }
 0xf1f   :  { %1125 = vrot.lane.b32.xlu1 %v1123_v3, %s4588_s27 }
 0xf20   :  { %1203 = vrot.lane.b32.xlu0 %v1201_v56, %s4588_s27 }
 0xf91   :  { %v1126_v58 = vpop.permute.xlu1 %1125 }
 0xf92   :  { %v4913_v26 = vadd.f32 %v1126_v58, %v1118_v57  ;;  %v1204_v28 = vpop.permute.xlu0 %1203 }
 0xf93   :  { %v4915_v61 = vadd.f32 %v1204_v28, %v1196_v59 }
 0xf94   :  { %4319 = vtanh.f32 %v4913_v26 }
 0xf95   :  { %4321 = vtanh.f32 %v4915_v61 }
 0xfa1   :  { %v4320_v62 = vpop.eup %4319 }
 0xfa2   :  { %v4322_v63 = vpop.eup %4321  ;;  %1131 = vrot.lane.b32.xlu1 %v4320_v62, %s4582_s18 }
 0xfa3   :  { %1209 = vrot.lane.b32.xlu0 %v4322_v63, %s4582_s18 }
0x1014   :  { %v1132_v2 = vpop.permute.xlu1 %1131 }
0x1015   :  { %v1210_v55 = vpop.permute.xlu0 %1209  ;;  %v4921_v4 = vmul.f32 %v1132_v2, %v1116_v29 }
0x1016   :  { %v1212_v18 = vmul.f32 %v1210_v55, %v1194_v31 }
0x1017   :  { %1218 = vrot.lane.b32.xlu0 %v4921_v4, %s4582_s18 }
0x1018   :  { %1214 = vrot.lane.b32.xlu1 %v1212_v18, %s4588_s27  ;;  %v1296_v46 = vpack.c.bf16 %v1212_v18, %v1212_v18 }
0x101c   :  { %1298 = vrot.lane.b32.xlu1 %v1296_v46, %s4588_s27 }
0x1089   :  { %v1219_v5 = vpop.permute.xlu0 %1218 }
0x108a   :  { %v1215_v6 = vpop.permute.xlu1 %1214 }
0x108b   :  { %v1221_v7 = vsel %vm356_vm1, %v1215_v6, %v1219_v5 }
0x108c   :  { %v1222_v9 = vpack.c.bf16 %v1221_v7, %v1221_v7 }
0x108e   :  { %v1299_v10 = vpop.permute.xlu1 %1298  ;;  %3929 = vmatmul.mubr.msk.bf16.vlgmr.msra.gmra.mxu1 %vm457_vm2, %v1222_v9 }
0x108f   :  { %3937 = vmatmul.mubr.msk.bf16.vlgmr.msra.gmra.mxu0 %vm356_vm1, %v1299_v10  ;;  %3953 = vmatpush3.bf16.msra.mxu1 %v4930_v11 }
0x1090   :  { %3941 = vmatpush3.bf16.msra.mxu0 %v4655_v33  ;;  %3954 = vmatprep.subr.bf16.mxu1 %v4585_v0  ;;  %v255_v33 = vadd.f32 %v4788_v32, %v4647_v19 }
0x1091   :  { %3942 = vmatprep.subr.bf16.mxu0 %v4585_v0  ;;  %3948 = vmatprep.mubr.msk.bf16.mxu0 %vm4586_vm0, %v4585_v0 }
0x1092   :  { %3956 = vmatprep.mubr.msk.bf16.mxu1 %vm4586_vm0, %v4585_v0 }
0x1093   :  { %3955 = vmatpush3.bf16.msra.mxu1 %v4940_v12 }
0x1094   :  { %3943 = vmatpush3.bf16.msra.mxu0 %v4658_v34  ;;  %3960 = vmatprep.subr.bf16.mxu1 %v4585_v0 }
0x1095   :  { %3944 = vmatprep.subr.bf16.mxu0 %v4585_v0 }
0x1098   :  { %3945 = vmatpush3.bf16.msra.mxu0 %v4664_v35 }
0x1099   :  { %3946 = vmatprep.subr.bf16.mxu0 %v4585_v0 }
0x109c   :  { %3947 = vmatpush3.bf16.msra.mxu0 %v4671_v37 }
0x109d   :  { %3972 = vmatprep.subr.bf16.mxu0 %v4585_v0 }
0x114e   :  { %v1260_v13 = vpop.f32.mrf.mxu1 }
0x114f   :  { %v1261_v36 = vadd.f32 %v4704_v45, %v1260_v13  ;;  %v1337_v14 = vpop.f32.mrf.mxu0 }
0x1150   :  { %v1343_v34 = vadd.f32 %v1337_v14, %v255_v33  ;;  %v3930_v15 = vpop.f32.mrf.mxu1  ;;  %v4977_v14 = vld [vmem:[#allocation6 + $0x68] sm:$0xff]  }
0x1151   :  { %4323 = vtanh.f32 %v1261_v36  ;;  %v3938_v16 = vpop.f32.mrf.mxu0  ;;  %v1266_v19 = vmul.f32 0.5, %v1261_v36  ;;  %v4992_v15 = vld [vmem:[#allocation6 + $0x58] sm:$0xff]  }
0x1152   :  { %4325 = vtanh.f32 %v1343_v34  ;;  %v1263_v17 = vpop.f32.mrf.mxu1  ;;  %v1344_v32 = vmul.f32 0.5, %v1343_v34  ;;  %v4987_v34 = vld [vmem:[#allocation6 + $0x60] sm:$0xff]   ;;  %v5001_v16 = vld [vmem:[%s5638_s3] ss:$0 sm:$0xff] }
0x1153   :  { %v1340_v35 = vpop.f32.mrf.mxu0  ;;  %4327 = vtanh.f32 %v1266_v19  ;;  %v258_v17 = vadd.f32 %v5001_v16, %v4792_v38 }
0x1154   :  { %v3931_v39 = vpop.f32.mrf.mxu1  ;;  %4329 = vtanh.f32 %v1344_v32 }
0x1155   :  { %v3939_v20 = vpop.f32.mrf.mxu0 }
0x115e   :  { %v4324_v21 = vpop.eup %4323 }
0x115f   :  { %v4326_v23 = vpop.eup %4325  ;;  %1273 = vrot.lane.b32.xlu0 %v4324_v21, %s4582_s18 }
0x1160   :  { %1351 = vrot.lane.b32.xlu1 %v4326_v23, %s4582_s18  ;;  %v4328_v25 = vpop.eup %4327 }
0x1161   :  { %v4330_v27 = vpop.eup %4329  ;;  %v1268_v29 = vmul.f32 0.5, %v4328_v25 }
0x1162   :  { %v1346_v30 = vmul.f32 0.5, %v4330_v27 }
0x1163   :  { %v1269_v31 = vadd.f32 0.5, %v1268_v29 }
0x1164   :  { %v1347_v8 = vadd.f32 0.5, %v1346_v30 }
0x1165   :  { %v1271_v59 = vmul.f32 %v1269_v31, %v4913_v26 }
0x1166   :  { %v1349_v62 = vmul.f32 %v1347_v8, %v4915_v61 }
0x11d1   :  { %v1274_v3 = vpop.permute.xlu0 %1273 }
0x11d2   :  { %v1276_v56 = vmul.f32 %v1274_v3, %v1269_v31  ;;  %v1352_v57 = vpop.permute.xlu1 %1351 }
0x11d3   :  { %v1354_v58 = vmul.f32 %v1352_v57, %v1347_v8 }
0x11d4   :  { %1278 = vrot.lane.b32.xlu0 %v1276_v56, %s4588_s27 }
0x11d5   :  { %1356 = vrot.lane.b32.xlu1 %v1354_v58, %s4588_s27 }
0x1246   :  { %v1279_v28 = vpop.permute.xlu0 %1278 }
0x1247   :  { %v4959_v63 = vadd.f32 %v1279_v28, %v1271_v59  ;;  %v1357_v2 = vpop.permute.xlu1 %1356 }
0x1248   :  { %v4961_v55 = vadd.f32 %v1357_v2, %v1349_v62 }
0x1249   :  { %4331 = vtanh.f32 %v4959_v63 }
0x124a   :  { %4333 = vtanh.f32 %v4961_v55 }
0x1256   :  { %v4332_v18 = vpop.eup %4331 }
0x1257   :  { %v4334_v46 = vpop.eup %4333  ;;  %1284 = vrot.lane.b32.xlu0 %v4332_v18, %s4582_s18 }
0x1258   :  { %1362 = vrot.lane.b32.xlu1 %v4334_v46, %s4582_s18 }
0x12c9   :  { %v1285_v5 = vpop.permute.xlu0 %1284 }
0x12ca   :  { %v1363_v26 = vpop.permute.xlu1 %1362  ;;  %v4967_v6 = vmul.f32 %v1285_v5, %v1269_v31 }
0x12cb   :  { %v1365_v61 = vmul.f32 %v1363_v26, %v1347_v8 }
0x12cc   :  { %1371 = vrot.lane.b32.xlu1 %v4967_v6, %s4582_s18 }
0x12cd   :  { %1367 = vrot.lane.b32.xlu0 %v1365_v61, %s4588_s27  ;;  %v1449_v7 = vpack.c.bf16 %v1365_v61, %v1365_v61 }
0x12d1   :  { %1451 = vrot.lane.b32.xlu0 %v1449_v7, %s4588_s27 }
0x133e   :  { %v1372_v9 = vpop.permute.xlu1 %1371 }
0x133f   :  { %v1368_v10 = vpop.permute.xlu0 %1367 }
0x1340   :  { %v1374_v33 = vsel %vm356_vm1, %v1368_v10, %v1372_v9 }
0x1341   :  { %v1375_v13 = vpack.c.bf16 %v1374_v33, %v1374_v33 }
0x1343   :  { %3949 = vmatmul.mubr.msk.bf16.vlgmr.msra.gmra.mxu0 %vm457_vm2, %v1375_v13  ;;  %v1452_v36 = vpop.permute.xlu0 %1451 }
0x1344   :  { %3957 = vmatmul.mubr.msk.bf16.vlgmr.msra.gmra.mxu1 %vm356_vm1, %v1452_v36  ;;  %3973 = vmatpush3.bf16.msra.mxu0 %v4930_v11 }
0x1345   :  { %3961 = vmatpush3.bf16.msra.mxu1 %v4977_v14  ;;  %3974 = vmatprep.subr.bf16.mxu0 %v4585_v0 }
0x1346   :  { %3962 = vmatprep.subr.bf16.mxu1 %v4585_v0  ;;  %3968 = vmatprep.mubr.msk.bf16.mxu1 %vm4586_vm0, %v4585_v0 }
0x1347   :  { %3976 = vmatprep.mubr.msk.bf16.mxu0 %vm4586_vm0, %v4585_v0 }
0x1348   :  { %3975 = vmatpush3.bf16.msra.mxu0 %v4940_v12 }
0x1349   :  { %3963 = vmatpush3.bf16.msra.mxu1 %v4987_v34  ;;  %3980 = vmatprep.subr.bf16.mxu0 %v4585_v0 }
0x134a   :  { %3964 = vmatprep.subr.bf16.mxu1 %v4585_v0 }
0x134d   :  { %3965 = vmatpush3.bf16.msra.mxu1 %v4992_v15 }
0x134e   :  { %3966 = vmatprep.subr.bf16.mxu1 %v4585_v0 }
0x1351   :  { %3967 = vmatpush3.bf16.msra.mxu1 %v4671_v37 }
0x1352   :  { %3992 = vmatprep.subr.bf16.mxu1 %v4585_v0 }
0x1403   :  { %v1413_v35 = vpop.f32.mrf.mxu0 }
0x1404   :  { %v1414_v39 = vadd.f32 %v4704_v45, %v1413_v35  ;;  %v1490_v20 = vpop.f32.mrf.mxu1 }
0x1405   :  { %v1496_v21 = vadd.f32 %v1490_v20, %v258_v17  ;;  %v3950_v23 = vpop.f32.mrf.mxu0 }
0x1406   :  { %4335 = vtanh.f32 %v1414_v39  ;;  %v3958_v19 = vpop.f32.mrf.mxu1  ;;  %v1419_v38 = vmul.f32 0.5, %v1414_v39  ;;  %v5043_v23 = vld [vmem:[#allocation6 + $0x50] sm:$0xff]  }
0x1407   :  { %4337 = vtanh.f32 %v1496_v21  ;;  %v1416_v37 = vpop.f32.mrf.mxu0  ;;  %v1497_v31 = vmul.f32 0.5, %v1496_v21  ;;  %v263_v19 = vadd.f32 %v5001_v16, %v4798_v41 }
0x1408   :  { %v1493_v32 = vpop.f32.mrf.mxu1  ;;  %4339 = vtanh.f32 %v1419_v38 }
0x1409   :  { %v3951_v25 = vpop.f32.mrf.mxu0  ;;  %4341 = vtanh.f32 %v1497_v31  ;;  %v5052_v32 = vld [vmem:[%s5638_s3 + $0x1] ss:$0 sm:$0xff] }
0x140a   :  { %v3959_v27 = vpop.f32.mrf.mxu1 }
0x1413   :  { %v4336_v29 = vpop.eup %4335 }
0x1414   :  { %v4338_v30 = vpop.eup %4337  ;;  %1426 = vrot.lane.b32.xlu1 %v4336_v29, %s4582_s18 }
0x1415   :  { %1504 = vrot.lane.b32.xlu0 %v4338_v30, %s4582_s18  ;;  %v4340_v45 = vpop.eup %4339 }
0x1416   :  { %v4342_v3 = vpop.eup %4341  ;;  %v1421_v8 = vmul.f32 0.5, %v4340_v45 }
0x1417   :  { %v1499_v56 = vmul.f32 0.5, %v4342_v3 }
0x1418   :  { %v1422_v57 = vadd.f32 0.5, %v1421_v8 }
0x1419   :  { %v1500_v59 = vadd.f32 0.5, %v1499_v56 }
0x141a   :  { %v1424_v18 = vmul.f32 %v1422_v57, %v4959_v63 }
0x141b   :  { %v1502_v5 = vmul.f32 %v1500_v59, %v4961_v55 }
0x1486   :  { %v1427_v58 = vpop.permute.xlu1 %1426 }
0x1487   :  { %v1429_v28 = vmul.f32 %v1427_v58, %v1422_v57  ;;  %v1505_v62 = vpop.permute.xlu0 %1504 }
0x1488   :  { %v1507_v2 = vmul.f32 %v1505_v62, %v1500_v59 }
0x1489   :  { %1431 = vrot.lane.b32.xlu1 %v1429_v28, %s4588_s27 }
0x148a   :  { %1509 = vrot.lane.b32.xlu0 %v1507_v2, %s4588_s27 }
0x14fb   :  { %v1432_v46 = vpop.permute.xlu1 %1431 }
0x14fc   :  { %v5012_v26 = vadd.f32 %v1432_v46, %v1424_v18  ;;  %v1510_v61 = vpop.permute.xlu0 %1509 }
0x14fd   :  { %v5014_v7 = vadd.f32 %v1510_v61, %v1502_v5 }
0x14fe   :  { %4343 = vtanh.f32 %v5012_v26 }
0x14ff   :  { %4345 = vtanh.f32 %v5014_v7 }
0x150b   :  { %v4344_v9 = vpop.eup %4343 }
0x150c   :  { %v4346_v10 = vpop.eup %4345  ;;  %1437 = vrot.lane.b32.xlu1 %v4344_v9, %s4582_s18 }
0x150d   :  { %1515 = vrot.lane.b32.xlu0 %v4346_v10, %s4582_s18 }
0x157e   :  { %v1438_v33 = vpop.permute.xlu1 %1437 }
0x157f   :  { %v1516_v63 = vpop.permute.xlu0 %1515  ;;  %v5020_v13 = vmul.f32 %v1438_v33, %v1422_v57 }
0x1580   :  { %v1518_v55 = vmul.f32 %v1516_v63, %v1500_v59 }
0x1581   :  { %1524 = vrot.lane.b32.xlu0 %v5020_v13, %s4582_s18 }
0x1582   :  { %1520 = vrot.lane.b32.xlu1 %v1518_v55, %s4588_s27  ;;  %v1602_v36 = vpack.c.bf16 %v1518_v55, %v1518_v55 }
0x1586   :  { %1604 = vrot.lane.b32.xlu1 %v1602_v36, %s4588_s27 }
0x15f3   :  { %v1525_v17 = vpop.permute.xlu0 %1524 }
0x15f4   :  { %v1521_v35 = vpop.permute.xlu1 %1520 }
0x15f5   :  { %v1527_v39 = vsel %vm356_vm1, %v1521_v35, %v1525_v17 }
0x15f6   :  { %v1528_v20 = vpack.c.bf16 %v1527_v39, %v1527_v39 }
0x15f8   :  { %v1605_v21 = vpop.permute.xlu1 %1604  ;;  %3969 = vmatmul.mubr.msk.bf16.vlgmr.msra.gmra.mxu1 %vm457_vm2, %v1528_v20 }
0x15f9   :  { %3977 = vmatmul.mubr.msk.bf16.vlgmr.msra.gmra.mxu0 %vm356_vm1, %v1605_v21  ;;  %3993 = vmatpush3.bf16.msra.mxu1 %v4930_v11 }
0x15fa   :  { %3981 = vmatpush3.bf16.msra.mxu0 %v4977_v14  ;;  %3994 = vmatprep.subr.bf16.mxu1 %v4585_v0 }
0x15fb   :  { %3982 = vmatprep.subr.bf16.mxu0 %v4585_v0  ;;  %3988 = vmatprep.mubr.msk.bf16.mxu0 %vm4586_vm0, %v4585_v0 }
0x15fc   :  { %3996 = vmatprep.mubr.msk.bf16.mxu1 %vm4586_vm0, %v4585_v0 }
0x15fd   :  { %3995 = vmatpush3.bf16.msra.mxu1 %v4940_v12 }
0x15fe   :  { %3983 = vmatpush3.bf16.msra.mxu0 %v4987_v34  ;;  %4000 = vmatprep.subr.bf16.mxu1 %v4585_v0 }
0x15ff   :  { %3984 = vmatprep.subr.bf16.mxu0 %v4585_v0 }
0x1602   :  { %3985 = vmatpush3.bf16.msra.mxu0 %v4992_v15 }
0x1603   :  { %3986 = vmatprep.subr.bf16.mxu0 %v4585_v0 }
0x1606   :  { %3987 = vmatpush3.bf16.msra.mxu0 %v5043_v23 }
0x1607   :  { %4012 = vmatprep.subr.bf16.mxu0 %v4585_v0 }
0x16b8   :  { %v1566_v37 = vpop.f32.mrf.mxu1 }
0x16b9   :  { %v1567_v25 = vadd.f32 %v5052_v32, %v1566_v37  ;;  %v1643_v27 = vpop.f32.mrf.mxu0 }
0x16ba   :  { %v1649_v29 = vadd.f32 %v1643_v27, %v263_v19  ;;  %v3970_v30 = vpop.f32.mrf.mxu1 }
0x16bb   :  { %4347 = vtanh.f32 %v1567_v25  ;;  %v3978_v38 = vpop.f32.mrf.mxu0  ;;  %v1572_v57 = vmul.f32 0.5, %v1567_v25 }
0x16bc   :  { %4349 = vtanh.f32 %v1649_v29  ;;  %v1569_v31 = vpop.f32.mrf.mxu1  ;;  %v1650_v58 = vmul.f32 0.5, %v1649_v29 }
0x16bd   :  { %v1646_v45 = vpop.f32.mrf.mxu0  ;;  %4351 = vtanh.f32 %v1572_v57  ;;  %v266_v31 = vadd.f32 %v5001_v16, %v4802_v43 }
0x16be   :  { %v3971_v3 = vpop.f32.mrf.mxu1  ;;  %4353 = vtanh.f32 %v1650_v58 }
0x16bf   :  { %v3979_v8 = vpop.f32.mrf.mxu0 }
0x16c8   :  { %v4348_v56 = vpop.eup %4347 }
0x16c9   :  { %v4350_v41 = vpop.eup %4349  ;;  %1579 = vrot.lane.b32.xlu0 %v4348_v56, %s4582_s18 }
0x16ca   :  { %1657 = vrot.lane.b32.xlu1 %v4350_v41, %s4582_s18  ;;  %v4352_v59 = vpop.eup %4351 }
0x16cb   :  { %v4354_v28 = vpop.eup %4353  ;;  %v1574_v62 = vmul.f32 0.5, %v4352_v59 }
0x16cc   :  { %v1652_v2 = vmul.f32 0.5, %v4354_v28 }
0x16cd   :  { %v1575_v18 = vadd.f32 0.5, %v1574_v62 }
0x16ce   :  { %v1653_v5 = vadd.f32 0.5, %v1652_v2 }
0x16cf   :  { %v1577_v33 = vmul.f32 %v1575_v18, %v5012_v26 }
0x16d0   :  { %v1655_v55 = vmul.f32 %v1653_v5, %v5014_v7 }
0x173b   :  { %v1580_v46 = vpop.permute.xlu0 %1579 }
0x173c   :  { %v1582_v61 = vmul.f32 %v1580_v46, %v1575_v18  ;;  %v1658_v9 = vpop.permute.xlu1 %1657 }
0x173d   :  { %v1660_v10 = vmul.f32 %v1658_v9, %v1653_v5 }
0x173e   :  { %1584 = vrot.lane.b32.xlu0 %v1582_v61, %s4588_s27 }
0x173f   :  { %1662 = vrot.lane.b32.xlu1 %v1660_v10, %s4588_s27 }
0x17b0   :  { %v1585_v63 = vpop.permute.xlu0 %1584 }
0x17b1   :  { %v5061_v36 = vadd.f32 %v1585_v63, %v1577_v33  ;;  %v1663_v17 = vpop.permute.xlu1 %1662 }
0x17b2   :  { %v5063_v35 = vadd.f32 %v1663_v17, %v1655_v55 }
0x17b3   :  { %4355 = vtanh.f32 %v5061_v36 }
0x17b4   :  { %4357 = vtanh.f32 %v5063_v35 }
0x17c0   :  { %v4356_v39 = vpop.eup %4355 }
0x17c1   :  { %v4358_v20 = vpop.eup %4357  ;;  %1590 = vrot.lane.b32.xlu0 %v4356_v39, %s4582_s18 }
0x17c2   :  { %1668 = vrot.lane.b32.xlu1 %v4358_v20, %s4582_s18 }
0x1833   :  { %v1591_v21 = vpop.permute.xlu0 %1590 }
0x1834   :  { %v1669_v26 = vpop.permute.xlu1 %1668  ;;  %v5069_v19 = vmul.f32 %v1591_v21, %v1575_v18 }
0x1835   :  { %v1671_v7 = vmul.f32 %v1669_v26, %v1653_v5 }
0x1836   :  { %1677 = vrot.lane.b32.xlu1 %v5069_v19, %s4582_s18 }
0x1837   :  { %1673 = vrot.lane.b32.xlu0 %v1671_v7, %s4588_s27  ;;  %v1755_v37 = vpack.c.bf16 %v1671_v7, %v1671_v7 }
0x183b   :  { %1757 = vrot.lane.b32.xlu0 %v1755_v37, %s4588_s27 }
0x18a8   :  { %v1678_v25 = vpop.permute.xlu1 %1677 }
0x18a9   :  { %v1674_v27 = vpop.permute.xlu0 %1673 }
0x18aa   :  { %v1680_v29 = vsel %vm356_vm1, %v1674_v27, %v1678_v25 }
0x18ab   :  { %v1681_v30 = vpack.c.bf16 %v1680_v29, %v1680_v29 }
0x18ad   :  { %3989 = vmatmul.mubr.msk.bf16.vlgmr.msra.gmra.mxu0 %vm457_vm2, %v1681_v30  ;;  %v1758_v38 = vpop.permute.xlu0 %1757 }
0x18ae   :  { %3997 = vmatmul.mubr.msk.bf16.vlgmr.msra.gmra.mxu1 %vm356_vm1, %v1758_v38  ;;  %4013 = vmatpush3.bf16.msra.mxu0 %v4930_v11 }
0x18af   :  { %4001 = vmatpush3.bf16.msra.mxu1 %v4977_v14  ;;  %4014 = vmatprep.subr.bf16.mxu0 %v4585_v0 }
0x18b0   :  { %4002 = vmatprep.subr.bf16.mxu1 %v4585_v0  ;;  %4008 = vmatprep.mubr.msk.bf16.mxu1 %vm4586_vm0, %v4585_v0 }
0x18b1   :  { %4016 = vmatprep.mubr.msk.bf16.mxu0 %vm4586_vm0, %v4585_v0 }
0x18b2   :  { %4015 = vmatpush3.bf16.msra.mxu0 %v4940_v12 }
0x18b3   :  { %4003 = vmatpush3.bf16.msra.mxu1 %v4987_v34  ;;  %4020 = vmatprep.subr.bf16.mxu0 %v4585_v0 }
0x18b4   :  { %4004 = vmatprep.subr.bf16.mxu1 %v4585_v0 }
0x18b7   :  { %4005 = vmatpush3.bf16.msra.mxu1 %v4992_v15 }
0x18b8   :  { %4006 = vmatprep.subr.bf16.mxu1 %v4585_v0 }
0x18bb   :  { %4007 = vmatpush3.bf16.msra.mxu1 %v5043_v23 }
0x18bc   :  { %4032 = vmatprep.subr.bf16.mxu1 %v4585_v0 }
0x196d   :  { %v1719_v45 = vpop.f32.mrf.mxu0 }
0x196e   :  { %v1720_v3 = vadd.f32 %v5052_v32, %v1719_v45  ;;  %v1796_v8 = vpop.f32.mrf.mxu1 }
0x196f   :  { %v1802_v56 = vadd.f32 %v1796_v8, %v266_v31  ;;  %v3990_v41 = vpop.f32.mrf.mxu0 }
0x1970   :  { %4359 = vtanh.f32 %v1720_v3  ;;  %v3998_v57 = vpop.f32.mrf.mxu1  ;;  %v1725_v43 = vmul.f32 0.5, %v1720_v3 }
0x1971   :  { %4361 = vtanh.f32 %v1802_v56  ;;  %v1722_v58 = vpop.f32.mrf.mxu0  ;;  %v1803_v46 = vmul.f32 0.5, %v1802_v56 }
0x1972   :  { %v1799_v59 = vpop.f32.mrf.mxu1  ;;  %4363 = vtanh.f32 %v1725_v43  ;;  %v271_v58 = vadd.f32 %v5001_v16, %v4796_v40 }
0x1973   :  { %v3991_v28 = vpop.f32.mrf.mxu0  ;;  %4365 = vtanh.f32 %v1803_v46 }
0x1974   :  { %v3999_v62 = vpop.f32.mrf.mxu1 }
0x197d   :  { %v4360_v2 = vpop.eup %4359 }
0x197e   :  { %v4362_v18 = vpop.eup %4361  ;;  %1732 = vrot.lane.b32.xlu1 %v4360_v2, %s4582_s18 }
0x197f   :  { %1810 = vrot.lane.b32.xlu0 %v4362_v18, %s4582_s18  ;;  %v4364_v5 = vpop.eup %4363 }
0x1980   :  { %v4366_v61 = vpop.eup %4365  ;;  %v1727_v9 = vmul.f32 0.5, %v4364_v5 }
0x1981   :  { %v1805_v10 = vmul.f32 0.5, %v4366_v61 }
0x1982   :  { %v1728_v33 = vadd.f32 0.5, %v1727_v9 }
0x1983   :  { %v1806_v55 = vadd.f32 0.5, %v1805_v10 }
0x1984   :  { %v1730_v21 = vmul.f32 %v1728_v33, %v5061_v36 }
0x1985   :  { %v1808_v7 = vmul.f32 %v1806_v55, %v5063_v35 }
0x19f0   :  { %v1733_v63 = vpop.permute.xlu1 %1732 }
0x19f1   :  { %v1735_v17 = vmul.f32 %v1733_v63, %v1728_v33  ;;  %v1811_v39 = vpop.permute.xlu0 %1810 }
0x19f2   :  { %v1813_v20 = vmul.f32 %v1811_v39, %v1806_v55 }
0x19f3   :  { %1737 = vrot.lane.b32.xlu1 %v1735_v17, %s4588_s27 }
0x19f4   :  { %1815 = vrot.lane.b32.xlu0 %v1813_v20, %s4588_s27 }
0x1a65   :  { %v1738_v26 = vpop.permute.xlu1 %1737 }
0x1a66   :  { %v5103_v37 = vadd.f32 %v1738_v26, %v1730_v21  ;;  %v1816_v25 = vpop.permute.xlu0 %1815 }
0x1a67   :  { %v5105_v27 = vadd.f32 %v1816_v25, %v1808_v7 }
0x1a68   :  { %4367 = vtanh.f32 %v5103_v37 }
0x1a69   :  { %4369 = vtanh.f32 %v5105_v27 }
0x1a75   :  { %v4368_v29 = vpop.eup %4367 }
0x1a76   :  { %v4370_v30 = vpop.eup %4369  ;;  %1743 = vrot.lane.b32.xlu1 %v4368_v29, %s4582_s18 }
0x1a77   :  { %1821 = vrot.lane.b32.xlu0 %v4370_v30, %s4582_s18 }
0x1ae8   :  { %v1744_v38 = vpop.permute.xlu1 %1743 }
0x1ae9   :  { %v1822_v36 = vpop.permute.xlu0 %1821  ;;  %v5111_v31 = vmul.f32 %v1744_v38, %v1728_v33 }
0x1aea   :  { %v1824_v35 = vmul.f32 %v1822_v36, %v1806_v55 }
0x1aeb   :  { %1830 = vrot.lane.b32.xlu0 %v5111_v31, %s4582_s18 }
0x1aec   :  { %1826 = vrot.lane.b32.xlu1 %v1824_v35, %s4588_s27  ;;  %v1908_v45 = vpack.c.bf16 %v1824_v35, %v1824_v35 }
0x1af0   :  { %1910 = vrot.lane.b32.xlu1 %v1908_v45, %s4588_s27 }
0x1b5d   :  { %v1831_v3 = vpop.permute.xlu0 %1830 }
0x1b5e   :  { %v1827_v8 = vpop.permute.xlu1 %1826 }
0x1b5f   :  { %v1833_v56 = vsel %vm356_vm1, %v1827_v8, %v1831_v3 }
0x1b60   :  { %v1834_v41 = vpack.c.bf16 %v1833_v56, %v1833_v56 }
0x1b62   :  { %v1911_v57 = vpop.permute.xlu1 %1910  ;;  %4009 = vmatmul.mubr.msk.bf16.vlgmr.msra.gmra.mxu1 %vm457_vm2, %v1834_v41 }
0x1b63   :  { %4017 = vmatmul.mubr.msk.bf16.vlgmr.msra.gmra.mxu0 %vm356_vm1, %v1911_v57  ;;  %4033 = vmatpush3.bf16.msra.mxu1 %v4930_v11 }
0x1b64   :  { %4021 = vmatpush3.bf16.msra.mxu0 %v4977_v14  ;;  %4034 = vmatprep.subr.bf16.mxu1 %v4585_v0 }
0x1b65   :  { %4022 = vmatprep.subr.bf16.mxu0 %v4585_v0  ;;  %4028 = vmatprep.mubr.msk.bf16.mxu0 %vm4586_vm0, %v4585_v0 }
0x1b66   :  { %4036 = vmatprep.mubr.msk.bf16.mxu1 %vm4586_vm0, %v4585_v0 }
0x1b67   :  { %4035 = vmatpush3.bf16.msra.mxu1 %v4940_v12 }
0x1b68   :  { %4023 = vmatpush3.bf16.msra.mxu0 %v4987_v34  ;;  %4040 = vmatprep.subr.bf16.mxu1 %v4585_v0 }
0x1b69   :  { %4024 = vmatprep.subr.bf16.mxu0 %v4585_v0 }
0x1b6c   :  { %4025 = vmatpush3.bf16.msra.mxu0 %v4992_v15 }
0x1b6d   :  { %4026 = vmatprep.subr.bf16.mxu0 %v4585_v0 }
0x1b70   :  { %4027 = vmatpush3.bf16.msra.mxu0 %v5043_v23 }
0x1b71   :  { %4052 = vmatprep.subr.bf16.mxu0 %v4585_v0 }
0x1c22   :  { %v1872_v59 = vpop.f32.mrf.mxu1 }
0x1c23   :  { %v1873_v28 = vadd.f32 %v5052_v32, %v1872_v59  ;;  %v1949_v62 = vpop.f32.mrf.mxu0 }
0x1c24   :  { %v1955_v2 = vadd.f32 %v1949_v62, %v271_v58  ;;  %v4010_v18 = vpop.f32.mrf.mxu1 }
0x1c25   :  { %4371 = vtanh.f32 %v1873_v28  ;;  %v4018_v43 = vpop.f32.mrf.mxu0  ;;  %v1878_v40 = vmul.f32 0.5, %v1873_v28 }
0x1c26   :  { %4373 = vtanh.f32 %v1955_v2  ;;  %v1875_v46 = vpop.f32.mrf.mxu1  ;;  %v1956_v63 = vmul.f32 0.5, %v1955_v2 }
0x1c27   :  { %v1952_v5 = vpop.f32.mrf.mxu0  ;;  %4375 = vtanh.f32 %v1878_v40  ;;  %v274_v46 = vadd.f32 %v5001_v16, %v4800_v42 }
0x1c28   :  { %v4011_v61 = vpop.f32.mrf.mxu1  ;;  %4377 = vtanh.f32 %v1956_v63 }
0x1c29   :  { %v4019_v9 = vpop.f32.mrf.mxu0 }
0x1c32   :  { %v4372_v10 = vpop.eup %4371 }
0x1c33   :  { %v4374_v33 = vpop.eup %4373  ;;  %1885 = vrot.lane.b32.xlu0 %v4372_v10, %s4582_s18 }
0x1c34   :  { %1963 = vrot.lane.b32.xlu1 %v4374_v33, %s4582_s18  ;;  %v4376_v55 = vpop.eup %4375 }
0x1c35   :  { %v4378_v17 = vpop.eup %4377  ;;  %v1880_v39 = vmul.f32 0.5, %v4376_v55 }
0x1c36   :  { %v1958_v20 = vmul.f32 0.5, %v4378_v17 }
0x1c37   :  { %v1881_v21 = vadd.f32 0.5, %v1880_v39 }
0x1c38   :  { %v1959_v7 = vadd.f32 0.5, %v1958_v20 }
0x1c39   :  { %v1883_v38 = vmul.f32 %v1881_v21, %v5103_v37 }
0x1c3a   :  { %v1961_v35 = vmul.f32 %v1959_v7, %v5105_v27 }
0x1ca5   :  { %v1886_v26 = vpop.permute.xlu0 %1885 }
0x1ca6   :  { %v1888_v25 = vmul.f32 %v1886_v26, %v1881_v21  ;;  %v1964_v29 = vpop.permute.xlu1 %1963 }
0x1ca7   :  { %v1966_v30 = vmul.f32 %v1964_v29, %v1959_v7 }
0x1ca8   :  { %1890 = vrot.lane.b32.xlu0 %v1888_v25, %s4588_s27 }
0x1ca9   :  { %1968 = vrot.lane.b32.xlu1 %v1966_v30, %s4588_s27 }
0x1d1a   :  { %v1891_v36 = vpop.permute.xlu0 %1890 }
0x1d1b   :  { %v5145_v45 = vadd.f32 %v1891_v36, %v1883_v38  ;;  %v1969_v3 = vpop.permute.xlu1 %1968 }
0x1d1c   :  { %v5147_v8 = vadd.f32 %v1969_v3, %v1961_v35 }
0x1d1d   :  { %4379 = vtanh.f32 %v5145_v45 }
0x1d1e   :  { %4381 = vtanh.f32 %v5147_v8 }
0x1d2a   :  { %v4380_v56 = vpop.eup %4379 }
0x1d2b   :  { %v4382_v41 = vpop.eup %4381  ;;  %1896 = vrot.lane.b32.xlu0 %v4380_v56, %s4582_s18 }
0x1d2c   :  { %1974 = vrot.lane.b32.xlu1 %v4382_v41, %s4582_s18 }
0x1d9d   :  { %v1897_v57 = vpop.permute.xlu0 %1896 }
0x1d9e   :  { %v1975_v37 = vpop.permute.xlu1 %1974  ;;  %v5153_v58 = vmul.f32 %v1897_v57, %v1881_v21 }
0x1d9f   :  { %v1977_v27 = vmul.f32 %v1975_v37, %v1959_v7 }
0x1da0   :  { %1983 = vrot.lane.b32.xlu1 %v5153_v58, %s4582_s18 }
0x1da1   :  { %1979 = vrot.lane.b32.xlu0 %v1977_v27, %s4588_s27  ;;  %v2061_v59 = vpack.c.bf16 %v1977_v27, %v1977_v27 }
0x1da5   :  { %2063 = vrot.lane.b32.xlu0 %v2061_v59, %s4588_s27 }
0x1e12   :  { %v1984_v28 = vpop.permute.xlu1 %1983 }
0x1e13   :  { %v1980_v62 = vpop.permute.xlu0 %1979 }
0x1e14   :  { %v1986_v2 = vsel %vm356_vm1, %v1980_v62, %v1984_v28 }
0x1e15   :  { %v1987_v18 = vpack.c.bf16 %v1986_v2, %v1986_v2 }
0x1e17   :  { %4029 = vmatmul.mubr.msk.bf16.vlgmr.msra.gmra.mxu0 %vm457_vm2, %v1987_v18  ;;  %v2064_v43 = vpop.permute.xlu0 %2063 }
0x1e18   :  { %4037 = vmatmul.mubr.msk.bf16.vlgmr.msra.gmra.mxu1 %vm356_vm1, %v2064_v43  ;;  %4053 = vmatpush3.bf16.msra.mxu0 %v4930_v11 }
0x1e19   :  { %4041 = vmatpush3.bf16.msra.mxu1 %v4977_v14  ;;  %4054 = vmatprep.subr.bf16.mxu0 %v4585_v0 }
0x1e1a   :  { %4042 = vmatprep.subr.bf16.mxu1 %v4585_v0  ;;  %4048 = vmatprep.mubr.msk.bf16.mxu1 %vm4586_vm0, %v4585_v0 }
0x1e1b   :  { %4056 = vmatprep.mubr.msk.bf16.mxu0 %vm4586_vm0, %v4585_v0 }
0x1e1c   :  { %4055 = vmatpush3.bf16.msra.mxu0 %v4940_v12 }
0x1e1d   :  { %4043 = vmatpush3.bf16.msra.mxu1 %v4987_v34  ;;  %4060 = vmatprep.subr.bf16.mxu0 %v4585_v0 }
0x1e1e   :  { %4044 = vmatprep.subr.bf16.mxu1 %v4585_v0 }
0x1e21   :  { %4045 = vmatpush3.bf16.msra.mxu1 %v4992_v15 }
0x1e22   :  { %4046 = vmatprep.subr.bf16.mxu1 %v4585_v0 }
0x1e25   :  { %4047 = vmatpush3.bf16.msra.mxu1 %v5043_v23 }
0x1e26   :  { %4072 = vmatprep.subr.bf16.mxu1 %v4585_v0 }
0x1ed7   :  { %v2025_v5 = vpop.f32.mrf.mxu0 }
0x1ed8   :  { %v2026_v61 = vadd.f32 %v5052_v32, %v2025_v5  ;;  %v2102_v9 = vpop.f32.mrf.mxu1 }
0x1ed9   :  { %v2108_v10 = vadd.f32 %v2102_v9, %v274_v46  ;;  %v4030_v33 = vpop.f32.mrf.mxu0 }
0x1eda   :  { %4383 = vtanh.f32 %v2026_v61  ;;  %v4038_v40 = vpop.f32.mrf.mxu1  ;;  %v2031_v42 = vmul.f32 0.5, %v2026_v61 }
0x1edb   :  { %4385 = vtanh.f32 %v2108_v10  ;;  %v2028_v63 = vpop.f32.mrf.mxu0  ;;  %v2109_v26 = vmul.f32 0.5, %v2108_v10 }
0x1edc   :  { %v2105_v55 = vpop.f32.mrf.mxu1  ;;  %4387 = vtanh.f32 %v2031_v42 }
0x1edd   :  { %v4031_v17 = vpop.f32.mrf.mxu0  ;;  %4389 = vtanh.f32 %v2109_v26 }
0x1ede   :  { %v4039_v39 = vpop.f32.mrf.mxu1 }
0x1ee7   :  { %v4384_v20 = vpop.eup %4383 }
0x1ee8   :  { %v4386_v21 = vpop.eup %4385  ;;  %2038 = vrot.lane.b32.xlu1 %v4384_v20, %s4582_s18 }
0x1ee9   :  { %2116 = vrot.lane.b32.xlu0 %v4386_v21, %s4582_s18  ;;  %v4388_v7 = vpop.eup %4387 }
0x1eea   :  { %v4390_v25 = vpop.eup %4389  ;;  %v2033_v29 = vmul.f32 0.5, %v4388_v7 }
0x1eeb   :  { %v2111_v30 = vmul.f32 0.5, %v4390_v25 }
0x1eec   :  { %v2034_v38 = vadd.f32 0.5, %v2033_v29 }
0x1eed   :  { %v2112_v35 = vadd.f32 0.5, %v2111_v30 }
0x1eee   :  { %v2036_v57 = vmul.f32 %v2034_v38, %v5145_v45 }
0x1eef   :  { %v2114_v27 = vmul.f32 %v2112_v35, %v5147_v8 }
0x1f5a   :  { %v2039_v36 = vpop.permute.xlu1 %2038 }
0x1f5b   :  { %v2041_v3 = vmul.f32 %v2039_v36, %v2034_v38  ;;  %v2117_v56 = vpop.permute.xlu0 %2116 }
0x1f5c   :  { %v2119_v41 = vmul.f32 %v2117_v56, %v2112_v35 }
0x1f5d   :  { %2043 = vrot.lane.b32.xlu1 %v2041_v3, %s4588_s27 }
0x1f5e   :  { %2121 = vrot.lane.b32.xlu0 %v2119_v41, %s4588_s27 }
0x1fcf   :  { %v2044_v37 = vpop.permute.xlu1 %2043 }
0x1fd0   :  { %v5187_v59 = vadd.f32 %v2044_v37, %v2036_v57  ;;  %v2122_v28 = vpop.permute.xlu0 %2121 }
0x1fd1   :  { %v5189_v62 = vadd.f32 %v2122_v28, %v2114_v27 }
0x1fd2   :  { %4391 = vtanh.f32 %v5187_v59 }
0x1fd3   :  { %4393 = vtanh.f32 %v5189_v62 }
0x1fdf   :  { %v4392_v2 = vpop.eup %4391 }
0x1fe0   :  { %v4394_v18 = vpop.eup %4393  ;;  %2049 = vrot.lane.b32.xlu1 %v4392_v2, %s4582_s18 }
0x1fe1   :  { %2127 = vrot.lane.b32.xlu0 %v4394_v18, %s4582_s18 }
0x2052   :  { %v2050_v43 = vpop.permute.xlu1 %2049 }
0x2053   :  { %v5195_v45 = vmul.f32 %v2050_v43, %v2034_v38  ;;  %v2128_v46 = vpop.permute.xlu0 %2127 }
0x2054   :  { %v2130_v8 = vmul.f32 %v2128_v46, %v2112_v35 }
0x2055   :  { %2136 = vrot.lane.b32.xlu0 %v5195_v45, %s4582_s18 }
0x2056   :  { %2132 = vrot.lane.b32.xlu1 %v2130_v8, %s4588_s27  ;;  %v2214_v5 = vpack.c.bf16 %v2130_v8, %v2130_v8 }
0x205a   :  { %2216 = vrot.lane.b32.xlu1 %v2214_v5, %s4588_s27 }
0x20c7   :  { %v2137_v61 = vpop.permute.xlu0 %2136 }
0x20c8   :  { %v2133_v9 = vpop.permute.xlu1 %2132 }
0x20c9   :  { %v2139_v10 = vsel %vm356_vm1, %v2133_v9, %v2137_v61 }
0x20ca   :  { %v2140_v33 = vpack.c.bf16 %v2139_v10, %v2139_v10 }
0x20cc   :  { %v2217_v40 = vpop.permute.xlu1 %2216  ;;  %4049 = vmatmul.mubr.msk.bf16.vlgmr.msra.gmra.mxu1 %vm457_vm2, %v2140_v33 }
0x20cd   :  { %4057 = vmatmul.mubr.msk.bf16.vlgmr.msra.gmra.mxu0 %vm356_vm1, %v2217_v40  ;;  %4073 = vmatpush3.bf16.msra.mxu1 %v4930_v11  ;;  %v279_v11 = vadd.f32 %v5001_v16, %v4806_v47 }
0x20ce   :  { %4061 = vmatpush3.bf16.msra.mxu0 %v4977_v14  ;;  %4074 = vmatprep.subr.bf16.mxu1 %v4585_v0 }
0x20cf   :  { %4062 = vmatprep.subr.bf16.mxu0 %v4585_v0  ;;  %4068 = vmatprep.mubr.msk.bf16.mxu0 %vm4586_vm0, %v4585_v0 }
0x20d0   :  { %4076 = vmatprep.mubr.msk.bf16.mxu1 %vm4586_vm0, %v4585_v0 }
0x20d1   :  { %4075 = vmatpush3.bf16.msra.mxu1 %v4940_v12 }
0x20d2   :  { %4063 = vmatpush3.bf16.msra.mxu0 %v4987_v34  ;;  %4080 = vmatprep.subr.bf16.mxu1 %v4585_v0 }
0x20d3   :  { %4064 = vmatprep.subr.bf16.mxu0 %v4585_v0 }
0x20d6   :  { %4065 = vmatpush3.bf16.msra.mxu0 %v4992_v15 }
0x20d7   :  { %4066 = vmatprep.subr.bf16.mxu0 %v4585_v0 }
0x20da   :  { %4067 = vmatpush3.bf16.msra.mxu0 %v5043_v23 }
0x20db   :  { %4092 = vmatprep.subr.bf16.mxu0 %v4585_v0 }
0x218c   :  { %v2178_v63 = vpop.f32.mrf.mxu1 }
0x218d   :  { %v2179_v12 = vadd.f32 %v5052_v32, %v2178_v63  ;;  %v2255_v55 = vpop.f32.mrf.mxu0 }
0x218e   :  { %v2261_v17 = vadd.f32 %v2255_v55, %v279_v11  ;;  %v4050_v39 = vpop.f32.mrf.mxu1 }
0x218f   :  { %4395 = vtanh.f32 %v2179_v12  ;;  %v4058_v20 = vpop.f32.mrf.mxu0  ;;  %v2184_v47 = vmul.f32 0.5, %v2179_v12  ;;  %v5246_v39 = vld [vmem:[#allocation6 + $0x48] sm:$0xff]  }
0x2190   :  { %4397 = vtanh.f32 %v2261_v17  ;;  %v2181_v21 = vpop.f32.mrf.mxu1  ;;  %v2262_v30 = vmul.f32 0.5, %v2261_v17  ;;  %v5256_v20 = vld [vmem:[#allocation6 + $0x40] sm:$0xff]  }
0x2191   :  { %v2258_v42 = vpop.f32.mrf.mxu0  ;;  %4399 = vtanh.f32 %v2184_v47 }
0x2192   :  { %v4051_v26 = vpop.f32.mrf.mxu1  ;;  %4401 = vtanh.f32 %v2262_v30 }
0x2193   :  { %v4059_v7 = vpop.f32.mrf.mxu0 }
0x219c   :  { %v4396_v25 = vpop.eup %4395 }
0x219d   :  { %v4398_v29 = vpop.eup %4397  ;;  %2191 = vrot.lane.b32.xlu0 %v4396_v25, %s4582_s18 }
0x219e   :  { %2269 = vrot.lane.b32.xlu1 %v4398_v29, %s4582_s18  ;;  %v4400_v38 = vpop.eup %4399 }
0x219f   :  { %v4402_v36 = vpop.eup %4401  ;;  %v2186_v35 = vmul.f32 0.5, %v4400_v38 }
0x21a0   :  { %v2264_v3 = vmul.f32 0.5, %v4402_v36 }
0x21a1   :  { %v2187_v56 = vadd.f32 0.5, %v2186_v35 }
0x21a2   :  { %v2265_v57 = vadd.f32 0.5, %v2264_v3 }
0x21a3   :  { %v2189_v2 = vmul.f32 %v2187_v56, %v5187_v59 }
0x21a4   :  { %v2267_v43 = vmul.f32 %v2265_v57, %v5189_v62 }
0x220f   :  { %v2192_v41 = vpop.permute.xlu0 %2191 }
0x2210   :  { %v2194_v37 = vmul.f32 %v2192_v41, %v2187_v56  ;;  %v2270_v27 = vpop.permute.xlu1 %2269 }
0x2211   :  { %v2272_v28 = vmul.f32 %v2270_v27, %v2265_v57 }
0x2212   :  { %2196 = vrot.lane.b32.xlu0 %v2194_v37, %s4588_s27 }
0x2213   :  { %2274 = vrot.lane.b32.xlu1 %v2272_v28, %s4588_s27 }
0x2284   :  { %v2197_v18 = vpop.permute.xlu0 %2196 }
0x2285   :  { %v5229_v46 = vadd.f32 %v2197_v18, %v2189_v2  ;;  %v2275_v8 = vpop.permute.xlu1 %2274 }
0x2286   :  { %v5231_v5 = vadd.f32 %v2275_v8, %v2267_v43 }
0x2287   :  { %4403 = vtanh.f32 %v5229_v46 }
0x2288   :  { %4405 = vtanh.f32 %v5231_v5 }
0x2294   :  { %v4404_v61 = vpop.eup %4403 }
0x2295   :  { %v4406_v9 = vpop.eup %4405  ;;  %2202 = vrot.lane.b32.xlu0 %v4404_v61, %s4582_s18 }
0x2296   :  { %2280 = vrot.lane.b32.xlu1 %v4406_v9, %s4582_s18 }
0x2307   :  { %v2203_v10 = vpop.permute.xlu0 %2202 }
0x2308   :  { %v5237_v59 = vmul.f32 %v2203_v10, %v2187_v56  ;;  %v2281_v33 = vpop.permute.xlu1 %2280 }
0x2309   :  { %v2283_v62 = vmul.f32 %v2281_v33, %v2265_v57 }
0x230a   :  { %2289 = vrot.lane.b32.xlu1 %v5237_v59, %s4582_s18 }
0x230b   :  { %2285 = vrot.lane.b32.xlu0 %v2283_v62, %s4588_s27  ;;  %v2367_v40 = vpack.c.bf16 %v2283_v62, %v2283_v62 }
0x230f   :  { %2369 = vrot.lane.b32.xlu0 %v2367_v40, %s4588_s27 }
0x237c   :  { %v2290_v11 = vpop.permute.xlu1 %2289 }
0x237d   :  { %v2286_v63 = vpop.permute.xlu0 %2285 }
0x237e   :  { %v2292_v12 = vsel %vm356_vm1, %v2286_v63, %v2290_v11 }
0x237f   :  { %v2293_v55 = vpack.c.bf16 %v2292_v12, %v2292_v12 }
0x2381   :  { %4069 = vmatmul.mubr.msk.bf16.vlgmr.msra.gmra.mxu0 %vm457_vm2, %v2293_v55  ;;  %v2370_v17 = vpop.permute.xlu0 %2369 }
0x2382   :  { %4077 = vmatmul.mubr.msk.bf16.vlgmr.msra.gmra.mxu1 %vm356_vm1, %v2370_v17  ;;  %4093 = vmatpush3.bf16.msra.mxu0 %v5246_v39 }
0x2383   :  { %4081 = vmatpush3.bf16.msra.mxu1 %v4977_v14  ;;  %4094 = vmatprep.subr.bf16.mxu0 %v4585_v0  ;;  %v282_v14 = vadd.f32 %v5001_v16, %v4810_v49 }
0x2384   :  { %4082 = vmatprep.subr.bf16.mxu1 %v4585_v0  ;;  %4088 = vmatprep.mubr.msk.bf16.mxu1 %vm4586_vm0, %v4585_v0 }
0x2385   :  { %4096 = vmatprep.mubr.msk.bf16.mxu0 %vm4586_vm0, %v4585_v0 }
0x2386   :  { %4095 = vmatpush3.bf16.msra.mxu0 %v5256_v20 }
0x2387   :  { %4083 = vmatpush3.bf16.msra.mxu1 %v4987_v34  ;;  %4100 = vmatprep.subr.bf16.mxu0 %v4585_v0 }
0x2388   :  { %4084 = vmatprep.subr.bf16.mxu1 %v4585_v0 }
0x238b   :  { %4085 = vmatpush3.bf16.msra.mxu1 %v4992_v15 }
0x238c   :  { %4086 = vmatprep.subr.bf16.mxu1 %v4585_v0 }
0x238f   :  { %4087 = vmatpush3.bf16.msra.mxu1 %v5043_v23 }
0x2390   :  { %4112 = vmatprep.subr.bf16.mxu1 %v4585_v0 }
0x2441   :  { %v2331_v21 = vpop.f32.mrf.mxu0 }
0x2442   :  { %v2332_v42 = vadd.f32 %v5052_v32, %v2331_v21  ;;  %v2408_v26 = vpop.f32.mrf.mxu1 }
0x2443   :  { %v2414_v34 = vadd.f32 %v2408_v26, %v282_v14  ;;  %v4070_v7 = vpop.f32.mrf.mxu0  ;;  %v5293_v26 = vld [vmem:[#allocation6 + $0x68] sm:$0xff]  }
0x2444   :  { %4407 = vtanh.f32 %v2332_v42  ;;  %v4078_v25 = vpop.f32.mrf.mxu1  ;;  %v2337_v49 = vmul.f32 0.5, %v2332_v42  ;;  %v5308_v7 = vld [vmem:[#allocation6 + $0x58] sm:$0xff]  }
0x2445   :  { %4409 = vtanh.f32 %v2414_v34  ;;  %v2334_v29 = vpop.f32.mrf.mxu0  ;;  %v2415_v16 = vmul.f32 0.5, %v2414_v34  ;;  %v5303_v34 = vld [vmem:[#allocation6 + $0x60] sm:$0xff]   ;;  %v5317_v25 = vld [vmem:[%s5638_s3] ss:$0 sm:$0xff] }
0x2446   :  { %v2411_v15 = vpop.f32.mrf.mxu1  ;;  %4411 = vtanh.f32 %v2337_v49  ;;  %v287_v29 = vadd.f32 %v5317_v25, %v4804_v44 }
0x2447   :  { %v4071_v47 = vpop.f32.mrf.mxu0  ;;  %4413 = vtanh.f32 %v2415_v16 }
0x2448   :  { %v4079_v30 = vpop.f32.mrf.mxu1 }
0x2451   :  { %v4408_v38 = vpop.eup %4407 }
0x2452   :  { %v4410_v36 = vpop.eup %4409  ;;  %2344 = vrot.lane.b32.xlu1 %v4408_v38, %s4582_s18 }
0x2453   :  { %2422 = vrot.lane.b32.xlu0 %v4410_v36, %s4582_s18  ;;  %v4412_v35 = vpop.eup %4411 }
0x2454   :  { %v4414_v3 = vpop.eup %4413  ;;  %v2339_v56 = vmul.f32 0.5, %v4412_v35 }
0x2455   :  { %v2417_v41 = vmul.f32 0.5, %v4414_v3 }
0x2456   :  { %v2340_v57 = vadd.f32 0.5, %v2339_v56 }
0x2457   :  { %v2418_v27 = vadd.f32 0.5, %v2417_v41 }
0x2458   :  { %v2342_v43 = vmul.f32 %v2340_v57, %v5229_v46 }
0x2459   :  { %v2420_v61 = vmul.f32 %v2418_v27, %v5231_v5 }
0x24c4   :  { %v2345_v37 = vpop.permute.xlu1 %2344 }
0x24c5   :  { %v2347_v28 = vmul.f32 %v2345_v37, %v2340_v57  ;;  %v2423_v2 = vpop.permute.xlu0 %2422 }
0x24c6   :  { %v2425_v18 = vmul.f32 %v2423_v2, %v2418_v27 }
0x24c7   :  { %2349 = vrot.lane.b32.xlu1 %v2347_v28, %s4588_s27 }
0x24c8   :  { %2427 = vrot.lane.b32.xlu0 %v2425_v18, %s4588_s27 }
0x2539   :  { %v2350_v8 = vpop.permute.xlu1 %2349 }
0x253a   :  { %v5275_v9 = vadd.f32 %v2350_v8, %v2342_v43  ;;  %v2428_v10 = vpop.permute.xlu0 %2427 }
0x253b   :  { %v5277_v33 = vadd.f32 %v2428_v10, %v2420_v61 }
0x253c   :  { %4415 = vtanh.f32 %v5275_v9 }
0x253d   :  { %4417 = vtanh.f32 %v5277_v33 }
0x2549   :  { %v4416_v62 = vpop.eup %4415 }
0x254a   :  { %v4418_v40 = vpop.eup %4417  ;;  %2355 = vrot.lane.b32.xlu1 %v4416_v62, %s4582_s18 }
0x254b   :  { %2433 = vrot.lane.b32.xlu0 %v4418_v40, %s4582_s18 }
0x25bc   :  { %v2356_v11 = vpop.permute.xlu1 %2355 }
0x25bd   :  { %v5283_v46 = vmul.f32 %v2356_v11, %v2340_v57  ;;  %v2434_v63 = vpop.permute.xlu0 %2433 }
0x25be   :  { %v2436_v5 = vmul.f32 %v2434_v63, %v2418_v27 }
0x25bf   :  { %2442 = vrot.lane.b32.xlu0 %v5283_v46, %s4582_s18 }
0x25c0   :  { %2438 = vrot.lane.b32.xlu1 %v2436_v5, %s4588_s27  ;;  %v2520_v12 = vpack.c.bf16 %v2436_v5, %v2436_v5 }
0x25c4   :  { %2522 = vrot.lane.b32.xlu1 %v2520_v12, %s4588_s27 }
0x2631   :  { %v2443_v55 = vpop.permute.xlu0 %2442 }
0x2632   :  { %v2439_v17 = vpop.permute.xlu1 %2438 }
0x2633   :  { %v2445_v14 = vsel %vm356_vm1, %v2439_v17, %v2443_v55 }
0x2634   :  { %v2446_v21 = vpack.c.bf16 %v2445_v14, %v2445_v14 }
0x2636   :  { %v2523_v42 = vpop.permute.xlu1 %2522  ;;  %4089 = vmatmul.mubr.msk.bf16.vlgmr.msra.gmra.mxu1 %vm457_vm2, %v2446_v21 }
0x2637   :  { %4097 = vmatmul.mubr.msk.bf16.vlgmr.msra.gmra.mxu0 %vm356_vm1, %v2523_v42  ;;  %4113 = vmatpush3.bf16.msra.mxu1 %v5246_v39 }
0x2638   :  { %4101 = vmatpush3.bf16.msra.mxu0 %v5293_v26  ;;  %4114 = vmatprep.subr.bf16.mxu1 %v4585_v0 }
0x2639   :  { %4102 = vmatprep.subr.bf16.mxu0 %v4585_v0  ;;  %4108 = vmatprep.mubr.msk.bf16.mxu0 %vm4586_vm0, %v4585_v0 }
0x263a   :  { %4116 = vmatprep.mubr.msk.bf16.mxu1 %vm4586_vm0, %v4585_v0 }
0x263b   :  { %4115 = vmatpush3.bf16.msra.mxu1 %v5256_v20 }
0x263c   :  { %4103 = vmatpush3.bf16.msra.mxu0 %v5303_v34  ;;  %4120 = vmatprep.subr.bf16.mxu1 %v4585_v0 }
0x263d   :  { %4104 = vmatprep.subr.bf16.mxu0 %v4585_v0 }
0x2640   :  { %4105 = vmatpush3.bf16.msra.mxu0 %v5308_v7 }
0x2641   :  { %4106 = vmatprep.subr.bf16.mxu0 %v4585_v0 }
0x2644   :  { %4107 = vmatpush3.bf16.msra.mxu0 %v5043_v23 }
0x2645   :  { %4132 = vmatprep.subr.bf16.mxu0 %v4585_v0 }
0x26f6   :  { %v2484_v15 = vpop.f32.mrf.mxu1 }
0x26f7   :  { %v2485_v47 = vadd.f32 %v5052_v32, %v2484_v15  ;;  %v2561_v30 = vpop.f32.mrf.mxu0 }
0x26f8   :  { %v2567_v38 = vadd.f32 %v2561_v30, %v287_v29  ;;  %v4090_v36 = vpop.f32.mrf.mxu1 }
0x26f9   :  { %4419 = vtanh.f32 %v2485_v47  ;;  %v4098_v49 = vpop.f32.mrf.mxu0  ;;  %v2490_v44 = vmul.f32 0.5, %v2485_v47  ;;  %v5359_v36 = vld [vmem:[#allocation6 + $0x50] sm:$0xff]  }
0x26fa   :  { %4421 = vtanh.f32 %v2567_v38  ;;  %v2487_v23 = vpop.f32.mrf.mxu1  ;;  %v2568_v57 = vmul.f32 0.5, %v2567_v38  ;;  %v290_v49 = vadd.f32 %v5317_v25, %v4808_v48 }
0x26fb   :  { %v2564_v16 = vpop.f32.mrf.mxu0  ;;  %4423 = vtanh.f32 %v2490_v44 }
0x26fc   :  { %v4091_v35 = vpop.f32.mrf.mxu1  ;;  %4425 = vtanh.f32 %v2568_v57  ;;  %v5368_v16 = vld [vmem:[%s5638_s3 + $0x1] ss:$0 sm:$0xff] }
0x26fd   :  { %v4099_v3 = vpop.f32.mrf.mxu0 }
0x2706   :  { %v4420_v56 = vpop.eup %4419 }
0x2707   :  { %v4422_v41 = vpop.eup %4421  ;;  %2497 = vrot.lane.b32.xlu0 %v4420_v56, %s4582_s18 }
0x2708   :  { %2575 = vrot.lane.b32.xlu1 %v4422_v41, %s4582_s18  ;;  %v4424_v32 = vpop.eup %4423 }
0x2709   :  { %v4426_v37 = vpop.eup %4425  ;;  %v2492_v27 = vmul.f32 0.5, %v4424_v32 }
0x270a   :  { %v2570_v28 = vmul.f32 0.5, %v4426_v37 }
0x270b   :  { %v2493_v2 = vadd.f32 0.5, %v2492_v27 }
0x270c   :  { %v2571_v43 = vadd.f32 0.5, %v2570_v28 }
0x270d   :  { %v2495_v62 = vmul.f32 %v2493_v2, %v5275_v9 }
0x270e   :  { %v2573_v11 = vmul.f32 %v2571_v43, %v5277_v33 }
0x2779   :  { %v2498_v18 = vpop.permute.xlu0 %2497 }
0x277a   :  { %v2500_v8 = vmul.f32 %v2498_v18, %v2493_v2  ;;  %v2576_v61 = vpop.permute.xlu1 %2575 }
0x277b   :  { %v2578_v10 = vmul.f32 %v2576_v61, %v2571_v43 }
0x277c   :  { %2502 = vrot.lane.b32.xlu0 %v2500_v8, %s4588_s27 }
0x277d   :  { %2580 = vrot.lane.b32.xlu1 %v2578_v10, %s4588_s27 }
0x27ee   :  { %v2503_v40 = vpop.permute.xlu0 %2502 }
0x27ef   :  { %v5328_v63 = vadd.f32 %v2503_v40, %v2495_v62  ;;  %v2581_v5 = vpop.permute.xlu1 %2580 }
0x27f0   :  { %v5330_v12 = vadd.f32 %v2581_v5, %v2573_v11 }
0x27f1   :  { %4427 = vtanh.f32 %v5328_v63 }
0x27f2   :  { %4429 = vtanh.f32 %v5330_v12 }
0x27fe   :  { %v4428_v55 = vpop.eup %4427 }
0x27ff   :  { %v4430_v17 = vpop.eup %4429  ;;  %2508 = vrot.lane.b32.xlu0 %v4428_v55, %s4582_s18 }
0x2800   :  { %2586 = vrot.lane.b32.xlu1 %v4430_v17, %s4582_s18 }
0x2871   :  { %v2509_v14 = vpop.permute.xlu0 %2508 }
0x2872   :  { %v5336_v9 = vmul.f32 %v2509_v14, %v2493_v2  ;;  %v2587_v21 = vpop.permute.xlu1 %2586 }
0x2873   :  { %v2589_v33 = vmul.f32 %v2587_v21, %v2571_v43 }
0x2874   :  { %2595 = vrot.lane.b32.xlu1 %v5336_v9, %s4582_s18 }
0x2875   :  { %2591 = vrot.lane.b32.xlu0 %v2589_v33, %s4588_s27  ;;  %v2673_v42 = vpack.c.bf16 %v2589_v33, %v2589_v33 }
0x2879   :  { %2675 = vrot.lane.b32.xlu0 %v2673_v42, %s4588_s27 }
0x28e6   :  { %v2596_v29 = vpop.permute.xlu1 %2595 }
0x28e7   :  { %v2592_v15 = vpop.permute.xlu0 %2591 }
0x28e8   :  { %v2598_v47 = vsel %vm356_vm1, %v2592_v15, %v2596_v29 }
0x28e9   :  { %v2599_v30 = vpack.c.bf16 %v2598_v47, %v2598_v47 }
0x28eb   :  { %4109 = vmatmul.mubr.msk.bf16.vlgmr.msra.gmra.mxu0 %vm457_vm2, %v2599_v30  ;;  %v2676_v38 = vpop.permute.xlu0 %2675 }
0x28ec   :  { %4117 = vmatmul.mubr.msk.bf16.vlgmr.msra.gmra.mxu1 %vm356_vm1, %v2676_v38  ;;  %4133 = vmatpush3.bf16.msra.mxu0 %v5246_v39 }
0x28ed   :  { %4121 = vmatpush3.bf16.msra.mxu1 %v5293_v26  ;;  %4134 = vmatprep.subr.bf16.mxu0 %v4585_v0 }
0x28ee   :  { %4122 = vmatprep.subr.bf16.mxu1 %v4585_v0  ;;  %4128 = vmatprep.mubr.msk.bf16.mxu1 %vm4586_vm0, %v4585_v0 }
0x28ef   :  { %4136 = vmatprep.mubr.msk.bf16.mxu0 %vm4586_vm0, %v4585_v0 }
0x28f0   :  { %4135 = vmatpush3.bf16.msra.mxu0 %v5256_v20 }
0x28f1   :  { %4123 = vmatpush3.bf16.msra.mxu1 %v5303_v34  ;;  %4140 = vmatprep.subr.bf16.mxu0 %v4585_v0 }
0x28f2   :  { %4124 = vmatprep.subr.bf16.mxu1 %v4585_v0 }
0x28f5   :  { %4125 = vmatpush3.bf16.msra.mxu1 %v5308_v7 }
0x28f6   :  { %4126 = vmatprep.subr.bf16.mxu1 %v4585_v0 }
0x28f9   :  { %4127 = vmatpush3.bf16.msra.mxu1 %v5359_v36 }
0x28fa   :  { %4152 = vmatprep.subr.bf16.mxu1 %v4585_v0 }
0x29ab   :  { %v2637_v23 = vpop.f32.mrf.mxu0 }
0x29ac   :  { %v2638_v35 = vadd.f32 %v5368_v16, %v2637_v23  ;;  %v2714_v3 = vpop.f32.mrf.mxu1 }
0x29ad   :  { %v2720_v56 = vadd.f32 %v2714_v3, %v290_v49  ;;  %v4110_v41 = vpop.f32.mrf.mxu0 }
0x29ae   :  { %4431 = vtanh.f32 %v2638_v35  ;;  %v4118_v44 = vpop.f32.mrf.mxu1  ;;  %v2643_v2 = vmul.f32 0.5, %v2638_v35 }
0x29af   :  { %4433 = vtanh.f32 %v2720_v56  ;;  %v2640_v57 = vpop.f32.mrf.mxu0  ;;  %v2721_v18 = vmul.f32 0.5, %v2720_v56 }
0x29b0   :  { %v2717_v32 = vpop.f32.mrf.mxu1  ;;  %4435 = vtanh.f32 %v2643_v2  ;;  %v295_v57 = vadd.f32 %v5317_v25, %v4814_v51 }
0x29b1   :  { %v4111_v37 = vpop.f32.mrf.mxu0  ;;  %4437 = vtanh.f32 %v2721_v18 }
0x29b2   :  { %v4119_v27 = vpop.f32.mrf.mxu1 }
0x29bb   :  { %v4432_v28 = vpop.eup %4431 }
0x29bc   :  { %v4434_v48 = vpop.eup %4433  ;;  %2650 = vrot.lane.b32.xlu1 %v4432_v28, %s4582_s18 }
0x29bd   :  { %2728 = vrot.lane.b32.xlu0 %v4434_v48, %s4582_s18  ;;  %v4436_v43 = vpop.eup %4435 }
0x29be   :  { %v4438_v8 = vpop.eup %4437  ;;  %v2645_v61 = vmul.f32 0.5, %v4436_v43 }
0x29bf   :  { %v2723_v10 = vmul.f32 0.5, %v4438_v8 }
0x29c0   :  { %v2646_v62 = vadd.f32 0.5, %v2645_v61 }
0x29c1   :  { %v2724_v11 = vadd.f32 0.5, %v2723_v10 }
0x29c2   :  { %v2648_v14 = vmul.f32 %v2646_v62, %v5328_v63 }
0x29c3   :  { %v2726_v33 = vmul.f32 %v2724_v11, %v5330_v12 }
0x2a2e   :  { %v2651_v40 = vpop.permute.xlu1 %2650 }
0x2a2f   :  { %v2653_v5 = vmul.f32 %v2651_v40, %v2646_v62  ;;  %v2729_v55 = vpop.permute.xlu0 %2728 }
0x2a30   :  { %v2731_v17 = vmul.f32 %v2729_v55, %v2724_v11 }
0x2a31   :  { %2655 = vrot.lane.b32.xlu1 %v2653_v5, %s4588_s27 }
0x2a32   :  { %2733 = vrot.lane.b32.xlu0 %v2731_v17, %s4588_s27 }
0x2aa3   :  { %v2656_v21 = vpop.permute.xlu1 %2655 }
0x2aa4   :  { %v5377_v42 = vadd.f32 %v2656_v21, %v2648_v14  ;;  %v2734_v29 = vpop.permute.xlu0 %2733 }
0x2aa5   :  { %v5379_v15 = vadd.f32 %v2734_v29, %v2726_v33 }
0x2aa6   :  { %4439 = vtanh.f32 %v5377_v42 }
0x2aa7   :  { %4441 = vtanh.f32 %v5379_v15 }
0x2ab3   :  { %v4440_v47 = vpop.eup %4439 }
0x2ab4   :  { %v4442_v30 = vpop.eup %4441  ;;  %2661 = vrot.lane.b32.xlu1 %v4440_v47, %s4582_s18 }
0x2ab5   :  { %2739 = vrot.lane.b32.xlu0 %v4442_v30, %s4582_s18 }
0x2b26   :  { %v2662_v38 = vpop.permute.xlu1 %2661 }
0x2b27   :  { %v5385_v63 = vmul.f32 %v2662_v38, %v2646_v62  ;;  %v2740_v49 = vpop.permute.xlu0 %2739 }
0x2b28   :  { %v2742_v12 = vmul.f32 %v2740_v49, %v2724_v11 }
0x2b29   :  { %2748 = vrot.lane.b32.xlu0 %v5385_v63, %s4582_s18 }
0x2b2a   :  { %2744 = vrot.lane.b32.xlu1 %v2742_v12, %s4588_s27  ;;  %v2826_v23 = vpack.c.bf16 %v2742_v12, %v2742_v12 }
0x2b2e   :  { %2828 = vrot.lane.b32.xlu1 %v2826_v23, %s4588_s27 }
0x2b9b   :  { %v2749_v35 = vpop.permute.xlu0 %2748 }
0x2b9c   :  { %v2745_v3 = vpop.permute.xlu1 %2744 }
0x2b9d   :  { %v2751_v56 = vsel %vm356_vm1, %v2745_v3, %v2749_v35 }
0x2b9e   :  { %v2752_v41 = vpack.c.bf16 %v2751_v56, %v2751_v56 }
0x2ba0   :  { %v2829_v44 = vpop.permute.xlu1 %2828  ;;  %4129 = vmatmul.mubr.msk.bf16.vlgmr.msra.gmra.mxu1 %vm457_vm2, %v2752_v41 }
0x2ba1   :  { %4137 = vmatmul.mubr.msk.bf16.vlgmr.msra.gmra.mxu0 %vm356_vm1, %v2829_v44  ;;  %4153 = vmatpush3.bf16.msra.mxu1 %v5246_v39 }
0x2ba2   :  { %4141 = vmatpush3.bf16.msra.mxu0 %v5293_v26  ;;  %4154 = vmatprep.subr.bf16.mxu1 %v4585_v0 }
0x2ba3   :  { %4142 = vmatprep.subr.bf16.mxu0 %v4585_v0  ;;  %4148 = vmatprep.mubr.msk.bf16.mxu0 %vm4586_vm0, %v4585_v0 }
0x2ba4   :  { %4156 = vmatprep.mubr.msk.bf16.mxu1 %vm4586_vm0, %v4585_v0 }
0x2ba5   :  { %4155 = vmatpush3.bf16.msra.mxu1 %v5256_v20 }
0x2ba6   :  { %4143 = vmatpush3.bf16.msra.mxu0 %v5303_v34  ;;  %4160 = vmatprep.subr.bf16.mxu1 %v4585_v0 }
0x2ba7   :  { %4144 = vmatprep.subr.bf16.mxu0 %v4585_v0 }
0x2baa   :  { %4145 = vmatpush3.bf16.msra.mxu0 %v5308_v7 }
0x2bab   :  { %4146 = vmatprep.subr.bf16.mxu0 %v4585_v0 }
0x2bae   :  { %4147 = vmatpush3.bf16.msra.mxu0 %v5359_v36 }
0x2baf   :  { %4172 = vmatprep.subr.bf16.mxu0 %v4585_v0 }
0x2c60   :  { %v2790_v32 = vpop.f32.mrf.mxu1 }
0x2c61   :  { %v2791_v37 = vadd.f32 %v5368_v16, %v2790_v32  ;;  %v2867_v27 = vpop.f32.mrf.mxu0 }
0x2c62   :  { %v2873_v28 = vadd.f32 %v2867_v27, %v295_v57  ;;  %v4130_v48 = vpop.f32.mrf.mxu1 }
0x2c63   :  { %4443 = vtanh.f32 %v2791_v37  ;;  %v4138_v2 = vpop.f32.mrf.mxu0  ;;  %v2796_v51 = vmul.f32 0.5, %v2791_v37 }
0x2c64   :  { %4445 = vtanh.f32 %v2873_v28  ;;  %v2793_v18 = vpop.f32.mrf.mxu1  ;;  %v2874_v40 = vmul.f32 0.5, %v2873_v28 }
0x2c65   :  { %v2870_v43 = vpop.f32.mrf.mxu0  ;;  %4447 = vtanh.f32 %v2796_v51  ;;  %v298_v18 = vadd.f32 %v5317_v25, %v4818_v53 }
0x2c66   :  { %v4131_v8 = vpop.f32.mrf.mxu1  ;;  %4449 = vtanh.f32 %v2874_v40 }
0x2c67   :  { %v4139_v61 = vpop.f32.mrf.mxu0 }
0x2c70   :  { %v4444_v10 = vpop.eup %4443 }
0x2c71   :  { %v4446_v62 = vpop.eup %4445  ;;  %2803 = vrot.lane.b32.xlu0 %v4444_v10, %s4582_s18 }
0x2c72   :  { %2881 = vrot.lane.b32.xlu1 %v4446_v62, %s4582_s18  ;;  %v4448_v11 = vpop.eup %4447 }
0x2c73   :  { %v4450_v5 = vpop.eup %4449  ;;  %v2798_v55 = vmul.f32 0.5, %v4448_v11 }
0x2c74   :  { %v2876_v17 = vmul.f32 0.5, %v4450_v5 }
0x2c75   :  { %v2799_v14 = vadd.f32 0.5, %v2798_v55 }
0x2c76   :  { %v2877_v33 = vadd.f32 0.5, %v2876_v17 }
0x2c77   :  { %v2801_v38 = vmul.f32 %v2799_v14, %v5377_v42 }
0x2c78   :  { %v2879_v12 = vmul.f32 %v2877_v33, %v5379_v15 }
0x2ce3   :  { %v2804_v21 = vpop.permute.xlu0 %2803 }
0x2ce4   :  { %v2806_v29 = vmul.f32 %v2804_v21, %v2799_v14  ;;  %v2882_v47 = vpop.permute.xlu1 %2881 }
0x2ce5   :  { %v2884_v30 = vmul.f32 %v2882_v47, %v2877_v33 }
0x2ce6   :  { %2808 = vrot.lane.b32.xlu0 %v2806_v29, %s4588_s27 }
0x2ce7   :  { %2886 = vrot.lane.b32.xlu1 %v2884_v30, %s4588_s27 }
0x2d58   :  { %v2809_v49 = vpop.permute.xlu0 %2808 }
0x2d59   :  { %v5419_v23 = vadd.f32 %v2809_v49, %v2801_v38  ;;  %v2887_v35 = vpop.permute.xlu1 %2886 }
0x2d5a   :  { %v5421_v3 = vadd.f32 %v2887_v35, %v2879_v12 }
0x2d5b   :  { %4451 = vtanh.f32 %v5419_v23 }
0x2d5c   :  { %4453 = vtanh.f32 %v5421_v3 }
0x2d68   :  { %v4452_v56 = vpop.eup %4451 }
0x2d69   :  { %v4454_v41 = vpop.eup %4453  ;;  %2814 = vrot.lane.b32.xlu0 %v4452_v56, %s4582_s18 }
0x2d6a   :  { %2892 = vrot.lane.b32.xlu1 %v4454_v41, %s4582_s18 }
0x2ddb   :  { %v2815_v44 = vpop.permute.xlu0 %2814 }
0x2ddc   :  { %v5427_v42 = vmul.f32 %v2815_v44, %v2799_v14  ;;  %v2893_v57 = vpop.permute.xlu1 %2892 }
0x2ddd   :  { %v2895_v15 = vmul.f32 %v2893_v57, %v2877_v33 }
0x2dde   :  { %2901 = vrot.lane.b32.xlu1 %v5427_v42, %s4582_s18 }
0x2ddf   :  { %2897 = vrot.lane.b32.xlu0 %v2895_v15, %s4588_s27  ;;  %v2979_v32 = vpack.c.bf16 %v2895_v15, %v2895_v15 }
0x2de3   :  { %2981 = vrot.lane.b32.xlu0 %v2979_v32, %s4588_s27 }
0x2e50   :  { %v2902_v37 = vpop.permute.xlu1 %2901 }
0x2e51   :  { %v2898_v27 = vpop.permute.xlu0 %2897 }
0x2e52   :  { %v2904_v28 = vsel %vm356_vm1, %v2898_v27, %v2902_v37 }
0x2e53   :  { %v2905_v48 = vpack.c.bf16 %v2904_v28, %v2904_v28 }
0x2e55   :  { %4149 = vmatmul.mubr.msk.bf16.vlgmr.msra.gmra.mxu0 %vm457_vm2, %v2905_v48  ;;  %v2982_v2 = vpop.permute.xlu0 %2981 }
0x2e56   :  { %4157 = vmatmul.mubr.msk.bf16.vlgmr.msra.gmra.mxu1 %vm356_vm1, %v2982_v2  ;;  %4173 = vmatpush3.bf16.msra.mxu0 %v5246_v39 }
0x2e57   :  { %4161 = vmatpush3.bf16.msra.mxu1 %v5293_v26  ;;  %4174 = vmatprep.subr.bf16.mxu0 %v4585_v0 }
0x2e58   :  { %4162 = vmatprep.subr.bf16.mxu1 %v4585_v0  ;;  %4168 = vmatprep.mubr.msk.bf16.mxu1 %vm4586_vm0, %v4585_v0 }
0x2e59   :  { %4176 = vmatprep.mubr.msk.bf16.mxu0 %vm4586_vm0, %v4585_v0 }
0x2e5a   :  { %4175 = vmatpush3.bf16.msra.mxu0 %v5256_v20 }
0x2e5b   :  { %4163 = vmatpush3.bf16.msra.mxu1 %v5303_v34  ;;  %4180 = vmatprep.subr.bf16.mxu0 %v4585_v0 }
0x2e5c   :  { %4164 = vmatprep.subr.bf16.mxu1 %v4585_v0 }
0x2e5f   :  { %4165 = vmatpush3.bf16.msra.mxu1 %v5308_v7 }
0x2e60   :  { %4166 = vmatprep.subr.bf16.mxu1 %v4585_v0 }
0x2e63   :  { %4167 = vmatpush3.bf16.msra.mxu1 %v5359_v36 }
0x2e64   :  { %4192 = vmatprep.subr.bf16.mxu1 %v4585_v0 }
0x2f15   :  { %v2943_v43 = vpop.f32.mrf.mxu0 }
0x2f16   :  { %v2944_v8 = vadd.f32 %v5368_v16, %v2943_v43  ;;  %v3020_v61 = vpop.f32.mrf.mxu1 }
0x2f17   :  { %v3026_v10 = vadd.f32 %v3020_v61, %v298_v18  ;;  %v4150_v62 = vpop.f32.mrf.mxu0 }
0x2f18   :  { %4455 = vtanh.f32 %v2944_v8  ;;  %v4158_v51 = vpop.f32.mrf.mxu1  ;;  %v2949_v53 = vmul.f32 0.5, %v2944_v8 }
0x2f19   :  { %4457 = vtanh.f32 %v3026_v10  ;;  %v2946_v40 = vpop.f32.mrf.mxu0  ;;  %v3027_v21 = vmul.f32 0.5, %v3026_v10 }
0x2f1a   :  { %v3023_v11 = vpop.f32.mrf.mxu1  ;;  %4459 = vtanh.f32 %v2949_v53 }
0x2f1b   :  { %v4151_v5 = vpop.f32.mrf.mxu0  ;;  %4461 = vtanh.f32 %v3027_v21 }
0x2f1c   :  { %v4159_v55 = vpop.f32.mrf.mxu1 }
0x2f25   :  { %v4456_v17 = vpop.eup %4455 }
0x2f26   :  { %v4458_v14 = vpop.eup %4457  ;;  %2956 = vrot.lane.b32.xlu1 %v4456_v17, %s4582_s18 }
0x2f27   :  { %3034 = vrot.lane.b32.xlu0 %v4458_v14, %s4582_s18  ;;  %v4460_v33 = vpop.eup %4459 }
0x2f28   :  { %v4462_v29 = vpop.eup %4461  ;;  %v2951_v47 = vmul.f32 0.5, %v4460_v33 }
0x2f29   :  { %v3029_v30 = vmul.f32 0.5, %v4462_v29 }
0x2f2a   :  { %v2952_v38 = vadd.f32 0.5, %v2951_v47 }
0x2f2b   :  { %v3030_v12 = vadd.f32 0.5, %v3029_v30 }
0x2f2c   :  { %v2954_v44 = vmul.f32 %v2952_v38, %v5419_v23 }
0x2f2d   :  { %v3032_v15 = vmul.f32 %v3030_v12, %v5421_v3 }
0x2f98   :  { %v2957_v49 = vpop.permute.xlu1 %2956 }
0x2f99   :  { %v2959_v35 = vmul.f32 %v2957_v49, %v2952_v38  ;;  %v3035_v56 = vpop.permute.xlu0 %3034 }
0x2f9a   :  { %v3037_v41 = vmul.f32 %v3035_v56, %v3030_v12 }
0x2f9b   :  { %2961 = vrot.lane.b32.xlu1 %v2959_v35, %s4588_s27 }
0x2f9c   :  { %3039 = vrot.lane.b32.xlu0 %v3037_v41, %s4588_s27 }
0x300d   :  { %v2962_v57 = vpop.permute.xlu1 %2961 }
0x300e   :  { %v5461_v32 = vadd.f32 %v2962_v57, %v2954_v44  ;;  %v3040_v37 = vpop.permute.xlu0 %3039 }
0x300f   :  { %v5463_v27 = vadd.f32 %v3040_v37, %v3032_v15 }
0x3010   :  { %4463 = vtanh.f32 %v5461_v32 }
0x3011   :  { %4465 = vtanh.f32 %v5463_v27 }
0x301d   :  { %v4464_v28 = vpop.eup %4463 }
0x301e   :  { %v4466_v48 = vpop.eup %4465  ;;  %2967 = vrot.lane.b32.xlu1 %v4464_v28, %s4582_s18 }
0x301f   :  { %3045 = vrot.lane.b32.xlu0 %v4466_v48, %s4582_s18 }
0x3090   :  { %v2968_v2 = vpop.permute.xlu1 %2967 }
0x3091   :  { %v5469_v23 = vmul.f32 %v2968_v2, %v2952_v38  ;;  %v3046_v18 = vpop.permute.xlu0 %3045 }
0x3092   :  { %v3048_v3 = vmul.f32 %v3046_v18, %v3030_v12 }
0x3093   :  { %3054 = vrot.lane.b32.xlu0 %v5469_v23, %s4582_s18 }
0x3094   :  { %3050 = vrot.lane.b32.xlu1 %v3048_v3, %s4588_s27  ;;  %v3132_v43 = vpack.c.bf16 %v3048_v3, %v3048_v3 }
0x3098   :  { %3134 = vrot.lane.b32.xlu1 %v3132_v43, %s4588_s27 }
0x3105   :  { %v3055_v8 = vpop.permute.xlu0 %3054 }
0x3106   :  { %v3051_v61 = vpop.permute.xlu1 %3050 }
0x3107   :  { %v3057_v10 = vsel %vm356_vm1, %v3051_v61, %v3055_v8 }
0x3108   :  { %v3058_v62 = vpack.c.bf16 %v3057_v10, %v3057_v10 }
0x310a   :  { %v3135_v51 = vpop.permute.xlu1 %3134  ;;  %4169 = vmatmul.mubr.msk.bf16.vlgmr.msra.gmra.mxu1 %vm457_vm2, %v3058_v62 }
0x310b   :  { %4177 = vmatmul.mubr.msk.bf16.vlgmr.msra.gmra.mxu0 %vm356_vm1, %v3135_v51  ;;  %4193 = vmatpush3.bf16.msra.mxu1 %v5246_v39  ;;  %v303_v39 = vadd.f32 %v5317_v25, %v4812_v50 }
0x310c   :  { %4181 = vmatpush3.bf16.msra.mxu0 %v5293_v26  ;;  %4194 = vmatprep.subr.bf16.mxu1 %v4585_v0 }
0x310d   :  { %4182 = vmatprep.subr.bf16.mxu0 %v4585_v0  ;;  %4188 = vmatprep.mubr.msk.bf16.mxu0 %vm4586_vm0, %v4585_v0 }
0x310e   :  { %4196 = vmatprep.mubr.msk.bf16.mxu1 %vm4586_vm0, %v4585_v0 }
0x310f   :  { %4195 = vmatpush3.bf16.msra.mxu1 %v5256_v20 }
0x3110   :  { %4183 = vmatpush3.bf16.msra.mxu0 %v5303_v34  ;;  %4200 = vmatprep.subr.bf16.mxu1 %v4585_v0 }
0x3111   :  { %4184 = vmatprep.subr.bf16.mxu0 %v4585_v0 }
0x3114   :  { %4185 = vmatpush3.bf16.msra.mxu0 %v5308_v7 }
0x3115   :  { %4186 = vmatprep.subr.bf16.mxu0 %v4585_v0 }
0x3118   :  { %4187 = vmatpush3.bf16.msra.mxu0 %v5359_v36 }
0x3119   :  { %4212 = vmatprep.subr.bf16.mxu0 %v4585_v0 }
0x31ca   :  { %v3096_v40 = vpop.f32.mrf.mxu1 }
0x31cb   :  { %v3097_v20 = vadd.f32 %v5368_v16, %v3096_v40  ;;  %v3173_v11 = vpop.f32.mrf.mxu0 }
0x31cc   :  { %v3179_v5 = vadd.f32 %v3173_v11, %v303_v39  ;;  %v4170_v55 = vpop.f32.mrf.mxu1 }
0x31cd   :  { %4467 = vtanh.f32 %v3097_v20  ;;  %v4178_v17 = vpop.f32.mrf.mxu0  ;;  %v3102_v50 = vmul.f32 0.5, %v3097_v20  ;;  %v306_v55 = vadd.f32 %v5317_v25, %v4816_v52 }
0x31ce   :  { %4469 = vtanh.f32 %v3179_v5  ;;  %v3099_v14 = vpop.f32.mrf.mxu1  ;;  %v3180_v30 = vmul.f32 0.5, %v3179_v5 }
0x31cf   :  { %v3176_v53 = vpop.f32.mrf.mxu0  ;;  %4471 = vtanh.f32 %v3102_v50 }
0x31d0   :  { %v4171_v21 = vpop.f32.mrf.mxu1  ;;  %4473 = vtanh.f32 %v3180_v30 }
0x31d1   :  { %v4179_v33 = vpop.f32.mrf.mxu0 }
0x31da   :  { %v4468_v29 = vpop.eup %4467 }
0x31db   :  { %v4470_v47 = vpop.eup %4469  ;;  %3109 = vrot.lane.b32.xlu0 %v4468_v29, %s4582_s18 }
0x31dc   :  { %3187 = vrot.lane.b32.xlu1 %v4470_v47, %s4582_s18  ;;  %v4472_v38 = vpop.eup %4471 }
0x31dd   :  { %v4474_v49 = vpop.eup %4473  ;;  %v3104_v12 = vmul.f32 0.5, %v4472_v38 }
0x31de   :  { %v3182_v35 = vmul.f32 0.5, %v4474_v49 }
0x31df   :  { %v3105_v56 = vadd.f32 0.5, %v3104_v12 }
0x31e0   :  { %v3183_v44 = vadd.f32 0.5, %v3182_v35 }
0x31e1   :  { %v3107_v28 = vmul.f32 %v3105_v56, %v5461_v32 }
0x31e2   :  { %v3185_v2 = vmul.f32 %v3183_v44, %v5463_v27 }
0x324d   :  { %v3110_v41 = vpop.permute.xlu0 %3109 }
0x324e   :  { %v3112_v57 = vmul.f32 %v3110_v41, %v3105_v56  ;;  %v3188_v15 = vpop.permute.xlu1 %3187 }
0x324f   :  { %v3190_v37 = vmul.f32 %v3188_v15, %v3183_v44 }
0x3250   :  { %3114 = vrot.lane.b32.xlu0 %v3112_v57, %s4588_s27 }
0x3251   :  { %3192 = vrot.lane.b32.xlu1 %v3190_v37, %s4588_s27 }
0x32c2   :  { %v3115_v48 = vpop.permute.xlu0 %3114 }
0x32c3   :  { %v5503_v18 = vadd.f32 %v3115_v48, %v3107_v28  ;;  %v3193_v3 = vpop.permute.xlu1 %3192 }
0x32c4   :  { %v5505_v43 = vadd.f32 %v3193_v3, %v3185_v2 }
0x32c5   :  { %4475 = vtanh.f32 %v5503_v18 }
0x32c6   :  { %4477 = vtanh.f32 %v5505_v43 }
0x32d2   :  { %v4476_v8 = vpop.eup %4475 }
0x32d3   :  { %v4478_v61 = vpop.eup %4477  ;;  %3120 = vrot.lane.b32.xlu0 %v4476_v8, %s4582_s18 }
0x32d4   :  { %3198 = vrot.lane.b32.xlu1 %v4478_v61, %s4582_s18 }
0x3345   :  { %v3121_v10 = vpop.permute.xlu0 %3120 }
0x3346   :  { %v5511_v32 = vmul.f32 %v3121_v10, %v3105_v56  ;;  %v3199_v62 = vpop.permute.xlu1 %3198 }
0x3347   :  { %v3201_v27 = vmul.f32 %v3199_v62, %v3183_v44 }
0x3348   :  { %3207 = vrot.lane.b32.xlu1 %v5511_v32, %s4582_s18 }
0x3349   :  { %3203 = vrot.lane.b32.xlu0 %v3201_v27, %s4588_s27  ;;  %v3285_v51 = vpack.c.bf16 %v3201_v27, %v3201_v27 }
0x334d   :  { %3287 = vrot.lane.b32.xlu0 %v3285_v51, %s4588_s27 }
0x33ba   :  { %v3208_v39 = vpop.permute.xlu1 %3207 }
0x33bb   :  { %v3204_v40 = vpop.permute.xlu0 %3203 }
0x33bc   :  { %v3210_v20 = vsel %vm356_vm1, %v3204_v40, %v3208_v39 }
0x33bd   :  { %v3211_v11 = vpack.c.bf16 %v3210_v20, %v3210_v20 }
0x33bf   :  { %4189 = vmatmul.mubr.msk.bf16.vlgmr.msra.gmra.mxu0 %vm457_vm2, %v3211_v11  ;;  %v3288_v5 = vpop.permute.xlu0 %3287 }
0x33c0   :  { %4197 = vmatmul.mubr.msk.bf16.vlgmr.msra.gmra.mxu1 %vm356_vm1, %v3288_v5  ;;  %4216 = vmatprep.mubr.msk.bf16.mxu0 %vm4586_vm0, %v4585_v0 }
0x33c1   :  { %4201 = vmatpush3.bf16.msra.mxu1 %v5293_v26  ;;  %4208 = vmatprep.mubr.msk.bf16.mxu1 %vm4586_vm0, %v4585_v0 }
0x33c2   :  { %4202 = vmatprep.subr.bf16.mxu1 %v4585_v0 }
0x33c5   :  { %4203 = vmatpush3.bf16.msra.mxu1 %v5303_v34 }
0x33c6   :  { %4204 = vmatprep.subr.bf16.mxu1 %v4585_v0 }
0x33c9   :  { %4205 = vmatpush3.bf16.msra.mxu1 %v5308_v7 }
0x33ca   :  { %4206 = vmatprep.subr.bf16.mxu1 %v4585_v0 }
0x33cd   :  { %4207 = vmatpush3.bf16.msra.mxu1 %v5359_v36 }
0x347f   :  { %v3249_v17 = vpop.f32.mrf.mxu0 }
0x3480   :  { %v3250_v26 = vadd.f32 %v5368_v16, %v3249_v17  ;;  %v3326_v14 = vpop.f32.mrf.mxu1 }
0x3481   :  { %v3332_v53 = vadd.f32 %v3326_v14, %v306_v55  ;;  %v4190_v21 = vpop.f32.mrf.mxu0  ;;  %v5556_v14 = vld [vmem:[%s5636_s1] sm:$0xff] }
0x3482   :  { %4479 = vtanh.f32 %v3250_v26  ;;  %v4198_v33 = vpop.f32.mrf.mxu1  ;;  %v3255_v52 = vmul.f32 0.5, %v3250_v26  ;;  %vm523_vm3 = vcmp.eq.s32.totalorder %v5556_v14, 0  ;;  %vm829_vm4 = vcmp.eq.s32.totalorder %v5556_v14, 2 }
0x3483   :  { %4481 = vtanh.f32 %v3332_v53  ;;  %v3252_v34 = vpop.f32.mrf.mxu0  ;;  %v3333_v25 = vmul.f32 0.5, %v3332_v53  ;;  %v524_v21 = vsel %vm523_vm3, 1, %v4587_v1  ;;  %vm982_vm5 = vcmp.eq.s32.totalorder %v5556_v14, 3 }
0x3484   :  { %v3329_v29 = vpop.f32.mrf.mxu1  ;;  %4483 = vtanh.f32 %v3255_v52  ;;  %v983_v33 = vsel %vm982_vm5, 1, %v4587_v1  ;;  %vm1288_vm6 = vcmp.eq.s32.totalorder %v5556_v14, 5  ;;  %vm1594_vm7 = vcmp.eq.s32.totalorder %v5556_v14, 7 }
0x3485   :  { %v4191_v47 = vpop.f32.mrf.mxu0  ;;  %4485 = vtanh.f32 %v3333_v25  ;;  %v1289_v34 = vsel %vm1288_vm6, 1, %v4587_v1  ;;  %v1595_v29 = vsel %vm1594_vm7, 1, %v4587_v1  ;;  %vm1900_vm8 = vcmp.eq.s32.totalorder %v5556_v14, 9 }
0x3486   :  { %v4199_v7 = vpop.f32.mrf.mxu1  ;;  %v1901_v47 = vsel %vm1900_vm8, 1, %v4587_v1  ;;  %vm2206_vm9 = vcmp.eq.s32.totalorder %v5556_v14, 11  ;;  %vm2512_vm10 = vcmp.eq.s32.totalorder %v5556_v14, 13  ;;  %vm2818_vm11 = vcmp.eq.s32.totalorder %v5556_v14, 15 }
0x3487   :  { %v2207_v7 = vsel %vm2206_vm9, 1, %v4587_v1  ;;  %vm3124_vm12 = vcmp.eq.s32.totalorder %v5556_v14, 17  ;;  %vm3430_vm13 = vcmp.eq.s32.totalorder %v5556_v14, 19  ;;  %vm676_vm14 = vcmp.eq.s32.totalorder %v5556_v14, 1 }
0x3488   :  { %v3125_v52 = vsel %vm3124_vm12, 1, %v4587_v1  ;;  %v3431_v25 = vsel %vm3430_vm13, 1, %v4587_v1  ;;  %vm1135_vm15 = vcmp.eq.s32.totalorder %v5556_v14, 4  ;;  %vm1441_vm0 = vcmp.eq.s32.totalorder %v5556_v14, 6 }
0x3489   :  { %vm2053_vm3 = vcmp.eq.s32.totalorder %v5556_v14, 10  ;;  %vm2665_vm5 = vcmp.eq.s32.totalorder %v5556_v14, 14  ;;  %vm2971_vm6 = vcmp.eq.s32.totalorder %v5556_v14, 16  ;;  %vm3277_vm7 = vcmp.eq.s32.totalorder %v5556_v14, 18 }
0x348f   :  { %v4480_v50 = vpop.eup %4479 }
0x3490   :  { %v4482_v30 = vpop.eup %4481  ;;  %3262 = vrot.lane.b32.xlu1 %v4480_v50, %s4582_s18  ;;  %v2513_v50 = vsel %vm2512_vm10, 1, %v4587_v1 }
0x3491   :  { %3340 = vrot.lane.b32.xlu0 %v4482_v30, %s4582_s18  ;;  %v4484_v36 = vpop.eup %4483  ;;  %v2819_v30 = vsel %vm2818_vm11, 1, %v4587_v1 }
0x3492   :  { %v4486_v38 = vpop.eup %4485  ;;  %v3257_v49 = vmul.f32 0.5, %v4484_v36 }
0x3493   :  { %v3335_v12 = vmul.f32 0.5, %v4486_v38 }
0x3494   :  { %v3258_v35 = vadd.f32 0.5, %v3257_v49 }
0x3495   :  { %v3336_v41 = vadd.f32 0.5, %v3335_v12 }
0x3496   :  { %v3260_v37 = vmul.f32 %v3258_v35, %v5503_v18 }
0x3497   :  { %v3338_v48 = vmul.f32 %v3336_v41, %v5505_v43 }
0x3502   :  { %v3263_v56 = vpop.permute.xlu1 %3262 }
0x3503   :  { %v3265_v44 = vmul.f32 %v3263_v56, %v3258_v35  ;;  %v3341_v57 = vpop.permute.xlu0 %3340 }
0x3504   :  { %v3343_v15 = vmul.f32 %v3341_v57, %v3336_v41  ;;  %v1442_v57 = vsel %vm1441_vm0, 1, %v4587_v1 }
0x3505   :  { %3267 = vrot.lane.b32.xlu1 %v3265_v44, %s4588_s27  ;;  %v1136_v44 = vsel %vm1135_vm15, 1, %v4587_v1 }
0x3506   :  { %3345 = vrot.lane.b32.xlu0 %v3343_v15, %s4588_s27 }
0x3577   :  { %v3268_v28 = vpop.permute.xlu1 %3267 }
0x3578   :  { %v5540_v2 = vadd.f32 %v3268_v28, %v3260_v37  ;;  %v3346_v3 = vpop.permute.xlu0 %3345  ;;  %v2054_v37 = vsel %vm2053_vm3, 1, %v4587_v1 }
0x3579   :  { %v3348_v8 = vadd.f32 %v3346_v3, %v3338_v48  ;;  %v2666_v48 = vsel %vm2665_vm5, 1, %v4587_v1  ;;  %v2972_v3 = vsel %vm2971_vm6, 1, %v4587_v1 }
0x357a   :  { %4487 = vtanh.f32 %v5540_v2 }
0x357b   :  { %4489 = vtanh.f32 %v3348_v8  ;;  %v3278_v8 = vsel %vm3277_vm7, 1, %v4587_v1 }
0x3587   :  { %v4488_v61 = vpop.eup %4487 }
0x3588   :  { %v4490_v10 = vpop.eup %4489  ;;  %3273 = vrot.lane.b32.xlu1 %v4488_v61, %s4582_s18 }
0x3589   :  { %3351 = vrot.lane.b32.xlu0 %v4490_v10, %s4582_s18 }
0x35fa   :  { %v3274_v62 = vpop.permute.xlu1 %3273 }
0x35fb   :  { %v5545_v27 = vmul.f32 %v3274_v62, %v3258_v35  ;;  %v3352_v18 = vpop.permute.xlu0 %3351 }
0x35fc   :  { %v3354_v51 = vmul.f32 %v3352_v18, %v3336_v41  ;;  %v677_v41 = vsel %vm676_vm14, 1, %v4587_v1  ;;  %v4255_v18 = vld [vmem:[#allocation6 + $0x78] sm:$0xff]  }
0x35fd   :  { %3360 = vrot.lane.b32.xlu0 %v5545_v27, %s4582_s18  ;;  %4213 = vmatpush3.bf16.msra.mxu0 %v4255_v18 }
0x35fe   :  { %3356 = vrot.lane.b32.xlu1 %v3354_v51, %s4588_s27  ;;  %v4256_v51 = vld [vmem:[#allocation6 + $0x70] sm:$0xff]   ;;  %4214 = vmatprep.subr.bf16.mxu0 %v4585_v0 }
0x3601   :  { %4215 = vmatpush3.bf16.msra.mxu0 %v4256_v51 }
0x366f   :  { %v3361_v43 = vpop.permute.xlu0 %3360 }
0x3670   :  { %v3357_v39 = vpop.permute.xlu1 %3356 }
0x3671   :  { %v3363_v40 = vsel %vm356_vm1, %v3357_v39, %v3361_v43 }
0x3672   :  { %v3364_v20 = vpack.c.bf16 %v3363_v40, %v3363_v40 }
0x3674   :  { %4209 = vmatmul.mubr.msk.bf16.vlgmr.msra.gmra.mxu1 %vm457_vm2, %v3364_v20  ;;  %vm1747_vm2 = vcmp.eq.s32.totalorder %v5556_v14, 8 }
0x3675   :  { %v1748_v15 = vsel %vm1747_vm2, 1, %v4587_v1 }
0x3734   :  { %v3402_v11 = vpop.f32.mrf.mxu1 }
0x3735   :  { %v3403_v5 = vadd.f32 %v5368_v16, %v3402_v11  ;;  %v830_v16 = vsel %vm829_vm4, 1, %v4587_v1  ;;  %vm2359_vm4 = vcmp.eq.s32.totalorder %v5556_v14, 12 }
0x3736   :  { %v4210_v55 = vpop.f32.mrf.mxu1  ;;  %v2360_v28 = vsel %vm2359_vm4, 1, %v4587_v1 }
0x3737   :  { %4491 = vtanh.f32 %v3403_v5  ;;  %v3408_v36 = vmul.f32 0.5, %v3403_v5 }
0x3738   :  { %v3405_v17 = vpop.f32.mrf.mxu1 }
0x3739   :  { %4493 = vtanh.f32 %v3408_v36 }
0x373a   :  { %v4211_v26 = vpop.f32.mrf.mxu1 }
0x3744   :  { %v4492_v53 = vpop.eup %4491 }
0x3745   :  { %3415 = vrot.lane.b32.xlu1 %v4492_v53, %s4582_s18 }
0x3746   :  { %v4494_v38 = vpop.eup %4493 }
0x3747   :  { %v3410_v49 = vmul.f32 0.5, %v4494_v38 }
0x3749   :  { %526 = vperm.xlu1 %4229, %v524_v21   ;;  %v5581_v12 = vadd.f32 0.5, %v3410_v49 }
0x374b   :  { %v3413_v61 = vmul.f32 %v5581_v12, %v5540_v2 }
0x374d   :  { %832 = vperm.xlu1 %4229, %v830_v16  }
0x3751   :  { %985 = vperm.xlu1 %4229, %v983_v33  }
0x3755   :  { %1291 = vperm.xlu1 %4229, %v1289_v34  }
0x3759   :  { %1597 = vperm.xlu1 %4229, %v1595_v29  }
0x375d   :  { %1903 = vperm.xlu1 %4229, %v1901_v47  }
0x3761   :  { %2209 = vperm.xlu1 %4229, %v2207_v7  }
0x3765   :  { %2515 = vperm.xlu1 %4229, %v2513_v50  }
0x3769   :  { %2821 = vperm.xlu1 %4229, %v2819_v30  }
0x376d   :  { %3127 = vperm.xlu1 %4229, %v3125_v52  }
0x3771   :  { %3433 = vperm.xlu1 %4229, %v3431_v25  }
0x37b7   :  { %v3416_v35 = vpop.permute.xlu1 %3415 }
0x37b8   :  { %v3418_v56 = vmul.f32 %v3416_v35, %v5581_v12 }
0x37ba   :  { %3420 = vrot.lane.b32.xlu0 %v3418_v56, %s4588_s27 }
0x37be   :  { %679 = vperm.xlu0 %4230, %v677_v41  }
0x37c2   :  { %1138 = vperm.xlu0 %4230, %v1136_v44  }
0x37c4   :  { %v527_v39 = vpop.permute.xlu1 %526 }
0x37c5   :  { %vm528_vm8 = vcmp.eq.s32.totalorder %v527_v39, 1 }
0x37c6   :  { %1444 = vperm.xlu0 %4230, %v1442_v57   ;;  %v529_v2 = vsel %vm528_vm8, %v4723_v24, 0.0 }
0x37c8   :  { %v833_v40 = vpop.permute.xlu1 %832 }
0x37c9   :  { %vm834_vm10 = vcmp.eq.s32.totalorder %v833_v40, 1 }
0x37ca   :  { %1750 = vperm.xlu0 %4230, %v1748_v15  }
0x37cc   :  { %v986_v1 = vpop.permute.xlu1 %985 }
0x37cd   :  { %vm987_vm11 = vcmp.eq.s32.totalorder %v986_v1, 1 }
0x37ce   :  { %2056 = vperm.xlu0 %4230, %v2054_v37  }
0x37d0   :  { %v1292_v5 = vpop.permute.xlu1 %1291 }
0x37d1   :  { %vm1293_vm13 = vcmp.eq.s32.totalorder %v1292_v5, 1 }
0x37d2   :  { %2362 = vperm.xlu0 %4230, %v2360_v28  }
0x37d4   :  { %v1598_v26 = vpop.permute.xlu1 %1597 }
0x37d5   :  { %vm1599_vm15 = vcmp.eq.s32.totalorder %v1598_v26, 1 }
0x37d6   :  { %2668 = vperm.xlu0 %4230, %v2666_v48  }
0x37d8   :  { %v1904_v21 = vpop.permute.xlu1 %1903 }
0x37d9   :  { %vm1905_vm2 = vcmp.eq.s32.totalorder %v1904_v21, 1 }
0x37da   :  { %2974 = vperm.xlu0 %4230, %v2972_v3  }
0x37dc   :  { %v2210_v24 = vpop.permute.xlu1 %2209 }
0x37dd   :  { %vm2211_vm4 = vcmp.eq.s32.totalorder %v2210_v24, 1 }
0x37de   :  { %3280 = vperm.xlu0 %4230, %v3278_v8  }
0x382c   :  { %v3421_v10 = vpop.permute.xlu0 %3420 }
0x382d   :  { %v3423_v62 = vadd.f32 %v3421_v10, %v3413_v61 }
0x382f   :  { %4495 = vtanh.f32 %v3423_v62 }
0x3839   :  { %v680_v20 = vpop.permute.xlu0 %679 }
0x383a   :  { %vm681_vm9 = vcmp.eq.s32.totalorder %v680_v20, 1 }
0x383b   :  { %v682_v17 = vsel %vm681_vm9, %v4763_v22, %v529_v2 }
0x383c   :  { %v4496_v43 = vpop.eup %4495  ;;  %v835_v14 = vsel %vm834_vm10, %v4837_v54, %v682_v17 }
0x383d   :  { %3426 = vrot.lane.b32.xlu0 %v4496_v43, %s4582_s18  ;;  %v1139_v11 = vpop.permute.xlu0 %1138  ;;  %v988_v53 = vsel %vm987_vm11, %v4879_v60, %v835_v14  ;;  %v2516_v60 = vpop.permute.xlu1 %2515 }
0x383e   :  { %vm1140_vm12 = vcmp.eq.s32.totalorder %v1139_v11, 1  ;;  %vm2517_vm6 = vcmp.eq.s32.totalorder %v2516_v60, 1 }
0x383f   :  { %v1141_v33 = vsel %vm1140_vm12, %v4921_v4, %v988_v53 }
0x3840   :  { %v1294_v34 = vsel %vm1293_vm13, %v4967_v6, %v1141_v33 }
0x3841   :  { %v1445_v55 = vpop.permute.xlu0 %1444 }
0x3842   :  { %vm1446_vm14 = vcmp.eq.s32.totalorder %v1445_v55, 1 }
0x3843   :  { %v1447_v29 = vsel %vm1446_vm14, %v5020_v13, %v1294_v34  ;;  %v2822_v13 = vpop.permute.xlu1 %2821 }
0x3844   :  { %v1600_v54 = vsel %vm1599_vm15, %v5069_v19, %v1447_v29  ;;  %vm2823_vm8 = vcmp.eq.s32.totalorder %v2822_v13, 1 }
0x3845   :  { %v1751_v0 = vpop.permute.xlu0 %1750 }
0x3846   :  { %vm1752_vm0 = vcmp.eq.s32.totalorder %v1751_v0, 1 }
0x3847   :  { %v1753_v47 = vsel %vm1752_vm0, %v5111_v31, %v1600_v54  ;;  %v3128_v25 = vpop.permute.xlu1 %3127 }
0x3848   :  { %v1906_v4 = vsel %vm1905_vm2, %v5153_v58, %v1753_v47  ;;  %vm3129_vm10 = vcmp.eq.s32.totalorder %v3128_v25, 1 }
0x3849   :  { %v2057_v16 = vpop.permute.xlu0 %2056 }
0x384a   :  { %vm2058_vm3 = vcmp.eq.s32.totalorder %v2057_v16, 1 }
0x384b   :  { %v2059_v50 = vsel %vm2058_vm3, %v5195_v45, %v1906_v4 }
0x384c   :  { %v2212_v6 = vsel %vm2211_vm4, %v5237_v59, %v2059_v50  ;;  %v3434_v59 = vpop.permute.xlu1 %3433 }
0x384d   :  { %v2363_v22 = vpop.permute.xlu0 %2362  ;;  %vm3435_vm12 = vcmp.eq.s32.totalorder %v3434_v59, 1 }
0x384e   :  { %vm2364_vm5 = vcmp.eq.s32.totalorder %v2363_v22, 1 }
0x384f   :  { %v2365_v30 = vsel %vm2364_vm5, %v5283_v46, %v2212_v6 }
0x3850   :  { %v2518_v19 = vsel %vm2517_vm6, %v5336_v9, %v2365_v30 }
0x3851   :  { %v2669_v7 = vpop.permute.xlu0 %2668 }
0x3852   :  { %vm2670_vm7 = vcmp.eq.s32.totalorder %v2669_v7, 1 }
0x3853   :  { %v2671_v31 = vsel %vm2670_vm7, %v5385_v63, %v2518_v19 }
0x3854   :  { %v2824_v45 = vsel %vm2823_vm8, %v5427_v42, %v2671_v31  ;;  %v3591_v42 = vld [vmem:[%s5638_s3 + $0x2] ss:$0 sm:$0xff] }
0x3855   :  { %v2975_v52 = vpop.permute.xlu0 %2974 }
0x3856   :  { %vm2976_vm9 = vcmp.eq.s32.totalorder %v2975_v52, 1 }
0x3857   :  { %v2977_v36 = vsel %vm2976_vm9, %v5469_v23, %v2824_v45 }
0x3858   :  { %v3130_v46 = vsel %vm3129_vm10, %v5511_v32, %v2977_v36 }
0x3859   :  { %v3281_v58 = vpop.permute.xlu0 %3280 }
0x385a   :  { %vm3282_vm11 = vcmp.eq.s32.totalorder %v3281_v58, 1 }
0x385b   :  { %v3283_v9 = vsel %vm3282_vm11, %v5545_v27, %v3130_v46 }
0x38af   :  { %v3427_v38 = vpop.permute.xlu0 %3426 }
0x38b0   :  { %v3429_v49 = vmul.f32 %v3427_v38, %v5581_v12 }
0x38b2   :  { %v3436_v63 = vsel %vm3435_vm12, %v3429_v49, %v3283_v9 }
0x38b3   :  { %v3442_v35 = vpack.c.bf16 %v3436_v63, %v3436_v63 }
0x38b5   :  { %3448 = vrot.lane.b32.xlu1 %v3442_v35, %s4588_s27 }
0x3927   :  { %v3449_v56 = vpop.permute.xlu1 %3448 }
0x3928   :  { %4217 = vmatmul.mubr.msk.bf16.vlgmr.msra.gmra.mxu0 %vm356_vm1, %v3449_v56 }
0x39e8   :  { %v3499_v23 = vpop.f32.mrf.mxu0 }
0x39e9   :  { %v3500_v41 = vadd.f32 %v3591_v42, %v3499_v23 }
0x39ea   :  { %v4218_v44 = vpop.f32.mrf.mxu0 }
0x39eb   :  { %v3505_v32 = vmul.f32 0.5, %v3500_v41 }
0x39ec   :  { %v3502_v57 = vpop.f32.mrf.mxu0 }
0x39ed   :  { %4497 = vtanh.f32 %v3505_v32 }
0x39ee   :  { %v4219_v12 = vpop.f32.mrf.mxu0 }
0x39fa   :  { %v4498_v27 = vpop.eup %4497 }
0x39fb   :  { %v3507_v15 = vmul.f32 0.5, %v4498_v27 }
0x39fd   :  { %v3508_v37 = vadd.f32 0.5, %v3507_v15 }
0x39ff   :  { %3509 = vst [vmem:[#allocation8] sm:$0xff] %v3508_v37 }
0x3a00   :  { %4566 = shalt.err (!%p4563_p0)
}
0x3a01   :  { %3519 = dma.vmem_to_hbm [thread:$0]  %s3517_s16, 128, %s5639_s4, [#allocation5]  }
0x3a02   :  { %4579 = dma.done.wait [#allocation5], 128  }
0x3a03   :  { %4580 = vsyncadd [#allocation5], 4294967168 }
0x3a04   :  { %3523 = vsyncpa [#allocation4], 1 }
0x3a05   :  { %3524 = vsyncpa [#allocation7], 1 }
0x3a06   :  { %3525 = vsyncpa [#allocation5], 1 }

</bundles_post_ra>
